<compile_context>
chip_gen: v7x
topology: tpu7x:2x2x1
jax: 0.10.0
libtpu: 0.0.40
codegen_flags: <defaults>
</compile_context>

<pallas_src>
import functools

import jax
import jax.numpy as jnp
from jax import lax
from jax.experimental import pallas as pl
from jax.experimental.pallas import tpu as pltpu


def _interval_embedding_kernel(x_ref, w1_ref, b1_ref, emb_ref, o_ref):
    # x_ref:   (block_n, 1)
    # w1_ref:  (1, num_bins)        (torch Linear(1, num_bins).weight transposed)
    # b1_ref:  (1, num_bins)
    # emb_ref: (num_bins, hidden)
    # o_ref:   (block_n, hidden)
    x = x_ref[...].astype(jnp.float32)                      # (bn, 1)
    w1 = w1_ref[...].astype(jnp.float32)                    # (1, nb)
    b1 = b1_ref[...].astype(jnp.float32)                    # (1, nb)

    # K=1 Linear is a degenerate outer product -> do it on the VPU via broadcasting,
    # keeping the MXU free for the real p @ emb contraction.
    logits = x * w1 + b1                                     # (bn, nb)

    # Numerically-stable softmax over the bin axis. Exact divide (no approx reciprocal):
    # this kernel is HBM-bound, so the VPU divide is free and keeps parity with the
    # reference module.
    m = jnp.max(logits, axis=-1, keepdims=True)
    e = jnp.exp(logits - m)
    p = e / jnp.sum(e, axis=-1, keepdims=True)               # (bn, nb), rows sum to 1

    # Weighted mix of bin embeddings: single bf16 MXU pass, f32 accumulation.
    out = jnp.dot(p.astype(jnp.bfloat16),
                  emb_ref[...].astype(jnp.bfloat16),
                  preferred_element_type=jnp.float32)        # (bn, hidden)
    o_ref[...] = out.astype(o_ref.dtype)


def _round_up(v, m):
    return ((v + m - 1) // m) * m


def interval_embedding(x, w1, b1, emb, *, block_n=1024, out_dtype=None):
    """x: [N] float; w1: [1, num_bins]; b1: [1, num_bins]; emb: [num_bins, hidden].

    Returns [N, hidden] in `out_dtype` (default bfloat16 — halves the dominant output
    writeback traffic; accumulation stays f32 inside the kernel).
    """
    N = x.shape[0]
    num_bins, hidden = emb.shape
    if out_dtype is None:
        out_dtype = jnp.bfloat16

    # Row tile: sublane multiple, no larger than the (rounded-up) problem, and split into
    # >= 2 grid steps whenever possible so v7x's two TensorCores both get work under
    # dimension_semantics=("parallel",).
    block_n = max(8, min(_round_up(block_n, 8), _round_up(N, 8)))
    if N > 8 and pl.cdiv(N, block_n) < 2:
        block_n = max(8, _round_up(pl.cdiv(N, 2), 8))

    grid = (pl.cdiv(N, block_n),)
    x2 = x.reshape(N, 1)     # native dtype; kernel upcasts on the VPU (no wrapper pass)

    out_itemsize = jnp.dtype(out_dtype).itemsize
    cost = pl.CostEstimate(
        flops=2 * N * num_bins * hidden + 4 * N * num_bins,
        transcendentals=N * num_bins,
        bytes_accessed=(N * jnp.dtype(x.dtype).itemsize      # x read
                        + N * hidden * out_itemsize          # output write (dominant)
                        + num_bins * hidden * jnp.dtype(emb.dtype).itemsize
                        + 2 * num_bins * 4),                 # w1 + b1
    )

    # Scoped-VMEM accounting: double-buffer factor counted exactly once. The (block_n, 1)
    # x tile pads its last dim to 128 lanes in VMEM (block_n * 512 B per buffer) — fine at
    # block_n <= 2048, and budgeted here so scaling block_n further doesn't silently
    # overflow v7x's 64 MiB VMEM. Cap at 48 MiB to leave compiler-scratch headroom.
    param_bytes = (num_bins * max(hidden, 128) + 2 * max(num_bins, 128)) * 4
    est_vmem = (2 * block_n * 128 * 4                             # x tiles (lane-padded)
                + 2 * block_n * max(hidden, 128) * out_itemsize   # output tiles
                + 2 * param_bytes)                                # resident params
    vmem_limit_bytes = None
    if est_vmem > 16 * 1024 * 1024:            # beyond v5e's default scoped limit
        vmem_limit_bytes = min(est_vmem + (4 << 20), 48 * 1024 * 1024)

    # Partial last block (N % block_n != 0): out-of-range rows read unspecified x, but all
    # math is row-wise and their stores are dropped, so in-range rows are exact.
    out = pl.pallas_call(
        _interval_embedding_kernel,
        out_shape=jax.ShapeDtypeStruct((N, hidden), out_dtype),
        grid_spec=pltpu.PrefetchScalarGridSpec(
            num_scalar_prefetch=0,
            grid=grid,
            in_specs=[
                pl.BlockSpec((block_n, 1), lambda i: (i, 0)),       # rows of x
                pl.BlockSpec((1, num_bins), lambda i: (0, 0)),      # resident params
                pl.BlockSpec((1, num_bins), lambda i: (0, 0)),
                pl.BlockSpec((num_bins, hidden), lambda i: (0, 0)),
            ],
            out_specs=pl.BlockSpec((block_n, hidden), lambda i: (i, 0)),
        ),
        compiler_params=pltpu.CompilerParams(
            dimension_semantics=("parallel",),
            vmem_limit_bytes=vmem_limit_bytes,
        ),
        cost_estimate=cost,
    )(x2, w1, b1, emb)

    return out


def interval_embedding_ref(x, w1, b1, emb):
    """Pure-JAX f32 reference matching the PyTorch module's forward."""
    logits = x.reshape(-1, 1).astype(jnp.float32) * w1 + b1       # Linear(1, num_bins)
    p = jax.nn.softmax(logits, axis=-1)
    return jnp.dot(p, emb, precision=lax.Precision.HIGHEST)       # logit @ emb.weight


if __name__ == "__main__":
    num_bins = 16
    hidden_size = 128   # multiple of 128 -> lane-dense, unmasked output stores
    N = 2048            # flattened batch; block_n=1024 -> grid of 2 (one step per v7x TC)

    key = jax.random.PRNGKey(0)
    k_x, k_w1, k_b1, k_emb = jax.random.split(key, 4)

    # Deterministic parameter init mimicking the module's shapes:
    #   nn.Linear(1, num_bins):  weight [num_bins, 1] (stored transposed here), bias [num_bins]
    #   nn.Embedding(num_bins, hidden_size): weight [num_bins, hidden_size]
    w1 = jax.random.uniform(k_w1, (1, num_bins), jnp.float32, -1.0, 1.0)
    b1 = jax.random.uniform(k_b1, (1, num_bins), jnp.float32, -1.0, 1.0)
    emb = jax.random.normal(k_emb, (num_bins, hidden_size), jnp.float32)

    x = jax.random.uniform(k_x, (N,), jnp.float32, 0.0, 5.0)  # interval values

    run = jax.jit(functools.partial(interval_embedding, block_n=1024))
    out = jax.block_until_ready(run(x, w1, b1, emb))

    assert out.shape == (N, hidden_size)
    assert out.dtype == jnp.bfloat16

    ref = interval_embedding_ref(x, w1, b1, emb)
    # bf16 MXU operands + bf16 output storage bound the error at ~1e-2 absolute for
    # unit-scale embeddings; a structural bug would produce O(1) errors, so this check
    # still discriminates sharply. The softmax itself is exact f32 (no approx reciprocal).
    assert jnp.allclose(out.astype(jnp.float32), ref, atol=3e-2, rtol=3e-2), \
        "kernel mismatch vs reference"

    print("KERNEL_OK")
</pallas_src>

<mosaic_0001>
module attributes {stable_mosaic.version = 11 : i64} {
  func.func @_interval_embedding_kernel(%arg0: i32, %arg1: memref<1024x1xf32, #tpu.memory_space<vmem>>, %arg2: memref<1x16xf32, #tpu.memory_space<vmem>>, %arg3: memref<1x16xf32, #tpu.memory_space<vmem>>, %arg4: memref<16x128xf32, #tpu.memory_space<vmem>>, %arg5: memref<1024x128xbf16, #tpu.memory_space<vmem>>) attributes {dimension_semantics = [#tpu.dimension_semantics<parallel>], iteration_bounds = array<i64: 2>, scalar_prefetch = 0 : i64, scratch_operands = 0 : i64, tpu.core_type = #tpu.core_type<tc>, window_params = [{transform_indices = @transform_0, window_bounds = array<i64: 1024, 1>}, {pipeline_mode = #tpu.pipeline_mode<synchronous>, transform_indices = @transform_1, window_bounds = array<i64: 1, 16>}, {pipeline_mode = #tpu.pipeline_mode<synchronous>, transform_indices = @transform_2, window_bounds = array<i64: 1, 16>}, {pipeline_mode = #tpu.pipeline_mode<synchronous>, transform_indices = @transform_3, window_bounds = array<i64: 16, 128>}, {transform_indices = @transform_4, window_bounds = array<i64: 1024, 128>}]} {
    %c0 = arith.constant 0 : index
    %c0_0 = arith.constant 0 : index
    %0 = vector.load %arg1[%c0, %c0_0] : memref<1024x1xf32, #tpu.memory_space<vmem>>, vector<1024x1xf32>
    %c0_1 = arith.constant 0 : index
    %c0_2 = arith.constant 0 : index
    %1 = vector.load %arg2[%c0_1, %c0_2] : memref<1x16xf32, #tpu.memory_space<vmem>>, vector<1x16xf32>
    %c0_3 = arith.constant 0 : index
    %c0_4 = arith.constant 0 : index
    %2 = vector.load %arg3[%c0_3, %c0_4] : memref<1x16xf32, #tpu.memory_space<vmem>>, vector<1x16xf32>
    %3 = vector.broadcast %0 : vector<1024x1xf32> to vector<1024x16xf32>
    %4 = vector.broadcast %1 : vector<1x16xf32> to vector<1024x16xf32>
    %5 = arith.mulf %3, %4 : vector<1024x16xf32>
    %6 = vector.broadcast %2 : vector<1x16xf32> to vector<1024x16xf32>
    %7 = arith.addf %5, %6 : vector<1024x16xf32>
    %cst = arith.constant dense<0xFF800000> : vector<1024xf32>
    %8 = vector.multi_reduction <maximumf>, %7, %cst [1] : vector<1024x16xf32> to vector<1024xf32>
    %9 = vector.shape_cast %8 : vector<1024xf32> to vector<1024x1xf32>
    %10 = vector.broadcast %9 : vector<1024x1xf32> to vector<1024x16xf32>
    %11 = arith.subf %7, %10 : vector<1024x16xf32>
    %12 = math.exp %11 : vector<1024x16xf32>
    %cst_5 = arith.constant dense<0.000000e+00> : vector<1024xf32>
    %13 = vector.multi_reduction <add>, %12, %cst_5 [1] : vector<1024x16xf32> to vector<1024xf32>
    %14 = vector.shape_cast %13 : vector<1024xf32> to vector<1024x1xf32>
    %15 = vector.broadcast %14 : vector<1024x1xf32> to vector<1024x16xf32>
    %16 = arith.divf %12, %15 : vector<1024x16xf32>
    %17 = arith.truncf %16 : vector<1024x16xf32> to vector<1024x16xbf16>
    %c0_6 = arith.constant 0 : index
    %c0_7 = arith.constant 0 : index
    %18 = vector.load %arg4[%c0_6, %c0_7] : memref<16x128xf32, #tpu.memory_space<vmem>>, vector<16x128xf32>
    %19 = arith.truncf %18 : vector<16x128xf32> to vector<16x128xbf16>
    %cst_8 = arith.constant dense<0.000000e+00> : vector<1024x128xf32>
    %20 = tpu.matmul %17, %19, %cst_8 {dimension_numbers = #tpu.dot_dimension_numbers<[1], [0], [0], [1], [0, 0, 1, 1], [], []>} : vector<1024x16xbf16>, vector<16x128xbf16>, vector<1024x128xf32> -> vector<1024x128xf32>
    %21 = arith.truncf %20 : vector<1024x128xf32> to vector<1024x128xbf16>
    %c0_9 = arith.constant 0 : index
    %c0_10 = arith.constant 0 : index
    %22 = vector.load %arg5[%c0_9, %c0_10] : memref<1024x128xbf16, #tpu.memory_space<vmem>>, vector<1024x128xbf16>
    tpu.vector_store %arg5[%c0_9, %c0_10], %21 {strides = array<i32>} : memref<1024x128xbf16, #tpu.memory_space<vmem>>, vector<1024x128xbf16>,
    return
  }
  func.func @transform_0(%arg0: i32) -> (i32, i32) {
    %c0_i32 = arith.constant 0 : i32
    %c0_i32_0 = arith.constant 0 : i32
    return %arg0, %c0_i32 : i32, i32
  }
  func.func @transform_1(%arg0: i32) -> (i32, i32) {
    %c0_i32 = arith.constant 0 : i32
    %c0_i32_0 = arith.constant 0 : i32
    %c0_i32_1 = arith.constant 0 : i32
    return %c0_i32, %c0_i32_0 : i32, i32
  }
  func.func @transform_2(%arg0: i32) -> (i32, i32) {
    %c0_i32 = arith.constant 0 : i32
    %c0_i32_0 = arith.constant 0 : i32
    %c0_i32_1 = arith.constant 0 : i32
    return %c0_i32, %c0_i32_0 : i32, i32
  }
  func.func @transform_3(%arg0: i32) -> (i32, i32) {
    %c0_i32 = arith.constant 0 : i32
    %c0_i32_0 = arith.constant 0 : i32
    %c0_i32_1 = arith.constant 0 : i32
    return %c0_i32, %c0_i32_0 : i32, i32
  }
  func.func @transform_4(%arg0: i32) -> (i32, i32) {
    %c0_i32 = arith.constant 0 : i32
    %c0_i32_0 = arith.constant 0 : i32
    return %arg0, %c0_i32 : i32, i32
  }
}

</mosaic_0001>

<bundles_post_ra>
// kernel: interval_embedding.1
= control target key start
LH: loop header
LB: loop body
LE: loop exit
PB: predicated region body
PF: predicated region fallthrough
CT: control target
= control target key end

     0   :  { %9 = vsyncpa [#allocation3], 0  ;;  %s8412_s0 = inlined_call_operand.vmem [shape: f32[2048,1], index: 0, kind: input, shape index: {}]   ;;  %s8413_s1 = inlined_call_operand.vmem [shape: f32[1,16], index: 1, kind: input, shape index: {}]   ;;  %s8414_s2 = inlined_call_operand.vmem [shape: f32[1,16], index: 2, kind: input, shape index: {}]   ;;  %s8415_s3 = inlined_call_operand.vmem [shape: f32[16,128], index: 3, kind: input, shape index: {}]   ;;  %s8416_s4 = inlined_call_operand.hbm [shape: bf16[2048,128], index: 4, kind: output, shape index: {}]  }
   0x1   :  { %11 = vsyncpa [#allocation3 + $0x1], 0  ;;  %s5733_s15 = smov 0   ;;  %s5735_s16 = smov 0  }
   0x2   :  { %s5737_s17 = smov 0   ;;  %s5739_s18 = smov 0  }
   0x3 LB: > { %s5754_s19 = sadd.s32 4294967295, %s5702_s18   ;;  %s4167_s20 = sadd.s32 4294967294, %s5702_s18   ;;  %s5702_s18 = sphi %s5739_s18, %s9049_s18   ;;  %s5698_s17 = sphi %s5737_s17, %s9048_s17   ;;  %s5694_s16 = sphi %s5735_s16, %s9047_s16   ;;  %s5690_s15 = sphi %s5733_s15, %s9046_s15  }
   0x4   : > { %s5758_s21 = sadd.s32 1, %s5702_s18   ;;  %s113_s22 = sadd.s32 1, %s5698_s17 }
   0x5   : > { %s110_s23 = ssub.s32 %s5702_s18, %s5758_s21  ;;  %p123_p0 = scmp.ne.s32.totalorder %s5698_s17, %s5694_s16 }
   0x6   : > { %p111_p1 = scmp.eq.s32.totalorder %s110_s23, 0  ;;  %p124_p2 = scmp.eq.s32.totalorder %s5754_s19, 1 }
   0x7   : > { %p129_p3 = scmp.ne.s32.totalorder %s5694_s16, %s5690_s15  ;;  %p130_p4 = scmp.eq.s32.totalorder %s4167_s20, 1 }
   0x8   : > { %s5769_s24 = scalar_select %p111_p1, %s5698_s17, %s113_s22  }
   0x9   : > { %p5771_p5 = por %p124_p2, %p123_p0  ;;  %p5775_p6 = por %p130_p4, %p129_p3 }
   0xa   : > { %p4170_p7 = scmp.ge.s32.totalorder %s5702_s18, 1  ;;  %p166_p8 = scmp.lt.s32.totalorder %s5702_s18, 3 }
   0xc   : > { %p167_p9 = pnand %p4170_p7, %p166_p8 }
   0xe   : > { %170 = sbr.rel (%p167_p9) target bundleno = 1212 (0x4bc), region = 36 }
  0x15   : > { %s4172_s27 = sshll.u32 %s5754_s19, 7  ;;  %v5704_v0 = vmov 0   ;;  %vm1238_vm0 = vcmask 130048   ;;  %s4501_s30 = sshll.u32 %s5754_s19, 13 }
  0x16   : > { %5125 = vset.pattern.permute.xlu1 %v5704_v0  ;;  %5124 = vset.pattern.permute.xlu0 %v5704_v0  ;;  %p193_p10 = scmp.lt.s32.totalorder %s4172_s27, 255  ;;  %s8363_s8 = scalar_lea.hbm %s8416_s4, %s4501_s30 }
  0x17   : > { %s5705_s10 = smov [#allocation2]  }
  0x18   : > { %s9051_s27 = smov (!%p193_p10, %s4172_s27), 255  ;;  %s5644_s11 = sshll.u32 %s5705_s10, 4  ;;  %s5645_s11 = int_to_ptr.vmem [resolvable:$false] %s5644_s11 }
  0x19   : > { %s4173_s28 = sshll.u32 %s9051_s27, 3  ;;  %s189_s27 = sand.u32 1, %s5694_s16  }
  0x1a   : > { %s5785_s5 = scalar_lea.vmem %s8412_s0, %s4173_s28  ;;  %s4171_s28 = sshll.u32 %s189_s27, 9 }
  0x1b   : > { %v202_v1 = vld [vmem:[%s5785_s5 + $0x10] sm:$0xff]  ;;  %v200_v2 = vld [vmem:[%s5785_s5] sm:$0xff]  ;;  %v203_v3 = vld [vmem:[%s5785_s5 + $0x18] sm:$0xff]  ;;  %s8227_s29 = scalar_lea.vmem [#allocation2], %s4171_s28  ;;  %s8371_s19 = scalar_lea.sflag [#allocation3], %s189_s27 }
  0x1c   : > { %342 = vperm.xlu1 %5125, %v202_v1   ;;  %332 = vperm.xlu0 %5124, %v200_v2   ;;  %v201_v4 = vld [vmem:[%s5785_s5 + $0x8] sm:$0xff]  ;;  %v204_v6 = vld [vmem:[%s5785_s5 + $0x20] sm:$0xff]  ;;  %v207_v7 = vld [vmem:[%s5785_s5 + $0x38] sm:$0xff]  ;;  %s5646_s12 = scalar_lea.vmem %s5645_s11, 16384 }
  0x1d   : > { %v205_v5 = vld [vmem:[%s5785_s5 + $0x28] sm:$0xff]  ;;  %v206_v8 = vld [vmem:[%s5785_s5 + $0x30] sm:$0xff]  ;;  %v208_v10 = vld [vmem:[%s5785_s5 + $0x40] sm:$0xff] }
  0x1e   : > { %v209_v9 = vld [vmem:[%s5785_s5 + $0x48] sm:$0xff]  ;;  %v211_v11 = vld [vmem:[%s5785_s5 + $0x58] sm:$0xff]  ;;  %v210_v12 = vld [vmem:[%s5785_s5 + $0x50] sm:$0xff] }
  0x1f   : > { %v213_v13 = vld [vmem:[%s5785_s5 + $0x68] sm:$0xff]  ;;  %v212_v14 = vld [vmem:[%s5785_s5 + $0x60] sm:$0xff]  ;;  %v215_v15 = vld [vmem:[%s5785_s5 + $0x78] sm:$0xff] }
  0x20   : > { %347 = vperm.xlu1 %5125, %v203_v3   ;;  %337 = vperm.xlu0 %5124, %v201_v4   ;;  %v214_v16 = vld [vmem:[%s5785_s5 + $0x70] sm:$0xff]  ;;  %v217_v17 = vld [vmem:[%s5785_s5 + $0x88] sm:$0xff]  ;;  %v216_v18 = vld [vmem:[%s5785_s5 + $0x80] sm:$0xff] }
  0x21   : > { %v219_v19 = vld [vmem:[%s5785_s5 + $0x98] sm:$0xff]  ;;  %v218_v20 = vld [vmem:[%s5785_s5 + $0x90] sm:$0xff]  ;;  %v221_v21 = vld [vmem:[%s5785_s5 + $0xa8] sm:$0xff] }
  0x22   : > { %v220_v22 = vld [vmem:[%s5785_s5 + $0xa0] sm:$0xff]  ;;  %v223_v23 = vld [vmem:[%s5785_s5 + $0xb8] sm:$0xff]  ;;  %v222_v24 = vld [vmem:[%s5785_s5 + $0xb0] sm:$0xff] }
  0x23   : > { %v225_v25 = vld [vmem:[%s5785_s5 + $0xc8] sm:$0xff]  ;;  %v224_v26 = vld [vmem:[%s5785_s5 + $0xc0] sm:$0xff]  ;;  %v227_v27 = vld [vmem:[%s5785_s5 + $0xd8] sm:$0xff] }
  0x24   : > { %357 = vperm.xlu1 %5125, %v205_v5   ;;  %352 = vperm.xlu0 %5124, %v204_v6   ;;  %v226_v28 = vld [vmem:[%s5785_s5 + $0xd0] sm:$0xff]  ;;  %v229_v29 = vld [vmem:[%s5785_s5 + $0xe8] sm:$0xff]  ;;  %v228_v30 = vld [vmem:[%s5785_s5 + $0xe0] sm:$0xff] }
  0x25   : > { %v231_v31 = vld [vmem:[%s5785_s5 + $0xf8] sm:$0xff]  ;;  %v230_v32 = vld [vmem:[%s5785_s5 + $0xf0] sm:$0xff]  ;;  %v233_v33 = vld [vmem:[%s5785_s5 + $0x108] sm:$0xff] }
  0x26   : > { %v232_v34 = vld [vmem:[%s5785_s5 + $0x100] sm:$0xff]  ;;  %v235_v35 = vld [vmem:[%s5785_s5 + $0x118] sm:$0xff]  ;;  %v234_v36 = vld [vmem:[%s5785_s5 + $0x110] sm:$0xff] }
  0x27   : > { %v237_v37 = vld [vmem:[%s5785_s5 + $0x128] sm:$0xff]  ;;  %v236_v38 = vld [vmem:[%s5785_s5 + $0x120] sm:$0xff]  ;;  %v239_v39 = vld [vmem:[%s5785_s5 + $0x138] sm:$0xff] }
  0x28   : > { %367 = vperm.xlu1 %5125, %v207_v7   ;;  %362 = vperm.xlu0 %5124, %v206_v8   ;;  %v238_v40 = vld [vmem:[%s5785_s5 + $0x130] sm:$0xff]  ;;  %v241_v41 = vld [vmem:[%s5785_s5 + $0x148] sm:$0xff]  ;;  %v240_v42 = vld [vmem:[%s5785_s5 + $0x140] sm:$0xff] }
  0x29   : > { %v243_v43 = vld [vmem:[%s5785_s5 + $0x158] sm:$0xff]  ;;  %v242_v44 = vld [vmem:[%s5785_s5 + $0x150] sm:$0xff]  ;;  %v245_v45 = vld [vmem:[%s5785_s5 + $0x168] sm:$0xff] }
  0x2a   : > { %v244_v46 = vld [vmem:[%s5785_s5 + $0x160] sm:$0xff]  ;;  %v247_v47 = vld [vmem:[%s5785_s5 + $0x178] sm:$0xff]  ;;  %v246_v48 = vld [vmem:[%s5785_s5 + $0x170] sm:$0xff] }
  0x2b   : > { %v249_v49 = vld [vmem:[%s5785_s5 + $0x188] sm:$0xff]  ;;  %v248_v50 = vld [vmem:[%s5785_s5 + $0x180] sm:$0xff]  ;;  %v251_v51 = vld [vmem:[%s5785_s5 + $0x198] sm:$0xff] }
  0x2c   : > { %377 = vperm.xlu1 %5125, %v209_v9   ;;  %372 = vperm.xlu0 %5124, %v208_v10   ;;  %v250_v52 = vld [vmem:[%s5785_s5 + $0x190] sm:$0xff]  ;;  %v253_v53 = vld [vmem:[%s5785_s5 + $0x1a8] sm:$0xff]  ;;  %v252_v54 = vld [vmem:[%s5785_s5 + $0x1a0] sm:$0xff] }
  0x2d   : > { %v255_v55 = vld [vmem:[%s5785_s5 + $0x1b8] sm:$0xff]  ;;  %v254_v56 = vld [vmem:[%s5785_s5 + $0x1b0] sm:$0xff]  ;;  %v257_v57 = vld [vmem:[%s5785_s5 + $0x1c8] sm:$0xff] }
  0x2e   : > { %v256_v58 = vld [vmem:[%s5785_s5 + $0x1c0] sm:$0xff]  ;;  %v259_v59 = vld [vmem:[%s5785_s5 + $0x1d8] sm:$0xff]  ;;  %v258_v60 = vld [vmem:[%s5785_s5 + $0x1d0] sm:$0xff] }
  0x2f   : > { %v261_v61 = vld [vmem:[%s5785_s5 + $0x1e8] sm:$0xff]  ;;  %v260_v62 = vld [vmem:[%s5785_s5 + $0x1e0] sm:$0xff]  ;;  %v263_v63 = vld [vmem:[%s5785_s5 + $0x1f8] sm:$0xff] }
  0x30   : > { %387 = vperm.xlu1 %5125, %v211_v11   ;;  %382 = vperm.xlu0 %5124, %v210_v12   ;;  %v262_v0 = vld [vmem:[%s5785_s5 + $0x1f0] sm:$0xff]  ;;  %v265_v1 = vld [vmem:[%s5785_s5 + $0x208] sm:$0xff]  ;;  %v264_v2 = vld [vmem:[%s5785_s5 + $0x200] sm:$0xff] }
  0x31   : > { %v267_v5 = vld [vmem:[%s5785_s5 + $0x218] sm:$0xff]  ;;  %v266_v6 = vld [vmem:[%s5785_s5 + $0x210] sm:$0xff]  ;;  %v269_v9 = vld [vmem:[%s5785_s5 + $0x228] sm:$0xff] }
  0x32   : > { %v268_v10 = vld [vmem:[%s5785_s5 + $0x220] sm:$0xff] }
  0x34   : > { %397 = vperm.xlu1 %5125, %v213_v13   ;;  %392 = vperm.xlu0 %5124, %v212_v14   ;;  %v271_v13 = vld [vmem:[%s5785_s5 + $0x238] sm:$0xff]  ;;  %v270_v14 = vld [vmem:[%s5785_s5 + $0x230] sm:$0xff] }
  0x38   : > { %407 = vperm.xlu1 %5125, %v215_v15   ;;  %402 = vperm.xlu0 %5124, %v214_v16  }
  0x3c   : > { %417 = vperm.xlu1 %5125, %v217_v17   ;;  %412 = vperm.xlu0 %5124, %v216_v18   ;;  %v273_v17 = vld [vmem:[%s5785_s5 + $0x248] sm:$0xff]  ;;  %v272_v18 = vld [vmem:[%s5785_s5 + $0x240] sm:$0xff] }
  0x40   : > { %427 = vperm.xlu1 %5125, %v219_v19   ;;  %422 = vperm.xlu0 %5124, %v218_v20  }
  0x44   : > { %437 = vperm.xlu1 %5125, %v221_v21   ;;  %432 = vperm.xlu0 %5124, %v220_v22   ;;  %v275_v21 = vld [vmem:[%s5785_s5 + $0x258] sm:$0xff]  ;;  %v274_v22 = vld [vmem:[%s5785_s5 + $0x250] sm:$0xff] }
  0x48   : > { %447 = vperm.xlu1 %5125, %v223_v23   ;;  %442 = vperm.xlu0 %5124, %v222_v24  }
  0x4c   : > { %457 = vperm.xlu1 %5125, %v225_v25   ;;  %452 = vperm.xlu0 %5124, %v224_v26   ;;  %v277_v25 = vld [vmem:[%s5785_s5 + $0x268] sm:$0xff]  ;;  %v276_v26 = vld [vmem:[%s5785_s5 + $0x260] sm:$0xff] }
  0x50   : > { %467 = vperm.xlu1 %5125, %v227_v27   ;;  %462 = vperm.xlu0 %5124, %v226_v28  }
  0x54   : > { %477 = vperm.xlu1 %5125, %v229_v29   ;;  %472 = vperm.xlu0 %5124, %v228_v30   ;;  %v279_v29 = vld [vmem:[%s5785_s5 + $0x278] sm:$0xff]  ;;  %v278_v30 = vld [vmem:[%s5785_s5 + $0x270] sm:$0xff] }
  0x58   : > { %487 = vperm.xlu1 %5125, %v231_v31   ;;  %482 = vperm.xlu0 %5124, %v230_v32  }
  0x5c   : > { %497 = vperm.xlu1 %5125, %v233_v33   ;;  %492 = vperm.xlu0 %5124, %v232_v34   ;;  %v281_v33 = vld [vmem:[%s5785_s5 + $0x288] sm:$0xff]  ;;  %v280_v34 = vld [vmem:[%s5785_s5 + $0x280] sm:$0xff] }
  0x60   : > { %507 = vperm.xlu1 %5125, %v235_v35   ;;  %502 = vperm.xlu0 %5124, %v234_v36  }
  0x64   : > { %517 = vperm.xlu1 %5125, %v237_v37   ;;  %512 = vperm.xlu0 %5124, %v236_v38   ;;  %v283_v37 = vld [vmem:[%s5785_s5 + $0x298] sm:$0xff]  ;;  %v282_v38 = vld [vmem:[%s5785_s5 + $0x290] sm:$0xff] }
  0x68   : > { %527 = vperm.xlu1 %5125, %v239_v39   ;;  %522 = vperm.xlu0 %5124, %v238_v40  }
  0x6c   : > { %537 = vperm.xlu1 %5125, %v241_v41   ;;  %532 = vperm.xlu0 %5124, %v240_v42   ;;  %v285_v41 = vld [vmem:[%s5785_s5 + $0x2a8] sm:$0xff]  ;;  %v284_v42 = vld [vmem:[%s5785_s5 + $0x2a0] sm:$0xff] }
  0x70   : > { %547 = vperm.xlu1 %5125, %v243_v43   ;;  %542 = vperm.xlu0 %5124, %v242_v44  }
  0x74   : > { %557 = vperm.xlu1 %5125, %v245_v45   ;;  %552 = vperm.xlu0 %5124, %v244_v46   ;;  %v287_v45 = vld [vmem:[%s5785_s5 + $0x2b8] sm:$0xff]  ;;  %v286_v46 = vld [vmem:[%s5785_s5 + $0x2b0] sm:$0xff] }
  0x78   : > { %567 = vperm.xlu1 %5125, %v247_v47   ;;  %562 = vperm.xlu0 %5124, %v246_v48  }
  0x7c   : > { %577 = vperm.xlu1 %5125, %v249_v49   ;;  %572 = vperm.xlu0 %5124, %v248_v50   ;;  %v289_v49 = vld [vmem:[%s5785_s5 + $0x2c8] sm:$0xff]  ;;  %v288_v50 = vld [vmem:[%s5785_s5 + $0x2c0] sm:$0xff] }
  0x80   : > { %587 = vperm.xlu1 %5125, %v251_v51   ;;  %582 = vperm.xlu0 %5124, %v250_v52  }
  0x84   : > { %597 = vperm.xlu1 %5125, %v253_v53   ;;  %592 = vperm.xlu0 %5124, %v252_v54   ;;  %v291_v53 = vld [vmem:[%s5785_s5 + $0x2d8] sm:$0xff]  ;;  %v290_v54 = vld [vmem:[%s5785_s5 + $0x2d0] sm:$0xff] }
  0x88   : > { %607 = vperm.xlu1 %5125, %v255_v55   ;;  %602 = vperm.xlu0 %5124, %v254_v56  }
  0x8c   : > { %617 = vperm.xlu1 %5125, %v257_v57   ;;  %612 = vperm.xlu0 %5124, %v256_v58   ;;  %v293_v57 = vld [vmem:[%s5785_s5 + $0x2e8] sm:$0xff]  ;;  %v292_v58 = vld [vmem:[%s5785_s5 + $0x2e0] sm:$0xff] }
  0x90   : > { %627 = vperm.xlu1 %5125, %v259_v59   ;;  %622 = vperm.xlu0 %5124, %v258_v60  }
  0x94   : > { %637 = vperm.xlu1 %5125, %v261_v61   ;;  %632 = vperm.xlu0 %5124, %v260_v62   ;;  %v295_v61 = vld [vmem:[%s5785_s5 + $0x2f8] sm:$0xff]  ;;  %v294_v62 = vld [vmem:[%s5785_s5 + $0x2f0] sm:$0xff] }
  0x98   : > { %647 = vperm.xlu1 %5125, %v263_v63   ;;  %642 = vperm.xlu0 %5124, %v262_v0  }
  0x9b   : > { %v5853_v3 = vpop.permute.xlu1 %342  ;;  %v5855_v4 = vpop.permute.xlu0 %332 }
  0x9c   : > { %657 = vperm.xlu1 %5125, %v265_v1   ;;  %652 = vperm.xlu0 %5124, %v264_v2   ;;  %v297_v1 = vld [vmem:[%s5785_s5 + $0x308] sm:$0xff]  ;;  %v296_v2 = vld [vmem:[%s5785_s5 + $0x300] sm:$0xff] }
  0x9f   : > { %v5859_v7 = vpop.permute.xlu1 %347  ;;  %v5861_v8 = vpop.permute.xlu0 %337 }
  0xa0   : > { %667 = vperm.xlu1 %5125, %v267_v5   ;;  %662 = vperm.xlu0 %5124, %v266_v6  }
  0xa3   : > { %v5865_v11 = vpop.permute.xlu1 %357  ;;  %v5867_v12 = vpop.permute.xlu0 %352 }
  0xa4   : > { %677 = vperm.xlu1 %5125, %v269_v9   ;;  %672 = vperm.xlu0 %5124, %v268_v10   ;;  %v299_v9 = vld [vmem:[%s5785_s5 + $0x318] sm:$0xff]  ;;  %v298_v10 = vld [vmem:[%s5785_s5 + $0x310] sm:$0xff] }
  0xa7   : > { %v5871_v15 = vpop.permute.xlu1 %367  ;;  %v5873_v16 = vpop.permute.xlu0 %362 }
  0xa8   : > { %687 = vperm.xlu1 %5125, %v271_v13   ;;  %682 = vperm.xlu0 %5124, %v270_v14  }
  0xab   : > { %v5877_v19 = vpop.permute.xlu1 %377  ;;  %v5879_v20 = vpop.permute.xlu0 %372 }
  0xac   : > { %697 = vperm.xlu1 %5125, %v273_v17   ;;  %692 = vperm.xlu0 %5124, %v272_v18   ;;  %v301_v17 = vld [vmem:[%s5785_s5 + $0x328] sm:$0xff]  ;;  %v300_v18 = vld [vmem:[%s5785_s5 + $0x320] sm:$0xff] }
  0xaf   : > { %v5883_v23 = vpop.permute.xlu1 %387  ;;  %v5885_v24 = vpop.permute.xlu0 %382 }
  0xb0   : > { %707 = vperm.xlu1 %5125, %v275_v21   ;;  %702 = vperm.xlu0 %5124, %v274_v22  }
  0xb3   : > { %v5889_v27 = vpop.permute.xlu1 %397  ;;  %v5891_v28 = vpop.permute.xlu0 %392 }
  0xb4   : > { %717 = vperm.xlu1 %5125, %v277_v25   ;;  %712 = vperm.xlu0 %5124, %v276_v26   ;;  %v303_v25 = vld [vmem:[%s5785_s5 + $0x338] sm:$0xff]  ;;  %v302_v26 = vld [vmem:[%s5785_s5 + $0x330] sm:$0xff] }
  0xb7   : > { %v5895_v31 = vpop.permute.xlu1 %407  ;;  %v5897_v32 = vpop.permute.xlu0 %402 }
  0xb8   : > { %727 = vperm.xlu1 %5125, %v279_v29   ;;  %722 = vperm.xlu0 %5124, %v278_v30  }
  0xbb   : > { %v5901_v35 = vpop.permute.xlu1 %417  ;;  %v5903_v36 = vpop.permute.xlu0 %412 }
  0xbc   : > { %737 = vperm.xlu1 %5125, %v281_v33   ;;  %732 = vperm.xlu0 %5124, %v280_v34   ;;  %v305_v33 = vld [vmem:[%s5785_s5 + $0x348] sm:$0xff]  ;;  %v304_v34 = vld [vmem:[%s5785_s5 + $0x340] sm:$0xff] }
  0xbf   : > { %v5907_v39 = vpop.permute.xlu1 %427  ;;  %v5909_v40 = vpop.permute.xlu0 %422 }
  0xc0   : > { %747 = vperm.xlu1 %5125, %v283_v37   ;;  %742 = vperm.xlu0 %5124, %v282_v38  }
  0xc3   : > { %v5913_v43 = vpop.permute.xlu1 %437  ;;  %v5915_v44 = vpop.permute.xlu0 %432 }
  0xc4   : > { %757 = vperm.xlu1 %5125, %v285_v41   ;;  %752 = vperm.xlu0 %5124, %v284_v42   ;;  %v307_v41 = vld [vmem:[%s5785_s5 + $0x358] sm:$0xff]  ;;  %v306_v42 = vld [vmem:[%s5785_s5 + $0x350] sm:$0xff] }
  0xc7   : > { %v5919_v47 = vpop.permute.xlu1 %447  ;;  %v5921_v48 = vpop.permute.xlu0 %442 }
  0xc8   : > { %767 = vperm.xlu1 %5125, %v287_v45   ;;  %762 = vperm.xlu0 %5124, %v286_v46  }
  0xcb   : > { %v5925_v51 = vpop.permute.xlu1 %457  ;;  %v5927_v52 = vpop.permute.xlu0 %452 }
  0xcc   : > { %777 = vperm.xlu1 %5125, %v289_v49   ;;  %772 = vperm.xlu0 %5124, %v288_v50   ;;  %v309_v49 = vld [vmem:[%s5785_s5 + $0x368] sm:$0xff]  ;;  %v308_v50 = vld [vmem:[%s5785_s5 + $0x360] sm:$0xff] }
  0xcf   : > { %v5931_v55 = vpop.permute.xlu1 %467  ;;  %v5933_v56 = vpop.permute.xlu0 %462 }
  0xd0   : > { %787 = vperm.xlu1 %5125, %v291_v53   ;;  %782 = vperm.xlu0 %5124, %v290_v54  }
  0xd3   : > { %v5937_v59 = vpop.permute.xlu1 %477  ;;  %v5939_v60 = vpop.permute.xlu0 %472 }
  0xd4   : > { %797 = vperm.xlu1 %5125, %v293_v57   ;;  %792 = vperm.xlu0 %5124, %v292_v58   ;;  %v311_v57 = vld [vmem:[%s5785_s5 + $0x378] sm:$0xff]  ;;  %v310_v58 = vld [vmem:[%s5785_s5 + $0x370] sm:$0xff] }
  0xd7   : > { %v5943_v63 = vpop.permute.xlu1 %487  ;;  %v5945_v0 = vpop.permute.xlu0 %482 }
  0xd8   : > { %807 = vperm.xlu1 %5125, %v295_v61   ;;  %802 = vperm.xlu0 %5124, %v294_v62  }
  0xdb   : > { %v5949_v5 = vpop.permute.xlu1 %497  ;;  %v5951_v6 = vpop.permute.xlu0 %492 }
  0xdc   : > { %817 = vperm.xlu1 %5125, %v297_v1   ;;  %812 = vperm.xlu0 %5124, %v296_v2   ;;  %v313_v1 = vld [vmem:[%s5785_s5 + $0x388] sm:$0xff]  ;;  %v312_v2 = vld [vmem:[%s5785_s5 + $0x380] sm:$0xff] }
  0xdf   : > { %v5955_v13 = vpop.permute.xlu1 %507  ;;  %v5957_v14 = vpop.permute.xlu0 %502 }
  0xe0   : > { %827 = vperm.xlu1 %5125, %v299_v9   ;;  %822 = vperm.xlu0 %5124, %v298_v10  }
  0xe3   : > { %v5961_v21 = vpop.permute.xlu1 %517  ;;  %v5963_v22 = vpop.permute.xlu0 %512 }
  0xe4   : > { %837 = vperm.xlu1 %5125, %v301_v17   ;;  %832 = vperm.xlu0 %5124, %v300_v18   ;;  %v315_v17 = vld [vmem:[%s5785_s5 + $0x398] sm:$0xff]  ;;  %v314_v18 = vld [vmem:[%s5785_s5 + $0x390] sm:$0xff] }
  0xe7   : > { %v5967_v29 = vpop.permute.xlu1 %527  ;;  %v5969_v30 = vpop.permute.xlu0 %522 }
  0xe8   : > { %8608 = vst [vmem:[#allocation5_spill] sm:$0xff] %v5967_v29  ;;  %847 = vperm.xlu1 %5125, %v303_v25   ;;  %842 = vperm.xlu0 %5124, %v302_v26  }
  0xeb   : > { %v5973_v37 = vpop.permute.xlu1 %537  ;;  %v5975_v38 = vpop.permute.xlu0 %532 }
  0xec   : > { %8609 = vst [vmem:[#allocation6_spill] sm:$0xff] %v5973_v37  ;;  %8610 = vst [vmem:[#allocation7_spill] sm:$0xff] %v5975_v38  ;;  %857 = vperm.xlu1 %5125, %v305_v33   ;;  %852 = vperm.xlu0 %5124, %v304_v34   ;;  %v317_v33 = vld [vmem:[%s5785_s5 + $0x3a8] sm:$0xff]  ;;  %v316_v34 = vld [vmem:[%s5785_s5 + $0x3a0] sm:$0xff] }
  0xef   : > { %v5979_v45 = vpop.permute.xlu1 %547  ;;  %v5981_v46 = vpop.permute.xlu0 %542 }
  0xf0   : > { %8611 = vst [vmem:[#allocation8_spill] sm:$0xff] %v5979_v45  ;;  %8612 = vst [vmem:[#allocation9_spill] sm:$0xff] %v5981_v46  ;;  %867 = vperm.xlu1 %5125, %v307_v41   ;;  %862 = vperm.xlu0 %5124, %v306_v42  }
  0xf3   : > { %v5985_v53 = vpop.permute.xlu1 %557  ;;  %v5987_v54 = vpop.permute.xlu0 %552 }
  0xf4   : > { %8613 = vst [vmem:[#allocation10_spill] sm:$0xff] %v5985_v53  ;;  %8614 = vst [vmem:[#allocation11_spill] sm:$0xff] %v5987_v54  ;;  %877 = vperm.xlu1 %5125, %v309_v49   ;;  %872 = vperm.xlu0 %5124, %v308_v50   ;;  %v319_v49 = vld [vmem:[%s5785_s5 + $0x3b8] sm:$0xff]  ;;  %v318_v50 = vld [vmem:[%s5785_s5 + $0x3b0] sm:$0xff] }
  0xf7   : > { %v5991_v61 = vpop.permute.xlu1 %567  ;;  %v5993_v62 = vpop.permute.xlu0 %562 }
  0xf8   : > { %8615 = vst [vmem:[#allocation12_spill] sm:$0xff] %v5991_v61  ;;  %8616 = vst [vmem:[#allocation13_spill] sm:$0xff] %v5993_v62  ;;  %887 = vperm.xlu1 %5125, %v311_v57   ;;  %882 = vperm.xlu0 %5124, %v310_v58  }
  0xfb   : > { %v5997_v9 = vpop.permute.xlu1 %577  ;;  %v5999_v10 = vpop.permute.xlu0 %572 }
  0xfc   : > { %8617 = vst [vmem:[#allocation14_spill] sm:$0xff] %v5997_v9  ;;  %8618 = vst [vmem:[#allocation15_spill] sm:$0xff] %v5999_v10  ;;  %897 = vperm.xlu1 %5125, %v313_v1   ;;  %892 = vperm.xlu0 %5124, %v312_v2   ;;  %v321_v1 = vld [vmem:[%s5785_s5 + $0x3c8] sm:$0xff]  ;;  %v320_v2 = vld [vmem:[%s5785_s5 + $0x3c0] sm:$0xff] }
  0xff   : > { %v6003_v25 = vpop.permute.xlu1 %587  ;;  %v6005_v26 = vpop.permute.xlu0 %582 }
 0x100   : > { %8619 = vst [vmem:[#allocation16_spill] sm:$0xff] %v6003_v25  ;;  %8620 = vst [vmem:[#allocation17_spill] sm:$0xff] %v6005_v26  ;;  %907 = vperm.xlu1 %5125, %v315_v17   ;;  %902 = vperm.xlu0 %5124, %v314_v18  }
 0x103   : > { %v6009_v41 = vpop.permute.xlu1 %597  ;;  %v6011_v42 = vpop.permute.xlu0 %592 }
 0x104   : > { %8621 = vst [vmem:[#allocation18_spill] sm:$0xff] %v6009_v41  ;;  %8622 = vst [vmem:[#allocation19_spill] sm:$0xff] %v6011_v42  ;;  %917 = vperm.xlu1 %5125, %v317_v33   ;;  %912 = vperm.xlu0 %5124, %v316_v34   ;;  %v323_v33 = vld [vmem:[%s5785_s5 + $0x3d8] sm:$0xff]  ;;  %v322_v34 = vld [vmem:[%s5785_s5 + $0x3d0] sm:$0xff] }
 0x107   : > { %v6015_v57 = vpop.permute.xlu1 %607  ;;  %v6017_v58 = vpop.permute.xlu0 %602 }
 0x108   : > { %8623 = vst [vmem:[#allocation20_spill] sm:$0xff] %v6015_v57  ;;  %8624 = vst [vmem:[#allocation21_spill] sm:$0xff] %v6017_v58  ;;  %927 = vperm.xlu1 %5125, %v319_v49   ;;  %922 = vperm.xlu0 %5124, %v318_v50   ;;  %v325_v49 = vld [vmem:[%s5785_s5 + $0x3e8] sm:$0xff]  ;;  %v324_v50 = vld [vmem:[%s5785_s5 + $0x3e0] sm:$0xff] }
 0x10b   : > { %v6021_v17 = vpop.permute.xlu1 %617  ;;  %v6023_v18 = vpop.permute.xlu0 %612 }
 0x10c   : > { %8625 = vst [vmem:[#allocation22_spill] sm:$0xff] %v6021_v17  ;;  %8626 = vst [vmem:[#allocation23_spill] sm:$0xff] %v6023_v18  ;;  %937 = vperm.xlu1 %5125, %v321_v1   ;;  %932 = vperm.xlu0 %5124, %v320_v2   ;;  %v327_v17 = vld [vmem:[%s5785_s5 + $0x3f8] sm:$0xff]  ;;  %v326_v18 = vld [vmem:[%s5785_s5 + $0x3f0] sm:$0xff]  ;;  %s4105_s5 = sshll.u32 %s8227_s29, 4  ;;  %s8365_s5 = int_to_ptr.vmem [resolvable:$true] %s4105_s5 }
 0x10d   : > { %s5640_s9 = scalar_lea.vmem %s8365_s5, 8192  ;;  %p5647_p0 = scmp.lt.s32.totalorder %s8365_s5, %s5645_s11 }
 0x10e   : > { %p5641_p11 = scmp.ne.s32.totalorder %s8365_s5, %s5640_s9  ;;  %p5648_p1 = scmp.lt.s32.totalorder %s5646_s12, %s5640_s9 }
 0x10f   : > { %v6027_v41 = vpop.permute.xlu1 %627  ;;  %v6029_v57 = vpop.permute.xlu0 %622 }
 0x110   : > { %8627 = vst [vmem:[#allocation24_spill] sm:$0xff] %v6027_v41  ;;  %8628 = vst [vmem:[#allocation25_spill] sm:$0xff] %v6029_v57  ;;  %947 = vperm.xlu1 %5125, %v323_v33   ;;  %942 = vperm.xlu0 %5124, %v322_v34   ;;  %p5642_p12 = pnand %p5641_p11, %p5771_p5  ;;  %p5649_p2 = por %p5648_p1, %p5647_p0 }
 0x112   : > { %p5643_p13 = pneg %p5642_p12 }
 0x113   : > { %v6033_v58 = vpop.permute.xlu1 %637  ;;  %v6035_v42 = vpop.permute.xlu0 %632 }
 0x114   : > { %8629 = vst [vmem:[#allocation26_spill] sm:$0xff] %v6033_v58  ;;  %8630 = vst [vmem:[#allocation27_spill] sm:$0xff] %v6035_v42  ;;  %957 = vperm.xlu1 %5125, %v325_v49   ;;  %952 = vperm.xlu0 %5124, %v324_v50   ;;  %v6050_v49 = vld [vmem:[%s8413_s1] ss:$0 sm:$0xff]  ;;  %p5650_p3 = pnand %p5649_p2, %p5643_p13 }
 0x115   : > { %v6065_v42 = vld [vmem:[%s8414_s2] ss:$0 sm:$0xff]  ;;  %v977_v62 = vmul.f32 %v6050_v49, %v5861_v8 }
 0x117   : > { %v6039_v1 = vpop.permute.xlu1 %647  ;;  %v6041_v2 = vpop.permute.xlu0 %642  ;;  %v6090_v37 = vadd.f32 %v6065_v42, %v977_v62 }
 0x118   : > { %8631 = vst [vmem:[#allocation28_spill] sm:$0xff] %v6039_v1  ;;  %8632 = vst [vmem:[#allocation29_spill] sm:$0xff] %v6041_v2  ;;  %967 = vperm.xlu1 %5125, %v327_v17   ;;  %962 = vperm.xlu0 %5124, %v326_v18   ;;  %v976_v17 = vmul.f32 %v6050_v49, %v5855_v4 }
 0x119   : > { %8635 = vst [vmem:[#allocation32_spill] sm:$0xff] %v6090_v37  ;;  %v1242_v62 = vsel %vm1238_vm0, %v6090_v37, -inf }
 0x11a   : > { %v6069_v61 = vadd.f32 %v6065_v42, %v976_v17 }
 0x11b   : > { %v658_v41 = vpop.permute.xlu1 %657  ;;  %v653_v57 = vpop.permute.xlu0 %652 }
 0x11c   : > { %v1040_v10 = vmul.f32 %v6050_v49, %v653_v57  ;;  %8633 = vst [vmem:[#allocation30_spill] sm:$0xff] %v6069_v61  ;;  %v1041_v54 = vmul.f32 %v6050_v49, %v658_v41  ;;  %v1239_v45 = vsel %vm1238_vm0, %v6069_v61, -inf  ;;  %v978_v57 = vmul.f32 %v6050_v49, %v5853_v3 }
 0x11d   : > { %v979_v41 = vmul.f32 %v6050_v49, %v5859_v7 }
 0x11e   : > { %v6081_v46 = vadd.f32 %v6065_v42, %v1040_v10  ;;  %v6097_v10 = vadd.f32 %v6065_v42, %v1041_v54  ;;  %v6107_v29 = vadd.f32 %v6065_v42, %v978_v57 }
 0x11f   : > { %v668_v33 = vpop.permute.xlu1 %667  ;;  %v663_v34 = vpop.permute.xlu0 %662 }
 0x120   : > { %8634 = vst [vmem:[#allocation31_spill] sm:$0xff] %v6081_v46  ;;  %v1431_v61 = vsel %vm1238_vm0, %v6081_v46, -inf  ;;  %8636 = vst [vmem:[#allocation33_spill] sm:$0xff] %v6097_v10  ;;  %v1042_v38 = vmul.f32 %v6050_v49, %v663_v34  ;;  %v1043_v7 = vmul.f32 %v6050_v49, %v668_v33  ;;  %v1434_v54 = vsel %vm1238_vm0, %v6097_v10, -inf }
 0x121   : > { %v6113_v46 = vadd.f32 %v6065_v42, %v979_v41  ;;  %v1245_v37 = vsel %vm1238_vm0, %v6107_v29, -inf }
 0x122   : > { %v6122_v57 = vadd.f32 %v6065_v42, %v1042_v38 }
 0x123   : > { %v678_v25 = vpop.permute.xlu1 %677  ;;  %v673_v26 = vpop.permute.xlu0 %672  ;;  %8637 = vst [vmem:[#allocation34_spill] sm:$0xff] %v6113_v46  ;;  %v1248_v41 = vsel %vm1238_vm0, %v6113_v46, -inf }
 0x124   : > { %8638 = vst [vmem:[#allocation35_spill] sm:$0xff] %v6122_v57  ;;  %v1437_v38 = vsel %vm1238_vm0, %v6122_v57, -inf }
 0x127   : > { %v6043_v9 = vpop.permute.xlu1 %687  ;;  %v6045_v58 = vpop.permute.xlu0 %682 }
 0x12b   : > { %v6052_v50 = vpop.permute.xlu1 %697  ;;  %v6054_v1 = vpop.permute.xlu0 %692 }
 0x12f   : > { %v6058_v18 = vpop.permute.xlu1 %707  ;;  %v6060_v2 = vpop.permute.xlu0 %702 }
 0x133   : > { %v6073_v53 = vpop.permute.xlu1 %717  ;;  %v6075_v4 = vpop.permute.xlu0 %712 }
 0x137   : > { %v6085_v17 = vpop.permute.xlu1 %727  ;;  %1240 = vmax.xlane.f32.xlu0 %v1239_v45  ;;  %v6087_v8 = vpop.permute.xlu0 %722 }
 0x13b   : > { %v6100_v3 = vpop.permute.xlu1 %737  ;;  %1432 = vmax.xlane.f32.xlu0 %v1431_v61  ;;  %v6102_v45 = vpop.permute.xlu0 %732  ;;  %v980_v61 = vmul.f32 %v6050_v49, %v5867_v12  ;;  %v6131_v12 = vadd.f32 %v6065_v42, %v1043_v7 }
 0x13c   : > { %1243 = vmax.xlane.f32.xlu1 %v1242_v62  ;;  %v981_v62 = vmul.f32 %v6050_v49, %v5865_v11  ;;  %v1045_v11 = vmul.f32 %v6050_v49, %v678_v25  ;;  %v983_v25 = vmul.f32 %v6050_v49, %v5871_v15  ;;  %v1047_v15 = vmul.f32 %v6050_v49, %v6043_v9 }
 0x13d   : > { %v1440_v46 = vsel %vm1238_vm0, %v6131_v12, -inf  ;;  %v985_v9 = vmul.f32 %v6050_v49, %v5877_v19  ;;  %v1049_v19 = vmul.f32 %v6050_v49, %v6052_v50  ;;  %v987_v50 = vmul.f32 %v6050_v49, %v5883_v23 }
 0x13e   : > { %v6145_v7 = vadd.f32 %v6065_v42, %v981_v62  ;;  %v1051_v23 = vmul.f32 %v6050_v49, %v6058_v18  ;;  %v989_v18 = vmul.f32 %v6050_v49, %v5889_v27  ;;  %v1053_v27 = vmul.f32 %v6050_v49, %v6073_v53 }
 0x13f   : > { %1435 = vmax.xlane.f32.xlu0 %v1434_v54  ;;  %v6117_v34 = vpop.permute.xlu0 %742  ;;  %v6124_v33 = vpop.permute.xlu1 %747  ;;  %v1044_v54 = vmul.f32 %v6050_v49, %v673_v26  ;;  %v982_v26 = vmul.f32 %v6050_v49, %v5873_v16  ;;  %v6163_v16 = vadd.f32 %v6065_v42, %v1045_v11  ;;  %v991_v53 = vmul.f32 %v6050_v49, %v5895_v31 }
 0x140   : > { %1246 = vmax.xlane.f32.xlu1 %v1245_v37  ;;  %v6139_v37 = vadd.f32 %v6065_v42, %v980_v61  ;;  %8640 = vst [vmem:[#allocation37_spill] sm:$0xff] %v6145_v7  ;;  %v1254_v62 = vsel %vm1238_vm0, %v6145_v7, -inf  ;;  %v1055_v31 = vmul.f32 %v6050_v49, %v6085_v17  ;;  %v993_v17 = vmul.f32 %v6050_v49, %v5901_v35 }
 0x141   : > { %v6154_v61 = vadd.f32 %v6065_v42, %v1044_v54  ;;  %8641 = vst [vmem:[#allocation38_spill] sm:$0xff] %v6163_v16  ;;  %v1446_v11 = vsel %vm1238_vm0, %v6163_v16, -inf  ;;  %v1057_v35 = vmul.f32 %v6050_v49, %v6100_v3  ;;  %v995_v3 = vmul.f32 %v6050_v49, %v5907_v39 }
 0x142   : > { %8639 = vst [vmem:[#allocation36_spill] sm:$0xff] %v6139_v37  ;;  %v1251_v57 = vsel %vm1238_vm0, %v6139_v37, -inf  ;;  %v6170_v37 = vadd.f32 %v6065_v42, %v982_v26  ;;  %v1059_v39 = vmul.f32 %v6050_v49, %v6124_v33  ;;  %v997_v33 = vmul.f32 %v6050_v49, %v5913_v43 }
 0x143   : > { %1249 = vmax.xlane.f32.xlu0 %v1248_v41  ;;  %v6134_v10 = vpop.permute.xlu0 %752  ;;  %v6149_v41 = vpop.permute.xlu1 %757  ;;  %v1443_v54 = vsel %vm1238_vm0, %v6154_v61, -inf }
 0x144   : > { %1438 = vmax.xlane.f32.xlu1 %v1437_v38  ;;  %8642 = vst [vmem:[#allocation39_spill] sm:$0xff] %v6170_v37  ;;  %v1257_v26 = vsel %vm1238_vm0, %v6170_v37, -inf  ;;  %v1061_v43 = vmul.f32 %v6050_v49, %v6149_v41  ;;  %v999_v41 = vmul.f32 %v6050_v49, %v5919_v47 }
 0x147   : > { %1441 = vmax.xlane.f32.xlu0 %v1440_v46  ;;  %v6156_v38 = vpop.permute.xlu0 %762  ;;  %v1046_v46 = vmul.f32 %v6050_v49, %v6045_v58  ;;  %v6181_v58 = vadd.f32 %v6065_v42, %v983_v25  ;;  %v6195_v25 = vadd.f32 %v6065_v42, %v1047_v15 }
 0x148   : > { %1252 = vmax.xlane.f32.xlu1 %v1251_v57  ;;  %v6172_v57 = vpop.permute.xlu1 %767 }
 0x149   : > { %v1260_v16 = vsel %vm1238_vm0, %v6181_v58, -inf  ;;  %8644 = vst [vmem:[#allocation41_spill] sm:$0xff] %v6195_v25  ;;  %v1452_v15 = vsel %vm1238_vm0, %v6195_v25, -inf  ;;  %v1063_v47 = vmul.f32 %v6050_v49, %v6172_v57  ;;  %v1001_v57 = vmul.f32 %v6050_v49, %v5925_v51 }
 0x14b   : > { %1255 = vmax.xlane.f32.xlu0 %v1254_v62  ;;  %v6176_v7 = vpop.permute.xlu0 %772  ;;  %v984_v62 = vmul.f32 %v6050_v49, %v5879_v20  ;;  %v1048_v20 = vmul.f32 %v6050_v49, %v6054_v1  ;;  %v6213_v1 = vadd.f32 %v6065_v42, %v985_v9 }
 0x14c   : > { %1444 = vmax.xlane.f32.xlu1 %v1443_v54  ;;  %v6188_v54 = vadd.f32 %v6065_v42, %v1046_v46 }
 0x14d   : > { %8645 = vst [vmem:[#allocation42_spill] sm:$0xff] %v6213_v1  ;;  %v1266_v9 = vsel %vm1238_vm0, %v6213_v1, -inf }
 0x14e   : > { %8643 = vst [vmem:[#allocation40_spill] sm:$0xff] %v6188_v54  ;;  %v1449_v46 = vsel %vm1238_vm0, %v6188_v54, -inf  ;;  %v6220_v54 = vadd.f32 %v6065_v42, %v1048_v20 }
 0x14f   : > { %1447 = vmax.xlane.f32.xlu0 %v1446_v11  ;;  %v6199_v11 = vpop.permute.xlu1 %777  ;;  %v6206_v37 = vpop.permute.xlu0 %782 }
 0x150   : > { %1258 = vmax.xlane.f32.xlu1 %v1257_v26  ;;  %v6204_v26 = vadd.f32 %v6065_v42, %v984_v62  ;;  %8646 = vst [vmem:[#allocation43_spill] sm:$0xff] %v6220_v54  ;;  %v1455_v20 = vsel %vm1238_vm0, %v6220_v54, -inf  ;;  %v1065_v51 = vmul.f32 %v6050_v49, %v6199_v11  ;;  %v1003_v11 = vmul.f32 %v6050_v49, %v5931_v55 }
 0x152   : > { %v1263_v62 = vsel %vm1238_vm0, %v6204_v26, -inf }
 0x153   : > { %1261 = vmax.xlane.f32.xlu0 %v1260_v16  ;;  %v986_v16 = vmul.f32 %v6050_v49, %v5885_v24  ;;  %v6226_v25 = vpop.permute.xlu0 %792  ;;  %v6231_v24 = vadd.f32 %v6065_v42, %v1049_v19  ;;  %v6245_v19 = vadd.f32 %v6065_v42, %v987_v50 }
 0x154   : > { %1450 = vmax.xlane.f32.xlu1 %v1449_v46  ;;  %v6222_v46 = vpop.permute.xlu1 %787 }
 0x155   : > { %v1458_v1 = vsel %vm1238_vm0, %v6231_v24, -inf  ;;  %8648 = vst [vmem:[#allocation45_spill] sm:$0xff] %v6245_v19  ;;  %v1272_v50 = vsel %vm1238_vm0, %v6245_v19, -inf  ;;  %v1067_v55 = vmul.f32 %v6050_v49, %v6222_v46  ;;  %v1005_v46 = vmul.f32 %v6050_v49, %v5937_v59 }
 0x157   : > { %1453 = vmax.xlane.f32.xlu0 %v1452_v15  ;;  %v1050_v15 = vmul.f32 %v6050_v49, %v6060_v2  ;;  %v988_v2 = vmul.f32 %v6050_v49, %v5891_v28  ;;  %v6256_v54 = vpop.permute.xlu0 %802  ;;  %v6263_v28 = vadd.f32 %v6065_v42, %v1051_v23 }
 0x158   : > { %1264 = vmax.xlane.f32.xlu1 %v1263_v62  ;;  %v6238_v62 = vadd.f32 %v6065_v42, %v986_v16 }
 0x159   : > { %8649 = vst [vmem:[#allocation46_spill] sm:$0xff] %v6263_v28  ;;  %v1464_v23 = vsel %vm1238_vm0, %v6263_v28, -inf }
 0x15a   : > { %8647 = vst [vmem:[#allocation44_spill] sm:$0xff] %v6238_v62  ;;  %v1269_v16 = vsel %vm1238_vm0, %v6238_v62, -inf  ;;  %v6270_v62 = vadd.f32 %v6065_v42, %v988_v2 }
 0x15b   : > { %1267 = vmax.xlane.f32.xlu0 %v1266_v9  ;;  %v6249_v9 = vpop.permute.xlu1 %797  ;;  %v6276_v19 = vpop.permute.xlu0 %812 }
 0x15c   : > { %1456 = vmax.xlane.f32.xlu1 %v1455_v20  ;;  %v6254_v20 = vadd.f32 %v6065_v42, %v1050_v15  ;;  %8650 = vst [vmem:[#allocation47_spill] sm:$0xff] %v6270_v62  ;;  %v1275_v2 = vsel %vm1238_vm0, %v6270_v62, -inf  ;;  %v1069_v59 = vmul.f32 %v6050_v49, %v6249_v9  ;;  %v1007_v9 = vmul.f32 %v6050_v49, %v5943_v63 }
 0x15e   : > { %v1461_v15 = vsel %vm1238_vm0, %v6254_v20, -inf }
 0x15f   : > { %1459 = vmax.xlane.f32.xlu0 %v1458_v1  ;;  %v1052_v1 = vmul.f32 %v6050_v49, %v6075_v4  ;;  %v6281_v4 = vadd.f32 %v6065_v42, %v989_v18  ;;  %v6295_v18 = vadd.f32 %v6065_v42, %v1053_v27  ;;  %v6306_v62 = vpop.permute.xlu0 %822 }
 0x160   : > { %1270 = vmax.xlane.f32.xlu1 %v1269_v16  ;;  %v6272_v16 = vpop.permute.xlu1 %807 }
 0x161   : > { %v1278_v28 = vsel %vm1238_vm0, %v6281_v4, -inf  ;;  %8652 = vst [vmem:[#allocation49_spill] sm:$0xff] %v6295_v18  ;;  %v1470_v27 = vsel %vm1238_vm0, %v6295_v18, -inf  ;;  %v1071_v63 = vmul.f32 %v6050_v49, %v6272_v16  ;;  %v1009_v16 = vmul.f32 %v6050_v49, %v5949_v5 }
 0x163   : > { %1273 = vmax.xlane.f32.xlu0 %v1272_v50  ;;  %v990_v50 = vmul.f32 %v6050_v49, %v5897_v32  ;;  %v1054_v32 = vmul.f32 %v6050_v49, %v6087_v8  ;;  %v6313_v8 = vadd.f32 %v6065_v42, %v991_v53  ;;  %v6326_v18 = vpop.permute.xlu0 %832 }
 0x164   : > { %1462 = vmax.xlane.f32.xlu1 %v1461_v15  ;;  %v6288_v15 = vadd.f32 %v6065_v42, %v1052_v1 }
 0x165   : > { %8653 = vst [vmem:[#allocation50_spill] sm:$0xff] %v6313_v8  ;;  %v1284_v53 = vsel %vm1238_vm0, %v6313_v8, -inf }
 0x166   : > { %8651 = vst [vmem:[#allocation48_spill] sm:$0xff] %v6288_v15  ;;  %v1467_v1 = vsel %vm1238_vm0, %v6288_v15, -inf  ;;  %v6320_v15 = vadd.f32 %v6065_v42, %v1054_v32 }
 0x167   : > { %1465 = vmax.xlane.f32.xlu0 %v1464_v23  ;;  %v6299_v23 = vpop.permute.xlu1 %817 }
 0x168   : > { %1276 = vmax.xlane.f32.xlu1 %v1275_v2  ;;  %v6304_v2 = vadd.f32 %v6065_v42, %v990_v50  ;;  %8654 = vst [vmem:[#allocation51_spill] sm:$0xff] %v6320_v15  ;;  %v1473_v32 = vsel %vm1238_vm0, %v6320_v15, -inf  ;;  %v6356_v15 = vpop.permute.xlu0 %842  ;;  %v1073_v5 = vmul.f32 %v6050_v49, %v6299_v23  ;;  %v1011_v23 = vmul.f32 %v6050_v49, %v5955_v13 }
 0x16a   : > { %v1281_v50 = vsel %vm1238_vm0, %v6304_v2, -inf }
 0x16b   : > { %1279 = vmax.xlane.f32.xlu0 %v1278_v28  ;;  %v992_v28 = vmul.f32 %v6050_v49, %v5903_v36  ;;  %v6331_v36 = vadd.f32 %v6065_v42, %v1055_v31  ;;  %v6345_v31 = vadd.f32 %v6065_v42, %v993_v17 }
 0x16c   : > { %1468 = vmax.xlane.f32.xlu1 %v1467_v1  ;;  %v6322_v1 = vpop.permute.xlu1 %827 }
 0x16d   : > { %v1476_v8 = vsel %vm1238_vm0, %v6331_v36, -inf  ;;  %8656 = vst [vmem:[#allocation53_spill] sm:$0xff] %v6345_v31  ;;  %v1290_v17 = vsel %vm1238_vm0, %v6345_v31, -inf  ;;  %v6376_v31 = vpop.permute.xlu0 %852  ;;  %v1075_v13 = vmul.f32 %v6050_v49, %v6322_v1  ;;  %v1013_v1 = vmul.f32 %v6050_v49, %v5961_v21 }
 0x16f   : > { %1471 = vmax.xlane.f32.xlu0 %v1470_v27  ;;  %v1056_v27 = vmul.f32 %v6050_v49, %v6102_v45  ;;  %v994_v45 = vmul.f32 %v6050_v49, %v5909_v40  ;;  %v6363_v40 = vadd.f32 %v6065_v42, %v1057_v35 }
 0x170   : > { %1282 = vmax.xlane.f32.xlu1 %v1281_v50  ;;  %v6338_v50 = vadd.f32 %v6065_v42, %v992_v28 }
 0x171   : > { %8657 = vst [vmem:[#allocation54_spill] sm:$0xff] %v6363_v40  ;;  %v1482_v35 = vsel %vm1238_vm0, %v6363_v40, -inf }
 0x172   : > { %8655 = vst [vmem:[#allocation52_spill] sm:$0xff] %v6338_v50  ;;  %v1287_v28 = vsel %vm1238_vm0, %v6338_v50, -inf  ;;  %v6370_v50 = vadd.f32 %v6065_v42, %v994_v45 }
 0x173   : > { %1285 = vmax.xlane.f32.xlu0 %v1284_v53  ;;  %v6349_v53 = vpop.permute.xlu1 %837 }
 0x174   : > { %1474 = vmax.xlane.f32.xlu1 %v1473_v32  ;;  %v6354_v32 = vadd.f32 %v6065_v42, %v1056_v27  ;;  %8658 = vst [vmem:[#allocation55_spill] sm:$0xff] %v6370_v50  ;;  %v1293_v45 = vsel %vm1238_vm0, %v6370_v50, -inf  ;;  %v6406_v50 = vpop.permute.xlu0 %862 }
 0x176   : > { %v1479_v27 = vsel %vm1238_vm0, %v6354_v32, -inf }
 0x177   : > { %1477 = vmax.xlane.f32.xlu0 %v1476_v8  ;;  %v1058_v8 = vmul.f32 %v6050_v49, %v6117_v34  ;;  %v6381_v34 = vadd.f32 %v6065_v42, %v995_v3  ;;  %v6395_v3 = vadd.f32 %v6065_v42, %v1059_v39 }
 0x178   : > { %1288 = vmax.xlane.f32.xlu1 %v1287_v28  ;;  %v6372_v28 = vpop.permute.xlu1 %847 }
 0x179   : > { %v1296_v40 = vsel %vm1238_vm0, %v6381_v34, -inf  ;;  %8660 = vst [vmem:[#allocation57_spill] sm:$0xff] %v6395_v3  ;;  %v1488_v39 = vsel %vm1238_vm0, %v6395_v3, -inf  ;;  %v6426_v3 = vpop.permute.xlu0 %872 }
 0x17b   : > { %1291 = vmax.xlane.f32.xlu0 %v1290_v17  ;;  %v996_v17 = vmul.f32 %v6050_v49, %v5915_v44  ;;  %v1060_v44 = vmul.f32 %v6050_v49, %v6134_v10  ;;  %v6413_v10 = vadd.f32 %v6065_v42, %v997_v33 }
 0x17c   : > { %1480 = vmax.xlane.f32.xlu1 %v1479_v27  ;;  %v6388_v27 = vadd.f32 %v6065_v42, %v1058_v8 }
 0x17d   : > { %8661 = vst [vmem:[#allocation58_spill] sm:$0xff] %v6413_v10  ;;  %v1302_v33 = vsel %vm1238_vm0, %v6413_v10, -inf }
 0x17e   : > { %8659 = vst [vmem:[#allocation56_spill] sm:$0xff] %v6388_v27  ;;  %v1485_v8 = vsel %vm1238_vm0, %v6388_v27, -inf  ;;  %v6420_v27 = vadd.f32 %v6065_v42, %v1060_v44 }
 0x17f   : > { %1483 = vmax.xlane.f32.xlu0 %v1482_v35  ;;  %v6399_v35 = vpop.permute.xlu1 %857 }
 0x180   : > { %1294 = vmax.xlane.f32.xlu1 %v1293_v45  ;;  %v6404_v45 = vadd.f32 %v6065_v42, %v996_v17  ;;  %8662 = vst [vmem:[#allocation59_spill] sm:$0xff] %v6420_v27  ;;  %v1491_v44 = vsel %vm1238_vm0, %v6420_v27, -inf  ;;  %v6456_v27 = vpop.permute.xlu0 %882 }
 0x182   : > { %v1299_v17 = vsel %vm1238_vm0, %v6404_v45, -inf }
 0x183   : > { %1297 = vmax.xlane.f32.xlu0 %v1296_v40  ;;  %v998_v40 = vmul.f32 %v6050_v49, %v5921_v48  ;;  %v6431_v48 = vadd.f32 %v6065_v42, %v1061_v43  ;;  %v6445_v43 = vadd.f32 %v6065_v42, %v999_v41 }
 0x184   : > { %1486 = vmax.xlane.f32.xlu1 %v1485_v8  ;;  %v6422_v8 = vpop.permute.xlu1 %867 }
 0x185   : > { %8663 = vst [vmem:[#allocation60_spill] sm:$0xff] %v6431_v48  ;;  %v1494_v10 = vsel %vm1238_vm0, %v6431_v48, -inf  ;;  %8665 = vst [vmem:[#allocation62_spill] sm:$0xff] %v6445_v43  ;;  %v1308_v41 = vsel %vm1238_vm0, %v6445_v43, -inf  ;;  %v6476_v43 = vpop.permute.xlu0 %892 }
 0x187   : > { %1489 = vmax.xlane.f32.xlu0 %v1488_v39  ;;  %v1062_v39 = vmul.f32 %v6050_v49, %v6156_v38  ;;  %v1000_v38 = vmul.f32 %v6050_v49, %v5927_v52  ;;  %v6463_v52 = vadd.f32 %v6065_v42, %v1063_v47 }
 0x188   : > { %1300 = vmax.xlane.f32.xlu1 %v1299_v17  ;;  %v6438_v17 = vadd.f32 %v6065_v42, %v998_v40 }
 0x189   : > { %8667 = vst [vmem:[#allocation64_spill] sm:$0xff] %v6463_v52  ;;  %v1500_v47 = vsel %vm1238_vm0, %v6463_v52, -inf }
 0x18a   : > { %8664 = vst [vmem:[#allocation61_spill] sm:$0xff] %v6438_v17  ;;  %v1305_v40 = vsel %vm1238_vm0, %v6438_v17, -inf  ;;  %v6470_v17 = vadd.f32 %v6065_v42, %v1000_v38 }
 0x18b   : > { %1303 = vmax.xlane.f32.xlu0 %v1302_v33  ;;  %v6449_v33 = vpop.permute.xlu1 %877 }
 0x18c   : > { %1492 = vmax.xlane.f32.xlu1 %v1491_v44  ;;  %v6454_v44 = vadd.f32 %v6065_v42, %v1062_v39  ;;  %8668 = vst [vmem:[#allocation65_spill] sm:$0xff] %v6470_v17  ;;  %v1311_v38 = vsel %vm1238_vm0, %v6470_v17, -inf  ;;  %v6506_v17 = vpop.permute.xlu0 %902 }
 0x18e   : > { %8666 = vst [vmem:[#allocation63_spill] sm:$0xff] %v6454_v44  ;;  %v1497_v39 = vsel %vm1238_vm0, %v6454_v44, -inf }
 0x18f   : > { %1495 = vmax.xlane.f32.xlu0 %v1494_v10  ;;  %v1064_v10 = vmul.f32 %v6050_v49, %v6176_v7  ;;  %v6481_v7 = vadd.f32 %v6065_v42, %v1001_v57  ;;  %v6495_v57 = vadd.f32 %v6065_v42, %v1065_v51 }
 0x190   : > { %1306 = vmax.xlane.f32.xlu1 %v1305_v40  ;;  %v6472_v40 = vpop.permute.xlu1 %887 }
 0x191   : > { %8669 = vst [vmem:[#allocation66_spill] sm:$0xff] %v6481_v7  ;;  %v1314_v52 = vsel %vm1238_vm0, %v6481_v7, -inf  ;;  %8671 = vst [vmem:[#allocation68_spill] sm:$0xff] %v6495_v57  ;;  %v1506_v51 = vsel %vm1238_vm0, %v6495_v57, -inf  ;;  %v6526_v57 = vpop.permute.xlu0 %912 }
 0x193   : > { %1309 = vmax.xlane.f32.xlu0 %v1308_v41  ;;  %v1002_v41 = vmul.f32 %v6050_v49, %v5933_v56  ;;  %v1066_v56 = vmul.f32 %v6050_v49, %v6206_v37  ;;  %v6513_v37 = vadd.f32 %v6065_v42, %v1003_v11 }
 0x194   : > { %1498 = vmax.xlane.f32.xlu1 %v1497_v39  ;;  %v6488_v39 = vadd.f32 %v6065_v42, %v1064_v10 }
 0x195   : > { %8673 = vst [vmem:[#allocation70_spill] sm:$0xff] %v6513_v37  ;;  %v1320_v11 = vsel %vm1238_vm0, %v6513_v37, -inf }
 0x196   : > { %8670 = vst [vmem:[#allocation67_spill] sm:$0xff] %v6488_v39  ;;  %v1503_v10 = vsel %vm1238_vm0, %v6488_v39, -inf  ;;  %v6520_v39 = vadd.f32 %v6065_v42, %v1066_v56 }
 0x197   : > { %1501 = vmax.xlane.f32.xlu0 %v1500_v47  ;;  %v6499_v47 = vpop.permute.xlu1 %897 }
 0x198   : > { %1312 = vmax.xlane.f32.xlu1 %v1311_v38  ;;  %v6504_v38 = vadd.f32 %v6065_v42, %v1002_v41  ;;  %8674 = vst [vmem:[#allocation71_spill] sm:$0xff] %v6520_v39  ;;  %v1509_v56 = vsel %vm1238_vm0, %v6520_v39, -inf  ;;  %v6556_v39 = vpop.permute.xlu0 %922 }
 0x19a   : > { %8672 = vst [vmem:[#allocation69_spill] sm:$0xff] %v6504_v38  ;;  %v1317_v41 = vsel %vm1238_vm0, %v6504_v38, -inf }
 0x19b   : > { %1315 = vmax.xlane.f32.xlu0 %v1314_v52  ;;  %v1004_v52 = vmul.f32 %v6050_v49, %v5939_v60  ;;  %v6531_v60 = vadd.f32 %v6065_v42, %v1067_v55  ;;  %v6545_v55 = vadd.f32 %v6065_v42, %v1005_v46 }
 0x19c   : > { %1504 = vmax.xlane.f32.xlu1 %v1503_v10  ;;  %v6522_v10 = vpop.permute.xlu1 %907 }
 0x19d   : > { %8675 = vst [vmem:[#allocation72_spill] sm:$0xff] %v6531_v60  ;;  %v1512_v37 = vsel %vm1238_vm0, %v6531_v60, -inf  ;;  %8677 = vst [vmem:[#allocation74_spill] sm:$0xff] %v6545_v55  ;;  %v1326_v46 = vsel %vm1238_vm0, %v6545_v55, -inf  ;;  %v6576_v55 = vpop.permute.xlu0 %932 }
 0x19f   : > { %1507 = vmax.xlane.f32.xlu0 %v1506_v51  ;;  %v1068_v51 = vmul.f32 %v6050_v49, %v6226_v25  ;;  %v1006_v25 = vmul.f32 %v6050_v49, %v5945_v0  ;;  %v6563_v0 = vadd.f32 %v6065_v42, %v1069_v59 }
 0x1a0   : > { %1318 = vmax.xlane.f32.xlu1 %v1317_v41  ;;  %v6538_v41 = vadd.f32 %v6065_v42, %v1004_v52 }
 0x1a1   : > { %8679 = vst [vmem:[#allocation76_spill] sm:$0xff] %v6563_v0  ;;  %v1518_v59 = vsel %vm1238_vm0, %v6563_v0, -inf }
 0x1a2   : > { %8676 = vst [vmem:[#allocation73_spill] sm:$0xff] %v6538_v41  ;;  %v1323_v52 = vsel %vm1238_vm0, %v6538_v41, -inf  ;;  %v6570_v41 = vadd.f32 %v6065_v42, %v1006_v25 }
 0x1a3   : > { %1321 = vmax.xlane.f32.xlu0 %v1320_v11  ;;  %v6549_v11 = vpop.permute.xlu1 %917 }
 0x1a4   : > { %1510 = vmax.xlane.f32.xlu1 %v1509_v56  ;;  %v6554_v56 = vadd.f32 %v6065_v42, %v1068_v51  ;;  %8680 = vst [vmem:[#allocation77_spill] sm:$0xff] %v6570_v41  ;;  %v1329_v25 = vsel %vm1238_vm0, %v6570_v41, -inf  ;;  %v6606_v41 = vpop.permute.xlu0 %942 }
 0x1a6   : > { %8678 = vst [vmem:[#allocation75_spill] sm:$0xff] %v6554_v56  ;;  %v1515_v51 = vsel %vm1238_vm0, %v6554_v56, -inf }
 0x1a7   : > { %1513 = vmax.xlane.f32.xlu0 %v1512_v37  ;;  %v1070_v37 = vmul.f32 %v6050_v49, %v6256_v54  ;;  %v6581_v54 = vadd.f32 %v6065_v42, %v1007_v9  ;;  %v6595_v9 = vadd.f32 %v6065_v42, %v1071_v63 }
 0x1a8   : > { %1324 = vmax.xlane.f32.xlu1 %v1323_v52  ;;  %v6572_v52 = vpop.permute.xlu1 %927 }
 0x1a9   : > { %8681 = vst [vmem:[#allocation78_spill] sm:$0xff] %v6581_v54  ;;  %v1332_v0 = vsel %vm1238_vm0, %v6581_v54, -inf  ;;  %8683 = vst [vmem:[#allocation80_spill] sm:$0xff] %v6595_v9  ;;  %v1524_v63 = vsel %vm1238_vm0, %v6595_v9, -inf  ;;  %v6626_v9 = vpop.permute.xlu0 %952  ;;  %v8701_v54 = vld [vmem:[#allocation6_spill] sm:$0xff] }
 0x1ab   : > { %1327 = vmax.xlane.f32.xlu0 %v1326_v46  ;;  %v1008_v46 = vmul.f32 %v6050_v49, %v5951_v6  ;;  %v1072_v6 = vmul.f32 %v6050_v49, %v6276_v19  ;;  %v6613_v19 = vadd.f32 %v6065_v42, %v1009_v16 }
 0x1ac   : > { %1516 = vmax.xlane.f32.xlu1 %v1515_v51  ;;  %v6588_v51 = vadd.f32 %v6065_v42, %v1070_v37 }
 0x1ad   : > { %8685 = vst [vmem:[#allocation82_spill] sm:$0xff] %v6613_v19  ;;  %v1338_v16 = vsel %vm1238_vm0, %v6613_v19, -inf }
 0x1ae   : > { %8682 = vst [vmem:[#allocation79_spill] sm:$0xff] %v6588_v51  ;;  %v1521_v37 = vsel %vm1238_vm0, %v6588_v51, -inf  ;;  %v6620_v51 = vadd.f32 %v6065_v42, %v1072_v6 }
 0x1af   : > { %1519 = vmax.xlane.f32.xlu0 %v1518_v59  ;;  %v6599_v59 = vpop.permute.xlu1 %937 }
 0x1b0   : > { %1330 = vmax.xlane.f32.xlu1 %v1329_v25  ;;  %v6604_v25 = vadd.f32 %v6065_v42, %v1008_v46  ;;  %8686 = vst [vmem:[#allocation83_spill] sm:$0xff] %v6620_v51  ;;  %v1527_v6 = vsel %vm1238_vm0, %v6620_v51, -inf  ;;  %v6656_v51 = vpop.permute.xlu0 %962 }
 0x1b2   : > { %8684 = vst [vmem:[#allocation81_spill] sm:$0xff] %v6604_v25  ;;  %v1335_v46 = vsel %vm1238_vm0, %v6604_v25, -inf }
 0x1b3   : > { %1333 = vmax.xlane.f32.xlu0 %v1332_v0  ;;  %v1010_v0 = vmul.f32 %v6050_v49, %v5957_v14  ;;  %v6631_v14 = vadd.f32 %v6065_v42, %v1073_v5  ;;  %v6645_v5 = vadd.f32 %v6065_v42, %v1011_v23 }
 0x1b4   : > { %1522 = vmax.xlane.f32.xlu1 %v1521_v37  ;;  %v6622_v37 = vpop.permute.xlu1 %947 }
 0x1b5   : > { %8687 = vst [vmem:[#allocation84_spill] sm:$0xff] %v6631_v14  ;;  %v1530_v19 = vsel %vm1238_vm0, %v6631_v14, -inf  ;;  %8689 = vst [vmem:[#allocation86_spill] sm:$0xff] %v6645_v5  ;;  %v1344_v23 = vsel %vm1238_vm0, %v6645_v5, -inf  ;;  %v1077_v5 = vmul.f32 %v6050_v49, %v6349_v53  ;;  %v8695_v14 = vld [vmem:[#allocation5_spill] sm:$0xff] }
 0x1b7   : > { %1525 = vmax.xlane.f32.xlu0 %v1524_v63  ;;  %v1074_v63 = vmul.f32 %v6050_v49, %v6306_v62  ;;  %v1012_v62 = vmul.f32 %v6050_v49, %v5963_v22  ;;  %v6663_v22 = vadd.f32 %v6065_v42, %v1075_v13 }
 0x1b8   : > { %1336 = vmax.xlane.f32.xlu1 %v1335_v46  ;;  %v6638_v46 = vadd.f32 %v6065_v42, %v1010_v0 }
 0x1b9   : > { %8691 = vst [vmem:[#allocation88_spill] sm:$0xff] %v6663_v22  ;;  %v1536_v13 = vsel %vm1238_vm0, %v6663_v22, -inf  ;;  %v1015_v22 = vmul.f32 %v6050_v49, %v8695_v14 }
 0x1ba   : > { %8688 = vst [vmem:[#allocation85_spill] sm:$0xff] %v6638_v46  ;;  %v1341_v0 = vsel %vm1238_vm0, %v6638_v46, -inf  ;;  %v6670_v46 = vadd.f32 %v6065_v42, %v1012_v62 }
 0x1bb   : > { %1339 = vmax.xlane.f32.xlu0 %v1338_v16  ;;  %v6649_v16 = vpop.permute.xlu1 %957 }
 0x1bc   : > { %1528 = vmax.xlane.f32.xlu1 %v1527_v6  ;;  %v6654_v6 = vadd.f32 %v6065_v42, %v1074_v63  ;;  %8692 = vst [vmem:[#allocation89_spill] sm:$0xff] %v6670_v46  ;;  %v1347_v62 = vsel %vm1238_vm0, %v6670_v46, -inf }
 0x1be   : > { %8690 = vst [vmem:[#allocation87_spill] sm:$0xff] %v6654_v6  ;;  %v1533_v63 = vsel %vm1238_vm0, %v6654_v6, -inf }
 0x1bf   : > { %1531 = vmax.xlane.f32.xlu0 %v1530_v19  ;;  %v1076_v19 = vmul.f32 %v6050_v49, %v6326_v18  ;;  %v6674_v21 = vpop.permute.xlu1 %967  ;;  %v6681_v18 = vadd.f32 %v6065_v42, %v1013_v1 }
 0x1c0   : > { %1342 = vmax.xlane.f32.xlu1 %v1341_v0 }
 0x1c1   : > { %8693 = vst [vmem:[#allocation90_spill] sm:$0xff] %v6681_v18  ;;  %v1350_v1 = vsel %vm1238_vm0, %v6681_v18, -inf  ;;  %v1079_v18 = vmul.f32 %v6050_v49, %v6372_v28 }
 0x1c3   : > { %1345 = vmax.xlane.f32.xlu0 %v1344_v23  ;;  %v1014_v23 = vmul.f32 %v6050_v49, %v5969_v30  ;;  %v6699_v30 = vadd.f32 %v6065_v42, %v1077_v5 }
 0x1c4   : > { %1534 = vmax.xlane.f32.xlu1 %v1533_v63  ;;  %v6672_v0 = vpop.xlane.xlu0 %1240  ;;  %v6688_v63 = vadd.f32 %v6065_v42, %v1076_v19 }
 0x1c5   : > { %8696 = vst [vmem:[#allocation5_spill] sm:$0xff] %v6699_v30  ;;  %v1542_v5 = vsel %vm1238_vm0, %v6699_v30, -inf  ;;  %v1017_v30 = vmul.f32 %v6050_v49, %v8701_v54 }
 0x1c6   : > { %8694 = vst [vmem:[#allocation91_spill] sm:$0xff] %v6688_v63  ;;  %v1539_v19 = vsel %vm1238_vm0, %v6688_v63, -inf }
 0x1c7   : > { %1537 = vmax.xlane.f32.xlu0 %v1536_v13  ;;  %v1078_v13 = vmul.f32 %v6050_v49, %v6356_v15  ;;  %v6717_v15 = vadd.f32 %v6065_v42, %v1015_v22 }
 0x1c8   : > { %1348 = vmax.xlane.f32.xlu1 %v1347_v62  ;;  %v6690_v6 = vpop.xlane.xlu0 %1432  ;;  %v6706_v62 = vadd.f32 %v6065_v42, %v1014_v23 }
 0x1c9   : > { %v6692_v53 = vpop.xlane.xlu1 %1243  ;;  %8698 = vst [vmem:[#allocation93_spill] sm:$0xff] %v6717_v15  ;;  %v1356_v22 = vsel %vm1238_vm0, %v6717_v15, -inf  ;;  %v1081_v15 = vmul.f32 %v6050_v49, %v6399_v35  ;;  %v8707_v35 = vld [vmem:[#allocation8_spill] sm:$0xff] }
 0x1ca   : > { %8697 = vst [vmem:[#allocation92_spill] sm:$0xff] %v6706_v62  ;;  %v1353_v23 = vsel %vm1238_vm0, %v6706_v62, -inf  ;;  %v1019_v60 = vmul.f32 %v6050_v49, %v8707_v35 }
 0x1cb   : > { %1351 = vmax.xlane.f32.xlu0 %v1350_v1  ;;  %v8699_v1 = vld [vmem:[#allocation7_spill] sm:$0xff] }
 0x1cc   : > { %1540 = vmax.xlane.f32.xlu1 %v1539_v19  ;;  %v6708_v46 = vpop.xlane.xlu0 %1435  ;;  %v1016_v63 = vmul.f32 %v6050_v49, %v8699_v1  ;;  %v6724_v19 = vadd.f32 %v6065_v42, %v1078_v13  ;;  %v6735_v1 = vadd.f32 %v6065_v42, %v1079_v18 }
 0x1cd   : > { %v6710_v14 = vpop.xlane.xlu1 %1246 }
 0x1ce   : > { %8700 = vst [vmem:[#allocation7_spill] sm:$0xff] %v6724_v19  ;;  %8702 = vst [vmem:[#allocation6_spill] sm:$0xff] %v6735_v1  ;;  %v1545_v13 = vsel %vm1238_vm0, %v6724_v19, -inf  ;;  %v1548_v18 = vsel %vm1238_vm0, %v6735_v1, -inf }
 0x1cf   : > { %1543 = vmax.xlane.f32.xlu0 %v1542_v5  ;;  %v1080_v5 = vmul.f32 %v6050_v49, %v6376_v31  ;;  %v6753_v31 = vadd.f32 %v6065_v42, %v1017_v30  ;;  %v8708_v30 = vld [vmem:[#allocation30_spill] sm:$0xff] }
 0x1d0   : > { %1354 = vmax.xlane.f32.xlu1 %v1353_v23  ;;  %v6726_v25 = vpop.xlane.xlu0 %1249  ;;  %v6742_v23 = vadd.f32 %v6065_v42, %v1016_v63  ;;  %v1623_v38 = vsub.f32 %v8708_v30, %v6672_v0  ;;  %v8711_v0 = vld [vmem:[#allocation32_spill] sm:$0xff] }
 0x1d1   : > { %v6728_v28 = vpop.xlane.xlu1 %1438  ;;  %8704 = vst [vmem:[#allocation95_spill] sm:$0xff] %v6753_v31  ;;  %v1624_v30 = vsub.f32 %v8711_v0, %v6692_v53 }
 0x1d2   : > { %8703 = vst [vmem:[#allocation94_spill] sm:$0xff] %v6742_v23  ;;  %v1359_v63 = vsel %vm1238_vm0, %v6742_v23, -inf }
 0x1d3   : > { %1357 = vmax.xlane.f32.xlu0 %v1356_v22  ;;  %v8705_v22 = vld [vmem:[#allocation9_spill] sm:$0xff] }
 0x1d4   : > { %1546 = vmax.xlane.f32.xlu1 %v1545_v13  ;;  %v6744_v62 = vpop.xlane.xlu0 %1441  ;;  %v1018_v19 = vmul.f32 %v6050_v49, %v8705_v22  ;;  %v6760_v13 = vadd.f32 %v6065_v42, %v1080_v5  ;;  %v6773_v22 = vadd.f32 %v6065_v42, %v1081_v15  ;;  %v1082_v5 = vmul.f32 %v6050_v49, %v6406_v50 }
 0x1d5   : > { %v6746_v54 = vpop.xlane.xlu1 %1252  ;;  %v6789_v15 = vadd.f32 %v6065_v42, %v1019_v60  ;;  %v1083_v50 = vmul.f32 %v6050_v49, %v6422_v8  ;;  %v8716_v8 = vld [vmem:[#allocation10_spill] sm:$0xff] }
 0x1d6   : > { %8706 = vst [vmem:[#allocation9_spill] sm:$0xff] %v6760_v13  ;;  %8709 = vst [vmem:[#allocation8_spill] sm:$0xff] %v6773_v22  ;;  %v6780_v35 = vadd.f32 %v6065_v42, %v1018_v19  ;;  %v1554_v19 = vsel %vm1238_vm0, %v6773_v22, -inf  ;;  %v6802_v60 = vadd.f32 %v6065_v42, %v1082_v5 }
 0x1d7   : > { %1549 = vmax.xlane.f32.xlu0 %v1548_v18  ;;  %v1362_v18 = vsel %vm1238_vm0, %v6753_v31, -inf  ;;  %8712 = vst [vmem:[#allocation32_spill] sm:$0xff] %v6789_v15  ;;  %v6815_v5 = vadd.f32 %v6065_v42, %v1083_v50  ;;  %v1085_v50 = vmul.f32 %v6050_v49, %v6449_v33  ;;  %v1625_v33 = vsub.f32 %v6107_v29, %v6710_v14  ;;  %v8725_v14 = vld [vmem:[#allocation35_spill] sm:$0xff] }
 0x1d8   : > { %1360 = vmax.xlane.f32.xlu1 %v1359_v63  ;;  %v6762_v56 = vpop.xlane.xlu0 %1255  ;;  %v1551_v63 = vsel %vm1238_vm0, %v6760_v13, -inf  ;;  %8710 = vst [vmem:[#allocation30_spill] sm:$0xff] %v6780_v35  ;;  %v8713_v13 = vld [vmem:[#allocation31_spill] sm:$0xff]  ;;  %v1365_v53 = vsel %vm1238_vm0, %v6780_v35, -inf }
 0x1d9   : > { %v6766_v1 = vpop.xlane.xlu1 %1444  ;;  %v1687_v7 = vsub.f32 %v8713_v13, %v6690_v6  ;;  %8715 = vst [vmem:[#allocation31_spill] sm:$0xff] %v6802_v60  ;;  %v1753_v6 = vmul.f32 1.442695, %v1624_v30  ;;  %v8717_v13 = vld [vmem:[#allocation33_spill] sm:$0xff]  ;;  %v1557_v30 = vsel %vm1238_vm0, %v6802_v60, -inf }
 0x1da   : > { %v1688_v22 = vsub.f32 %v8717_v13, %v6708_v46  ;;  %v1755_v29 = vmul.f32 1.442695, %v1625_v33 }
 0x1db   : > { %1363 = vmax.xlane.f32.xlu0 %v1362_v18  ;;  %v1751_v18 = vmul.f32 1.442695, %v1623_v38  ;;  %v1021_v38 = vmul.f32 %v6050_v49, %v8716_v8 }
 0x1dc   : > { %1552 = vmax.xlane.f32.xlu1 %v1551_v63  ;;  %v6782_v23 = vpop.xlane.xlu0 %1447  ;;  %v8714_v63 = vld [vmem:[#allocation11_spill] sm:$0xff] }
 0x1dd   : > { %v6786_v31 = vpop.xlane.xlu1 %1258  ;;  %v1020_v44 = vmul.f32 %v6050_v49, %v8714_v63  ;;  %5126 = vpow2.f32 %v1751_v18  ;;  %v1368_v63 = vsel %vm1238_vm0, %v6789_v15, -inf  ;;  %8718 = vst [vmem:[#allocation11_spill] sm:$0xff] %v6815_v5  ;;  %v6833_v13 = vadd.f32 %v6065_v42, %v1021_v38 }
 0x1de   : > { %5128 = vpow2.f32 %v1753_v6 }
 0x1df   : > { %1555 = vmax.xlane.f32.xlu0 %v1554_v19  ;;  %v1879_v19 = vmul.f32 1.442695, %v1687_v7  ;;  %v6822_v8 = vadd.f32 %v6065_v42, %v1020_v44  ;;  %v1881_v7 = vmul.f32 1.442695, %v1688_v22  ;;  %8720 = vst [vmem:[#allocation33_spill] sm:$0xff] %v6833_v13  ;;  %v1374_v38 = vsel %vm1238_vm0, %v6833_v13, -inf }
 0x1e0   : > { %1366 = vmax.xlane.f32.xlu1 %v1365_v53  ;;  %v6804_v0 = vpop.xlane.xlu0 %1261  ;;  %v1084_v53 = vmul.f32 %v6050_v49, %v6426_v3  ;;  %v1560_v3 = vsel %vm1238_vm0, %v6815_v5, -inf  ;;  %v1689_v13 = vsub.f32 %v8725_v14, %v6728_v28  ;;  %v1690_v28 = vsub.f32 %v6131_v12, %v6744_v62  ;;  %v8729_v14 = vld [vmem:[#allocation12_spill] sm:$0xff] }
 0x1e1   : > { %v6810_v48 = vpop.xlane.xlu1 %1450  ;;  %8719 = vst [vmem:[#allocation10_spill] sm:$0xff] %v6822_v8  ;;  %5130 = vpow2.f32 %v1879_v19  ;;  %v1371_v44 = vsel %vm1238_vm0, %v6822_v8, -inf  ;;  %v6849_v19 = vadd.f32 %v6065_v42, %v1085_v50 }
 0x1e2   : > { %5132 = vpow2.f32 %v1881_v7  ;;  %v8724_v7 = vld [vmem:[#allocation34_spill] sm:$0xff] }
 0x1e3   : > { %1369 = vmax.xlane.f32.xlu0 %v1368_v63  ;;  %v6838_v63 = vadd.f32 %v6065_v42, %v1084_v53  ;;  %8722 = vst [vmem:[#allocation97_spill] sm:$0xff] %v6849_v19  ;;  %v1566_v50 = vsel %vm1238_vm0, %v6849_v19, -inf  ;;  %v1023_v19 = vmul.f32 %v6050_v49, %v8729_v14  ;;  %5134 = vpow2.f32 %v1755_v29 }
 0x1e4   : > { %1558 = vmax.xlane.f32.xlu1 %v1557_v30  ;;  %v6824_v46 = vpop.xlane.xlu0 %1453  ;;  %v1087_v14 = vmul.f32 %v6050_v49, %v6472_v40 }
 0x1e5   : > { %v6826_v18 = vpop.xlane.xlu1 %1264  ;;  %8721 = vst [vmem:[#allocation96_spill] sm:$0xff] %v6838_v63  ;;  %v1563_v53 = vsel %vm1238_vm0, %v6838_v63, -inf  ;;  %v8727_v63 = vld [vmem:[#allocation13_spill] sm:$0xff] }
 0x1e6   : > { %v1022_v5 = vmul.f32 %v6050_v49, %v8727_v63  ;;  %v1883_v63 = vmul.f32 1.442695, %v1689_v13  ;;  %v1885_v13 = vmul.f32 1.442695, %v1690_v28 }
 0x1e7   : > { %1561 = vmax.xlane.f32.xlu0 %v1560_v3  ;;  %v6853_v30 = vpop.eup %5126 }
 0x1e8   : > { %1372 = vmax.xlane.f32.xlu1 %v1371_v44  ;;  %v6840_v22 = vpop.xlane.xlu0 %1267  ;;  %8723 = vst [vmem:[#allocation98_spill] sm:$0xff] %v6853_v30  ;;  %v1626_v44 = vsub.f32 %v8724_v7, %v6726_v25  ;;  %v6890_v12 = vadd.f32 %v6065_v42, %v1022_v5 }
 0x1e9   : > { %v6842_v6 = vpop.xlane.xlu1 %1456 }
 0x1ea   : > { %v1757_v33 = vmul.f32 1.442695, %v1626_v44  ;;  %8731 = vst [vmem:[#allocation12_spill] sm:$0xff] %v6890_v12  ;;  %v1377_v5 = vsel %vm1238_vm0, %v6890_v12, -inf }
 0x1eb   : > { %1375 = vmax.xlane.f32.xlu0 %v1374_v38  ;;  %v6865_v38 = vpop.eup %5128 }
 0x1ec   : > { %1564 = vmax.xlane.f32.xlu1 %v1563_v53  ;;  %v6855_v3 = vpop.xlane.xlu0 %1459  ;;  %8726 = vst [vmem:[#allocation34_spill] sm:$0xff] %v6865_v38  ;;  %v2007_v53 = vsel %vm1238_vm0, %v6853_v30, 0.0  ;;  %v6871_v60 = vpop.eup %5130  ;;  %5136 = vpow2.f32 %v1757_v33 }
 0x1ed   : > { %v6859_v8 = vpop.xlane.xlu1 %1270  ;;  %8728 = vst [vmem:[#allocation35_spill] sm:$0xff] %v6871_v60  ;;  %v6883_v15 = vpop.eup %5132  ;;  %v2199_v44 = vsel %vm1238_vm0, %v6871_v60, 0.0  ;;  %5138 = vpow2.f32 %v1883_v63  ;;  %v6917_v63 = vadd.f32 %v6065_v42, %v1087_v14 }
 0x1ee   : > { %8730 = vst [vmem:[#allocation13_spill] sm:$0xff] %v6883_v15  ;;  %5140 = vpow2.f32 %v1885_v13  ;;  %v8737_v13 = vld [vmem:[#allocation37_spill] sm:$0xff] }
 0x1ef   : > { %1567 = vmax.xlane.f32.xlu0 %v1566_v50  ;;  %v2010_v50 = vsel %vm1238_vm0, %v6865_v38, 0.0  ;;  %v1628_v12 = vsub.f32 %v8737_v13, %v6762_v56  ;;  %v8741_v13 = vld [vmem:[#allocation38_spill] sm:$0xff] }
 0x1f0   : > { %2008 = vadd.xlane.f32.xlu1 %v2007_v53  ;;  %v6873_v25 = vpop.xlane.xlu0 %1273  ;;  %v1086_v53 = vmul.f32 %v6050_v49, %v6456_v27  ;;  %v2202_v27 = vsel %vm1238_vm0, %v6883_v15, 0.0  ;;  %v8734_v49 = vld [vmem:[#allocation36_spill] sm:$0xff]  ;;  %v8742_v15 = vld [vmem:[#allocation14_spill] sm:$0xff] }
 0x1f1   : > { %v6877_v7 = vpop.xlane.xlu1 %1462  ;;  %v1627_v40 = vsub.f32 %v8734_v49, %v6746_v54  ;;  %8735 = vst [vmem:[#allocation36_spill] sm:$0xff] %v6917_v63  ;;  %v1691_v49 = vsub.f32 %v6154_v61, %v6766_v1  ;;  %v1761_v1 = vmul.f32 1.442695, %v1628_v12 }
 0x1f3   : > { %2011 = vadd.xlane.f32.xlu0 %v2010_v50  ;;  %v6901_v50 = vadd.f32 %v6065_v42, %v1023_v19  ;;  %v1759_v54 = vmul.f32 1.442695, %v1627_v40 }
 0x1f4   : > { %2200 = vadd.xlane.f32.xlu1 %v2199_v44  ;;  %v6892_v62 = vpop.xlane.xlu0 %1465  ;;  %v6906_v44 = vadd.f32 %v6065_v42, %v1086_v53  ;;  %v1572_v42 = vsel %vm1238_vm0, %v6917_v63, -inf  ;;  %v1692_v63 = vsub.f32 %v8741_v13, %v6782_v23  ;;  %v6965_v23 = vld [vmem:[%s8414_s2] ss:$0 sm:$0xff] }
 0x1f5   : > { %v6894_v29 = vpop.xlane.xlu1 %1276  ;;  %8732 = vst [vmem:[#allocation99_spill] sm:$0xff] %v6901_v50  ;;  %v1380_v19 = vsel %vm1238_vm0, %v6901_v50, -inf  ;;  %5142 = vpow2.f32 %v1759_v54 }
 0x1f6   : > { %8733 = vst [vmem:[#allocation100_spill] sm:$0xff] %v6906_v44  ;;  %v1569_v53 = vsel %vm1238_vm0, %v6906_v44, -inf  ;;  %5144 = vpow2.f32 %v1761_v1 }
 0x1f7   : > { %2203 = vadd.xlane.f32.xlu0 %v2202_v27  ;;  %v6921_v27 = vpop.eup %5134 }
 0x1f8   : > { %1378 = vmax.xlane.f32.xlu1 %v1377_v5  ;;  %v6908_v33 = vpop.xlane.xlu0 %1279  ;;  %8736 = vst [vmem:[#allocation101_spill] sm:$0xff] %v6921_v27  ;;  %v6933_v14 = vpop.eup %5136  ;;  %v2013_v56 = vsel %vm1238_vm0, %v6921_v27, 0.0 }
 0x1f9   : > { %v6910_v28 = vpop.xlane.xlu1 %1468  ;;  %8738 = vst [vmem:[#allocation37_spill] sm:$0xff] %v6933_v14  ;;  %v6944_v40 = vpop.eup %5138 }
 0x1fa   : > { %v6956_v27 = vpop.eup %5140  ;;  %v2205_v12 = vsel %vm1238_vm0, %v6944_v40, 0.0 }
 0x1fb   : > { %1381 = vmax.xlane.f32.xlu0 %v1380_v19  ;;  %v6938_v19 = vld [vmem:[%s8413_s1] ss:$0 sm:$0xff]  ;;  %8743 = vst [vmem:[#allocation38_spill] sm:$0xff] %v6956_v27 }
 0x1fc   : > { %1570 = vmax.xlane.f32.xlu1 %v1569_v53  ;;  %v6923_v5 = vpop.xlane.xlu0 %1471  ;;  %v8739_v53 = vld [vmem:[#allocation15_spill] sm:$0xff]  ;;  %v1025_v60 = vmul.f32 %v6938_v19, %v8742_v15 }
 0x1fd   : > { %v6927_v35 = vpop.xlane.xlu1 %1282  ;;  %v1024_v44 = vmul.f32 %v6938_v19, %v8739_v53  ;;  %8740 = vst [vmem:[#allocation15_spill] sm:$0xff] %v6944_v40  ;;  %v1887_v53 = vmul.f32 1.442695, %v1691_v49  ;;  %v1889_v49 = vmul.f32 1.442695, %v1692_v63 }
 0x1fe   : > { %v6979_v40 = vadd.f32 %v6965_v23, %v1025_v60 }
 0x1ff   : > { %1573 = vmax.xlane.f32.xlu0 %v1572_v42  ;;  %v2016_v42 = vsel %vm1238_vm0, %v6933_v14, 0.0  ;;  %v6968_v15 = vadd.f32 %v6965_v23, %v1024_v44  ;;  %5146 = vpow2.f32 %v1887_v53 }
 0x200   : > { %2014 = vadd.xlane.f32.xlu1 %v2013_v56  ;;  %v6946_v61 = vpop.xlane.xlu0 %1285  ;;  %v1088_v56 = vmul.f32 %v6938_v19, %v6476_v43  ;;  %v1089_v43 = vmul.f32 %v6938_v19, %v6499_v47  ;;  %8745 = vst [vmem:[#allocation102_spill] sm:$0xff] %v6979_v40  ;;  %5148 = vpow2.f32 %v1889_v49  ;;  %v8747_v47 = vld [vmem:[#allocation39_spill] sm:$0xff]  ;;  %v1386_v60 = vsel %vm1238_vm0, %v6979_v40, -inf }
 0x201   : > { %v6950_v50 = vpop.xlane.xlu1 %1474  ;;  %8744 = vst [vmem:[#allocation14_spill] sm:$0xff] %v6968_v15  ;;  %v1383_v44 = vsel %vm1238_vm0, %v6968_v15, -inf  ;;  %v1629_v53 = vsub.f32 %v8747_v47, %v6786_v31  ;;  %v6999_v15 = vpop.eup %5142  ;;  %v1630_v49 = vsub.f32 %v6181_v58, %v6804_v0  ;;  %v8750_v47 = vld [vmem:[#allocation40_spill] sm:$0xff] }
 0x202   : > { %8749 = vst [vmem:[#allocation104_spill] sm:$0xff] %v6999_v15  ;;  %v1693_v40 = vsub.f32 %v8750_v47, %v6810_v48  ;;  %v8754_v48 = vld [vmem:[#allocation41_spill] sm:$0xff] }
 0x203   : > { %2017 = vadd.xlane.f32.xlu0 %v2016_v42  ;;  %v2208_v42 = vsel %vm1238_vm0, %v6956_v27, 0.0  ;;  %v1763_v31 = vmul.f32 1.442695, %v1629_v53  ;;  %v1765_v0 = vmul.f32 1.442695, %v1630_v49  ;;  %v1694_v53 = vsub.f32 %v8754_v48, %v6824_v46 }
 0x204   : > { %2206 = vadd.xlane.f32.xlu1 %v2205_v12  ;;  %v6970_v54 = vpop.xlane.xlu0 %1477  ;;  %v6984_v12 = vadd.f32 %v6965_v23, %v1088_v56 }
 0x205   : > { %v6972_v13 = vpop.xlane.xlu1 %1288  ;;  %5150 = vpow2.f32 %v1763_v31  ;;  %v1091_v31 = vmul.f32 %v6938_v19, %v6522_v10  ;;  %v1631_v10 = vsub.f32 %v6204_v26, %v6826_v18 }
 0x206   : > { %8746 = vst [vmem:[#allocation103_spill] sm:$0xff] %v6984_v12  ;;  %v1575_v56 = vsel %vm1238_vm0, %v6984_v12, -inf  ;;  %v8752_v12 = vld [vmem:[#allocation17_spill] sm:$0xff]  ;;  %5152 = vpow2.f32 %v1765_v0 }
 0x207   : > { %2209 = vadd.xlane.f32.xlu0 %v2208_v42  ;;  %v6995_v42 = vadd.f32 %v6965_v23, %v1089_v43  ;;  %v1026_v14 = vmul.f32 %v6938_v19, %v8752_v12  ;;  %v1891_v12 = vmul.f32 1.442695, %v1693_v40  ;;  %v1893_v40 = vmul.f32 1.442695, %v1694_v53 }
 0x208   : > { %1384 = vmax.xlane.f32.xlu1 %v1383_v44  ;;  %v6986_v63 = vpop.xlane.xlu0 %1291 }
 0x209   : > { %v6988_v1 = vpop.xlane.xlu1 %1480  ;;  %8748 = vst [vmem:[#allocation39_spill] sm:$0xff] %v6995_v42  ;;  %v1578_v43 = vsel %vm1238_vm0, %v6995_v42, -inf  ;;  %v8755_v42 = vld [vmem:[#allocation16_spill] sm:$0xff]  ;;  %v7036_v46 = vadd.f32 %v6965_v23, %v1026_v14  ;;  %5154 = vpow2.f32 %v1891_v12  ;;  %v7063_v12 = vadd.f32 %v6965_v23, %v1091_v31  ;;  %v8762_v31 = vld [vmem:[#allocation42_spill] sm:$0xff] }
 0x20a   : > { %v1027_v30 = vmul.f32 %v6938_v19, %v8755_v42  ;;  %5156 = vpow2.f32 %v1893_v40 }
 0x20b   : > { %1387 = vmax.xlane.f32.xlu0 %v1386_v60  ;;  %v7011_v60 = vpop.eup %5144  ;;  %8757 = vst [vmem:[#allocation16_spill] sm:$0xff] %v7036_v46  ;;  %v1389_v14 = vsel %vm1238_vm0, %v7036_v46, -inf  ;;  %8760 = vst [vmem:[#allocation107_spill] sm:$0xff] %v7063_v12 }
 0x20c   : > { %1576 = vmax.xlane.f32.xlu1 %v1575_v56  ;;  %v7001_v44 = vpop.xlane.xlu0 %1483  ;;  %8751 = vst [vmem:[#allocation40_spill] sm:$0xff] %v7011_v60  ;;  %v2019_v56 = vsel %vm1238_vm0, %v6999_v15, 0.0  ;;  %v7017_v38 = vpop.eup %5146 }
 0x20d   : > { %v7005_v27 = vpop.xlane.xlu1 %1294  ;;  %8753 = vst [vmem:[#allocation17_spill] sm:$0xff] %v7017_v38  ;;  %v7029_v15 = vpop.eup %5148  ;;  %v2211_v49 = vsel %vm1238_vm0, %v7017_v38, 0.0  ;;  %v8763_v38 = vld [vmem:[#allocation43_spill] sm:$0xff] }
 0x20e   : > { %8756 = vst [vmem:[#allocation41_spill] sm:$0xff] %v7029_v15 }
 0x20f   : > { %1579 = vmax.xlane.f32.xlu0 %v1578_v43  ;;  %v2022_v43 = vsel %vm1238_vm0, %v7011_v60, 0.0  ;;  %v7073_v26 = vpop.eup %5150 }
 0x210   : > { %2020 = vadd.xlane.f32.xlu1 %v2019_v56  ;;  %v7019_v58 = vpop.xlane.xlu0 %1297  ;;  %v1090_v56 = vmul.f32 %v6938_v19, %v6506_v17  ;;  %v2214_v17 = vsel %vm1238_vm0, %v7029_v15, 0.0  ;;  %8761 = vst [vmem:[#allocation108_spill] sm:$0xff] %v7073_v26  ;;  %v1767_v15 = vmul.f32 1.442695, %v1631_v10 }
 0x211   : > { %v7023_v47 = vpop.xlane.xlu1 %1486 }
 0x212   : > { %5158 = vpow2.f32 %v1767_v15 }
 0x213   : > { %2023 = vadd.xlane.f32.xlu0 %v2022_v43  ;;  %v7047_v43 = vadd.f32 %v6965_v23, %v1027_v30 }
 0x214   : > { %2212 = vadd.xlane.f32.xlu1 %v2211_v49  ;;  %v7038_v48 = vpop.xlane.xlu0 %1489  ;;  %v7052_v49 = vadd.f32 %v6965_v23, %v1090_v56  ;;  %v2711_v56 = vld [vmem:[%s8415_s3] sm:$0xff] }
 0x215   : > { %v7040_v42 = vpop.xlane.xlu1 %1300  ;;  %8758 = vst [vmem:[#allocation105_spill] sm:$0xff] %v7047_v43  ;;  %v1392_v30 = vsel %vm1238_vm0, %v7047_v43, -inf  ;;  %v1632_v43 = vsub.f32 %v8762_v31, %v6840_v22  ;;  %v2025_v22 = vsel %vm1238_vm0, %v7073_v26, 0.0 }
 0x216   : > { %8759 = vst [vmem:[#allocation106_spill] sm:$0xff] %v7052_v49  ;;  %v1581_v40 = vsel %vm1238_vm0, %v7052_v49, -inf  ;;  %v1584_v49 = vsel %vm1238_vm0, %v7063_v12, -inf }
 0x217   : > { %2215 = vadd.xlane.f32.xlu0 %v2214_v17  ;;  %v2712_v17 = vld [vmem:[%s8415_s3 + $0x8] sm:$0xff] }
 0x218   : > { %1390 = vmax.xlane.f32.xlu1 %v1389_v14  ;;  %v7054_v0 = vpop.xlane.xlu0 %1303  ;;  %v2713_v14 = vpack.c.bf16 %v2712_v17, %v2711_v56  ;;  %v7085_v56 = vpop.eup %5152  ;;  %v8765_v17 = vld [vmem:[#allocation19_spill] sm:$0xff] }
 0x219   : > { %v7056_v53 = vpop.xlane.xlu1 %1492  ;;  %8764 = vst [vmem:[#allocation42_spill] sm:$0xff] %v7085_v56  ;;  %v7091_v31 = vpop.eup %5154 }
 0x21a   : > { %4950 = vmatprep.subr.bf16.mxu0 %v2713_v14  ;;  %5080 = vmatprep.subr.bf16.mxu1 %v2713_v14  ;;  %8766 = vst [vmem:[#allocation43_spill] sm:$0xff] %v7091_v31  ;;  %v7103_v26 = vpop.eup %5156 }
 0x21b   : > { %1393 = vmax.xlane.f32.xlu0 %v1392_v30  ;;  %v1695_v30 = vsub.f32 %v8763_v38, %v6842_v6  ;;  %4951 = vmatpush3.bf16.msra.mxu0 %v2713_v14  ;;  %v1769_v6 = vmul.f32 1.442695, %v1632_v43  ;;  %v1696_v38 = vsub.f32 %v6231_v24, %v6855_v3  ;;  %8768 = vst [vmem:[#allocation19_spill] sm:$0xff] %v7103_v26  ;;  %v2217_v43 = vsel %vm1238_vm0, %v7091_v31, 0.0 }
 0x21c   : > { %1582 = vmax.xlane.f32.xlu1 %v1581_v40  ;;  %v7075_v18 = vpop.xlane.xlu0 %1495  ;;  %5081 = vmatpush3.bf16.msra.mxu1 %v2713_v14  ;;  %v1028_v40 = vmul.f32 %v6938_v19, %v8765_v17  ;;  %v8767_v14 = vld [vmem:[#allocation18_spill] sm:$0xff] }
 0x21d   : > { %v7079_v46 = vpop.xlane.xlu1 %1306  ;;  %v1029_v60 = vmul.f32 %v6938_v19, %v8767_v14  ;;  %v1895_v17 = vmul.f32 1.442695, %v1695_v30  ;;  %5160 = vpow2.f32 %v1769_v6  ;;  %v1897_v15 = vmul.f32 1.442695, %v1696_v38 }
 0x21e   : > { %v7110_v24 = vadd.f32 %v6965_v23, %v1028_v40  ;;  %v1093_v14 = vmul.f32 %v6938_v19, %v6549_v11  ;;  %v8772_v11 = vld [vmem:[#allocation44_spill] sm:$0xff] }
 0x21f   : > { %1585 = vmax.xlane.f32.xlu0 %v1584_v49  ;;  %v2028_v49 = vsel %vm1238_vm0, %v7085_v56, 0.0  ;;  %5162 = vpow2.f32 %v1895_v17  ;;  %v1633_v17 = vsub.f32 %v8772_v11, %v6859_v8  ;;  %v1697_v11 = vsub.f32 %v6254_v20, %v6877_v7  ;;  %v8780_v20 = vld [vmem:[#allocation46_spill] sm:$0xff] }
 0x220   : > { %2026 = vadd.xlane.f32.xlu1 %v2025_v22  ;;  %v7093_v10 = vpop.xlane.xlu0 %1309  ;;  %v1092_v22 = vmul.f32 %v6938_v19, %v6526_v57  ;;  %8769 = vst [vmem:[#allocation18_spill] sm:$0xff] %v7110_v24  ;;  %v2220_v57 = vsel %vm1238_vm0, %v7103_v26, 0.0  ;;  %v1395_v40 = vsel %vm1238_vm0, %v7110_v24, -inf  ;;  %5164 = vpow2.f32 %v1897_v15  ;;  %v7141_v24 = vpop.eup %5158  ;;  %v8775_v15 = vld [vmem:[#allocation45_spill] sm:$0xff] }
 0x221   : > { %v7097_v12 = vpop.xlane.xlu1 %1498  ;;  %8774 = vst [vmem:[#allocation111_spill] sm:$0xff] %v7141_v24  ;;  %v1634_v26 = vsub.f32 %v8775_v15, %v6873_v25  ;;  %v1771_v8 = vmul.f32 1.442695, %v1633_v17  ;;  %v1698_v7 = vsub.f32 %v8780_v20, %v6892_v62 }
 0x223   : > { %2029 = vadd.xlane.f32.xlu0 %v2028_v49  ;;  %v7121_v49 = vadd.f32 %v6965_v23, %v1029_v60  ;;  %v1773_v17 = vmul.f32 1.442695, %v1634_v26  ;;  %5166 = vpow2.f32 %v1771_v8 }
 0x224   : > { %2218 = vadd.xlane.f32.xlu1 %v2217_v43  ;;  %v7112_v3 = vpop.xlane.xlu0 %1501  ;;  %v7126_v43 = vadd.f32 %v6965_v23, %v1092_v22 }
 0x225   : > { %v7114_v30 = vpop.xlane.xlu1 %1312  ;;  %8770 = vst [vmem:[#allocation109_spill] sm:$0xff] %v7121_v49  ;;  %v1398_v60 = vsel %vm1238_vm0, %v7121_v49, -inf  ;;  %5168 = vpow2.f32 %v1773_v17 }
 0x226   : > { %8771 = vst [vmem:[#allocation110_spill] sm:$0xff] %v7126_v43  ;;  %v1587_v22 = vsel %vm1238_vm0, %v7126_v43, -inf  ;;  %v8778_v43 = vld [vmem:[#allocation21_spill] sm:$0xff] }
 0x227   : > { %2221 = vadd.xlane.f32.xlu0 %v2220_v57  ;;  %v7137_v57 = vadd.f32 %v6965_v23, %v1093_v14  ;;  %v1030_v49 = vmul.f32 %v6938_v19, %v8778_v43  ;;  %v1899_v43 = vmul.f32 1.442695, %v1697_v11  ;;  %v1095_v11 = vmul.f32 %v6938_v19, %v6572_v52  ;;  %v8786_v52 = vld [vmem:[#allocation47_spill] sm:$0xff] }
 0x228   : > { %1396 = vmax.xlane.f32.xlu1 %v1395_v40  ;;  %v7128_v6 = vpop.xlane.xlu0 %1315 }
 0x229   : > { %v7130_v38 = vpop.xlane.xlu1 %1504  ;;  %8773 = vst [vmem:[#allocation44_spill] sm:$0xff] %v7137_v57  ;;  %v1590_v14 = vsel %vm1238_vm0, %v7137_v57, -inf  ;;  %v8781_v57 = vld [vmem:[#allocation20_spill] sm:$0xff]  ;;  %v7178_v62 = vadd.f32 %v6965_v23, %v1030_v49  ;;  %5170 = vpow2.f32 %v1899_v43  ;;  %v1635_v43 = vsub.f32 %v8786_v52, %v6894_v29 }
 0x22a   : > { %v8790_v52 = vld [vmem:[#allocation48_spill] sm:$0xff] }
 0x22b   : > { %1399 = vmax.xlane.f32.xlu0 %v1398_v60  ;;  %v7153_v60 = vpop.eup %5160  ;;  %8783 = vst [vmem:[#allocation20_spill] sm:$0xff] %v7178_v62  ;;  %v1401_v49 = vsel %vm1238_vm0, %v7178_v62, -inf  ;;  %v1775_v29 = vmul.f32 1.442695, %v1635_v43 }
 0x22c   : > { %1588 = vmax.xlane.f32.xlu1 %v1587_v22  ;;  %v7143_v40 = vpop.xlane.xlu0 %1507  ;;  %8777 = vst [vmem:[#allocation112_spill] sm:$0xff] %v7153_v60  ;;  %v2031_v22 = vsel %vm1238_vm0, %v7141_v24, 0.0  ;;  %v7159_v56 = vpop.eup %5162 }
 0x22d   : > { %v7147_v31 = vpop.xlane.xlu1 %1318  ;;  %8779 = vst [vmem:[#allocation21_spill] sm:$0xff] %v7159_v56  ;;  %v7171_v24 = vpop.eup %5164  ;;  %v2223_v26 = vsel %vm1238_vm0, %v7159_v56, 0.0 }
 0x22e   : > { %8776 = vst [vmem:[#allocation45_spill] sm:$0xff] %v7147_v31  ;;  %v1031_v31 = vmul.f32 %v6938_v19, %v8781_v57  ;;  %8782 = vst [vmem:[#allocation46_spill] sm:$0xff] %v7171_v24  ;;  %v1901_v57 = vmul.f32 1.442695, %v1698_v7  ;;  %v7209_v62 = vpop.eup %5166 }
 0x22f   : > { %1591 = vmax.xlane.f32.xlu0 %v1590_v14  ;;  %v2034_v14 = vsel %vm1238_vm0, %v7153_v60, 0.0  ;;  %8788 = vst [vmem:[#allocation115_spill] sm:$0xff] %v7209_v62 }
 0x230   : > { %2032 = vadd.xlane.f32.xlu1 %v2031_v22  ;;  %v7161_v25 = vpop.xlane.xlu0 %1321  ;;  %v1094_v22 = vmul.f32 %v6938_v19, %v6556_v39  ;;  %v2226_v39 = vsel %vm1238_vm0, %v7171_v24, 0.0  ;;  %5172 = vpow2.f32 %v1901_v57  ;;  %v1636_v57 = vsub.f32 %v6281_v4, %v6908_v33 }
 0x231   : > { %v7165_v15 = vpop.xlane.xlu1 %1510  ;;  %5174 = vpow2.f32 %v1775_v29  ;;  %v1097_v29 = vmul.f32 %v6938_v19, %v6599_v59  ;;  %v1637_v59 = vsub.f32 %v6304_v2, %v6927_v35  ;;  %v8803_v35 = vld [vmem:[#allocation51_spill] sm:$0xff] }
 0x232   : > { %v1777_v33 = vmul.f32 1.442695, %v1636_v57 }
 0x233   : > { %2035 = vadd.xlane.f32.xlu0 %v2034_v14  ;;  %v7189_v14 = vadd.f32 %v6965_v23, %v1031_v31  ;;  %v1779_v2 = vmul.f32 1.442695, %v1637_v59 }
 0x234   : > { %2224 = vadd.xlane.f32.xlu1 %v2223_v26  ;;  %v7180_v20 = vpop.xlane.xlu0 %1513  ;;  %v7194_v26 = vadd.f32 %v6965_v23, %v1094_v22  ;;  %5176 = vpow2.f32 %v1777_v33 }
 0x235   : > { %v7182_v8 = vpop.xlane.xlu1 %1324  ;;  %8784 = vst [vmem:[#allocation113_spill] sm:$0xff] %v7189_v14  ;;  %v1404_v31 = vsel %vm1238_vm0, %v7189_v14, -inf  ;;  %v1699_v14 = vsub.f32 %v8790_v52, %v6910_v28  ;;  %v8794_v28 = vld [vmem:[#allocation49_spill] sm:$0xff] }
 0x236   : > { %8785 = vst [vmem:[#allocation114_spill] sm:$0xff] %v7194_v26  ;;  %v1593_v22 = vsel %vm1238_vm0, %v7194_v26, -inf  ;;  %v8792_v26 = vld [vmem:[#allocation23_spill] sm:$0xff]  ;;  %v1700_v43 = vsub.f32 %v8794_v28, %v6923_v5 }
 0x237   : > { %2227 = vadd.xlane.f32.xlu0 %v2226_v39  ;;  %v7205_v39 = vadd.f32 %v6965_v23, %v1095_v11  ;;  %v1032_v56 = vmul.f32 %v6938_v19, %v8792_v26  ;;  %v1903_v26 = vmul.f32 1.442695, %v1699_v14 }
 0x238   : > { %1402 = vmax.xlane.f32.xlu1 %v1401_v49  ;;  %v7196_v17 = vpop.xlane.xlu0 %1327  ;;  %v1905_v14 = vmul.f32 1.442695, %v1700_v43 }
 0x239   : > { %v7198_v7 = vpop.xlane.xlu1 %1516  ;;  %8787 = vst [vmem:[#allocation47_spill] sm:$0xff] %v7205_v39  ;;  %v1596_v11 = vsel %vm1238_vm0, %v7205_v39, -inf  ;;  %v8795_v39 = vld [vmem:[#allocation22_spill] sm:$0xff]  ;;  %v7246_v5 = vadd.f32 %v6965_v23, %v1032_v56  ;;  %5178 = vpow2.f32 %v1903_v26  ;;  %v7273_v26 = vadd.f32 %v6965_v23, %v1097_v29 }
 0x23a   : > { %5180 = vpow2.f32 %v1905_v14  ;;  %v8802_v14 = vld [vmem:[#allocation50_spill] sm:$0xff] }
 0x23b   : > { %1405 = vmax.xlane.f32.xlu0 %v1404_v31  ;;  %v7221_v31 = vpop.eup %5168  ;;  %8797 = vst [vmem:[#allocation22_spill] sm:$0xff] %v7246_v5  ;;  %v1407_v56 = vsel %vm1238_vm0, %v7246_v5, -inf  ;;  %8800 = vst [vmem:[#allocation119_spill] sm:$0xff] %v7273_v26  ;;  %v1638_v5 = vsub.f32 %v8802_v14, %v6946_v61  ;;  %v1602_v29 = vsel %vm1238_vm0, %v7273_v26, -inf  ;;  %5182 = vpow2.f32 %v1779_v2 }
 0x23c   : > { %1594 = vmax.xlane.f32.xlu1 %v1593_v22  ;;  %v7211_v49 = vpop.xlane.xlu0 %1519  ;;  %8791 = vst [vmem:[#allocation48_spill] sm:$0xff] %v7221_v31  ;;  %v2037_v22 = vsel %vm1238_vm0, %v7209_v62, 0.0  ;;  %v7227_v60 = vpop.eup %5170 }
 0x23d   : > { %v7215_v24 = vpop.xlane.xlu1 %1330  ;;  %8793 = vst [vmem:[#allocation23_spill] sm:$0xff] %v7227_v60  ;;  %v7239_v62 = vpop.eup %5172  ;;  %v2229_v57 = vsel %vm1238_vm0, %v7227_v60, 0.0  ;;  %v1781_v59 = vmul.f32 1.442695, %v1638_v5 }
 0x23e   : > { %8789 = vst [vmem:[#allocation116_spill] sm:$0xff] %v7215_v24  ;;  %v1033_v24 = vmul.f32 %v6938_v19, %v8795_v39  ;;  %8796 = vst [vmem:[#allocation49_spill] sm:$0xff] %v7239_v62 }
 0x23f   : > { %1597 = vmax.xlane.f32.xlu0 %v1596_v11  ;;  %v2040_v11 = vsel %vm1238_vm0, %v7221_v31, 0.0  ;;  %5184 = vpow2.f32 %v1781_v59 }
 0x240   : > { %2038 = vadd.xlane.f32.xlu1 %v2037_v22  ;;  %v7229_v4 = vpop.xlane.xlu0 %1333  ;;  %v1096_v22 = vmul.f32 %v6938_v19, %v6576_v55  ;;  %v2232_v55 = vsel %vm1238_vm0, %v7239_v62, 0.0 }
 0x241   : > { %v7233_v52 = vpop.xlane.xlu1 %1522 }
 0x243   : > { %2041 = vadd.xlane.f32.xlu0 %v2040_v11  ;;  %v7257_v11 = vadd.f32 %v6965_v23, %v1033_v24 }
 0x244   : > { %2230 = vadd.xlane.f32.xlu1 %v2229_v57  ;;  %v7248_v28 = vpop.xlane.xlu0 %1525  ;;  %v7262_v57 = vadd.f32 %v6965_v23, %v1096_v22 }
 0x245   : > { %v7250_v39 = vpop.xlane.xlu1 %1336  ;;  %8798 = vst [vmem:[#allocation117_spill] sm:$0xff] %v7257_v11  ;;  %v1410_v24 = vsel %vm1238_vm0, %v7257_v11, -inf  ;;  %v1701_v11 = vsub.f32 %v8803_v35, %v6950_v50  ;;  %v1702_v50 = vsub.f32 %v6331_v36, %v6970_v54  ;;  %v8807_v35 = vld [vmem:[#allocation24_spill] sm:$0xff] }
 0x246   : > { %8799 = vst [vmem:[#allocation118_spill] sm:$0xff] %v7262_v57  ;;  %v1599_v22 = vsel %vm1238_vm0, %v7262_v57, -inf  ;;  %v8805_v57 = vld [vmem:[#allocation25_spill] sm:$0xff]  ;;  %v1035_v26 = vmul.f32 %v6938_v19, %v8807_v35  ;;  %v1099_v35 = vmul.f32 %v6938_v19, %v6622_v37  ;;  %v8812_v37 = vld [vmem:[#allocation52_spill] sm:$0xff] }
 0x247   : > { %2233 = vadd.xlane.f32.xlu0 %v2232_v55  ;;  %v7277_v55 = vpop.eup %5174  ;;  %v1034_v60 = vmul.f32 %v6938_v19, %v8805_v57  ;;  %v1907_v57 = vmul.f32 1.442695, %v1701_v11  ;;  %v1909_v11 = vmul.f32 1.442695, %v1702_v50 }
 0x248   : > { %1408 = vmax.xlane.f32.xlu1 %v1407_v56  ;;  %v7264_v33 = vpop.xlane.xlu0 %1339  ;;  %8801 = vst [vmem:[#allocation120_spill] sm:$0xff] %v7277_v55 }
 0x249   : > { %v7266_v43 = vpop.xlane.xlu1 %1528  ;;  %v7314_v36 = vadd.f32 %v6965_v23, %v1034_v60  ;;  %5186 = vpow2.f32 %v1907_v57  ;;  %v1639_v57 = vsub.f32 %v8812_v37, %v6972_v13  ;;  %v1703_v37 = vsub.f32 %v6354_v32, %v6988_v1  ;;  %v8820_v32 = vld [vmem:[#allocation54_spill] sm:$0xff] }
 0x24a   : > { %5188 = vpow2.f32 %v1909_v11  ;;  %v8815_v11 = vld [vmem:[#allocation53_spill] sm:$0xff]  ;;  %v1704_v1 = vsub.f32 %v8820_v32, %v7001_v44 }
 0x24b   : > { %1411 = vmax.xlane.f32.xlu0 %v1410_v24  ;;  %v7289_v24 = vpop.eup %5176  ;;  %8809 = vst [vmem:[#allocation24_spill] sm:$0xff] %v7314_v36  ;;  %v1413_v60 = vsel %vm1238_vm0, %v7314_v36, -inf  ;;  %v1783_v13 = vmul.f32 1.442695, %v1639_v57 }
 0x24c   : > { %1600 = vmax.xlane.f32.xlu1 %v1599_v22  ;;  %v7279_v56 = vpop.xlane.xlu0 %1531  ;;  %8804 = vst [vmem:[#allocation50_spill] sm:$0xff] %v7289_v24  ;;  %v2043_v22 = vsel %vm1238_vm0, %v7277_v55, 0.0  ;;  %v7295_v31 = vpop.eup %5178 }
 0x24d   : > { %v7283_v62 = vpop.xlane.xlu1 %1342  ;;  %8806 = vst [vmem:[#allocation51_spill] sm:$0xff] %v7295_v31  ;;  %v7307_v55 = vpop.eup %5180  ;;  %v2235_v5 = vsel %vm1238_vm0, %v7295_v31, 0.0  ;;  %5190 = vpow2.f32 %v1783_v13 }
 0x24e   : > { %8808 = vst [vmem:[#allocation25_spill] sm:$0xff] %v7307_v55  ;;  %v7345_v36 = vpop.eup %5182 }
 0x24f   : > { %1603 = vmax.xlane.f32.xlu0 %v1602_v29  ;;  %v2046_v29 = vsel %vm1238_vm0, %v7289_v24, 0.0  ;;  %8814 = vst [vmem:[#allocation123_spill] sm:$0xff] %v7345_v36 }
 0x250   : > { %2044 = vadd.xlane.f32.xlu1 %v2043_v22  ;;  %v7297_v61 = vpop.xlane.xlu0 %1345  ;;  %v1098_v22 = vmul.f32 %v6938_v19, %v6606_v41  ;;  %v2238_v41 = vsel %vm1238_vm0, %v7307_v55, 0.0  ;;  %v1640_v55 = vsub.f32 %v8815_v11, %v6986_v63 }
 0x251   : > { %v7301_v14 = vpop.xlane.xlu1 %1534 }
 0x252   : > { %v1785_v57 = vmul.f32 1.442695, %v1640_v55 }
 0x253   : > { %2047 = vadd.xlane.f32.xlu0 %v2046_v29  ;;  %v7325_v29 = vadd.f32 %v6965_v23, %v1035_v26 }
 0x254   : > { %2236 = vadd.xlane.f32.xlu1 %v2235_v5  ;;  %v7316_v54 = vpop.xlane.xlu0 %1537  ;;  %v7330_v5 = vadd.f32 %v6965_v23, %v1098_v22  ;;  %5192 = vpow2.f32 %v1785_v57 }
 0x255   : > { %v7318_v2 = vpop.xlane.xlu1 %1348  ;;  %8810 = vst [vmem:[#allocation121_spill] sm:$0xff] %v7325_v29  ;;  %v1416_v26 = vsel %vm1238_vm0, %v7325_v29, -inf }
 0x256   : > { %8811 = vst [vmem:[#allocation122_spill] sm:$0xff] %v7330_v5  ;;  %v1605_v22 = vsel %vm1238_vm0, %v7330_v5, -inf  ;;  %v8818_v5 = vld [vmem:[#allocation27_spill] sm:$0xff] }
 0x257   : > { %2239 = vadd.xlane.f32.xlu0 %v2238_v41  ;;  %v7341_v41 = vadd.f32 %v6965_v23, %v1099_v35  ;;  %v1036_v29 = vmul.f32 %v6938_v19, %v8818_v5  ;;  %v1911_v5 = vmul.f32 1.442695, %v1703_v37  ;;  %v1101_v37 = vmul.f32 %v6938_v19, %v6649_v16  ;;  %v8826_v16 = vld [vmem:[#allocation55_spill] sm:$0xff] }
 0x258   : > { %1414 = vmax.xlane.f32.xlu1 %v1413_v60  ;;  %v7332_v59 = vpop.xlane.xlu0 %1351 }
 0x259   : > { %v7334_v50 = vpop.xlane.xlu1 %1540  ;;  %8813 = vst [vmem:[#allocation52_spill] sm:$0xff] %v7341_v41  ;;  %v1608_v35 = vsel %vm1238_vm0, %v7341_v41, -inf  ;;  %v8821_v41 = vld [vmem:[#allocation26_spill] sm:$0xff]  ;;  %v7382_v44 = vadd.f32 %v6965_v23, %v1036_v29  ;;  %5194 = vpow2.f32 %v1911_v5  ;;  %v1641_v5 = vsub.f32 %v8826_v16, %v7005_v27  ;;  %v8831_v16 = vld [vmem:[#allocation56_spill] sm:$0xff] }
 0x25b   : > { %1417 = vmax.xlane.f32.xlu0 %v1416_v26  ;;  %v7357_v26 = vpop.eup %5184  ;;  %8823 = vst [vmem:[#allocation26_spill] sm:$0xff] %v7382_v44  ;;  %v1419_v29 = vsel %vm1238_vm0, %v7382_v44, -inf  ;;  %v1787_v27 = vmul.f32 1.442695, %v1641_v5 }
 0x25c   : > { %1606 = vmax.xlane.f32.xlu1 %v1605_v22  ;;  %v7347_v60 = vpop.xlane.xlu0 %1543  ;;  %8817 = vst [vmem:[#allocation124_spill] sm:$0xff] %v7357_v26  ;;  %v2049_v22 = vsel %vm1238_vm0, %v7345_v36, 0.0  ;;  %v7363_v24 = vpop.eup %5186 }
 0x25d   : > { %v7351_v31 = vpop.xlane.xlu1 %1354  ;;  %8819 = vst [vmem:[#allocation27_spill] sm:$0xff] %v7363_v24  ;;  %v7375_v36 = vpop.eup %5188  ;;  %v2241_v55 = vsel %vm1238_vm0, %v7363_v24, 0.0 }
 0x25e   : > { %8816 = vst [vmem:[#allocation53_spill] sm:$0xff] %v7351_v31  ;;  %v1037_v31 = vmul.f32 %v6938_v19, %v8821_v41  ;;  %8822 = vst [vmem:[#allocation54_spill] sm:$0xff] %v7375_v36  ;;  %v1913_v41 = vmul.f32 1.442695, %v1704_v1  ;;  %v7413_v44 = vpop.eup %5190 }
 0x25f   : > { %1609 = vmax.xlane.f32.xlu0 %v1608_v35  ;;  %v2052_v35 = vsel %vm1238_vm0, %v7357_v26, 0.0  ;;  %8828 = vst [vmem:[#allocation127_spill] sm:$0xff] %v7413_v44 }
 0x260   : > { %2050 = vadd.xlane.f32.xlu1 %v2049_v22  ;;  %v7365_v63 = vpop.xlane.xlu0 %1357  ;;  %v1100_v22 = vmul.f32 %v6938_v19, %v6626_v9  ;;  %v2244_v9 = vsel %vm1238_vm0, %v7375_v36, 0.0  ;;  %5196 = vpow2.f32 %v1913_v41  ;;  %v1642_v41 = vsub.f32 %v6381_v34, %v7019_v58  ;;  %v8835_v34 = vld [vmem:[#allocation28_spill] sm:$0xff] }
 0x261   : > { %v7369_v11 = vpop.xlane.xlu1 %1546  ;;  %v1039_v58 = vmul.f32 %v6938_v19, %v8835_v34  ;;  %5198 = vpow2.f32 %v1787_v27 }
 0x263   : > { %2053 = vadd.xlane.f32.xlu0 %v2052_v35  ;;  %v7393_v35 = vadd.f32 %v6965_v23, %v1037_v31 }
 0x264   : > { %2242 = vadd.xlane.f32.xlu1 %v2241_v55  ;;  %v7384_v32 = vpop.xlane.xlu0 %1549  ;;  %v7398_v55 = vadd.f32 %v6965_v23, %v1100_v22 }
 0x265   : > { %v7386_v13 = vpop.xlane.xlu1 %1360  ;;  %8824 = vst [vmem:[#allocation125_spill] sm:$0xff] %v7393_v35  ;;  %v1422_v31 = vsel %vm1238_vm0, %v7393_v35, -inf  ;;  %v1705_v35 = vsub.f32 %v8831_v16, %v7023_v47  ;;  %v1789_v47 = vmul.f32 1.442695, %v1642_v41  ;;  %v8836_v16 = vld [vmem:[#allocation57_spill] sm:$0xff] }
 0x266   : > { %8825 = vst [vmem:[#allocation126_spill] sm:$0xff] %v7398_v55  ;;  %v1611_v22 = vsel %vm1238_vm0, %v7398_v55, -inf  ;;  %v8833_v55 = vld [vmem:[#allocation29_spill] sm:$0xff] }
 0x267   : > { %2245 = vadd.xlane.f32.xlu0 %v2244_v9  ;;  %v7409_v9 = vadd.f32 %v6965_v23, %v1101_v37  ;;  %v1038_v24 = vmul.f32 %v6938_v19, %v8833_v55  ;;  %v1915_v55 = vmul.f32 1.442695, %v1705_v35  ;;  %5200 = vpow2.f32 %v1789_v47 }
 0x268   : > { %1420 = vmax.xlane.f32.xlu1 %v1419_v29  ;;  %v7400_v57 = vpop.xlane.xlu0 %1363 }
 0x269   : > { %v7402_v1 = vpop.xlane.xlu1 %1552  ;;  %8827 = vst [vmem:[#allocation55_spill] sm:$0xff] %v7409_v9  ;;  %v1614_v37 = vsel %vm1238_vm0, %v7409_v9, -inf  ;;  %v1706_v9 = vsub.f32 %v8836_v16, %v7038_v48  ;;  %v7452_v48 = vadd.f32 %v6965_v23, %v1038_v24  ;;  %5202 = vpow2.f32 %v1915_v55  ;;  %v8838_v24 = vld [vmem:[#allocation59_spill] sm:$0xff] }
 0x26b   : > { %1423 = vmax.xlane.f32.xlu0 %v1422_v31  ;;  %v7425_v31 = vpop.eup %5192  ;;  %v1917_v27 = vmul.f32 1.442695, %v1706_v9 }
 0x26c   : > { %1612 = vmax.xlane.f32.xlu1 %v1611_v22  ;;  %v7415_v29 = vpop.xlane.xlu0 %1555  ;;  %8832 = vst [vmem:[#allocation56_spill] sm:$0xff] %v7425_v31  ;;  %v2055_v22 = vsel %vm1238_vm0, %v7413_v44, 0.0  ;;  %v7431_v26 = vpop.eup %5194  ;;  %v2058_v44 = vsel %vm1238_vm0, %v7425_v31, 0.0 }
 0x26d   : > { %8829 = vst [vmem:[#allocation128_spill] sm:$0xff] %v7415_v29  ;;  %v7419_v36 = vpop.xlane.xlu1 %1366  ;;  %8834 = vst [vmem:[#allocation29_spill] sm:$0xff] %v7431_v26  ;;  %v7445_v29 = vpop.eup %5196  ;;  %v2247_v41 = vsel %vm1238_vm0, %v7431_v26, 0.0  ;;  %5204 = vpow2.f32 %v1917_v27 }
 0x26e   : > { %8830 = vst [vmem:[#allocation129_spill] sm:$0xff] %v7419_v36  ;;  %v2250_v26 = vsel %vm1238_vm0, %v7445_v29, 0.0  ;;  %v7489_v27 = vpop.eup %5198 }
 0x26f   : > { %1615 = vmax.xlane.f32.xlu0 %v1614_v37  ;;  %v1643_v37 = vsub.f32 %v6404_v45, %v7040_v42  ;;  %v7457_v45 = vadd.f32 %v6965_v23, %v1039_v58  ;;  %v1103_v42 = vmul.f32 %v6938_v19, %v6674_v21  ;;  %v8839_v58 = vld [vmem:[#allocation60_spill] sm:$0xff]  ;;  %v1425_v21 = vsel %vm1238_vm0, %v7452_v48, -inf }
 0x270   : > { %2056 = vadd.xlane.f32.xlu1 %v2055_v22  ;;  %v7435_v5 = vpop.xlane.xlu0 %1369  ;;  %v1102_v22 = vmul.f32 %v6938_v19, %v6656_v51  ;;  %v8837_v51 = vld [vmem:[#allocation58_spill] sm:$0xff]  ;;  %v1708_v31 = vsub.f32 %v8839_v58, %v7075_v18 }
 0x271   : > { %v7439_v36 = vpop.xlane.xlu1 %1558  ;;  %v1791_v16 = vmul.f32 1.442695, %v1643_v37  ;;  %v1428_v18 = vsel %vm1238_vm0, %v7457_v45, -inf  ;;  %v7499_v58 = vpop.eup %5200 }
 0x272   : > { %v7474_v19 = vadd.f32 %v6965_v23, %v1102_v22  ;;  %v1921_v22 = vmul.f32 1.442695, %v1708_v31  ;;  %8845 = vst [vmem:[#allocation58_spill] sm:$0xff] %v7499_v58 }
 0x273   : > { %2059 = vadd.xlane.f32.xlu0 %v2058_v44  ;;  %v1644_v44 = vsub.f32 %v8837_v51, %v7054_v0  ;;  %5206 = vpow2.f32 %v1791_v16 }
 0x274   : > { %2248 = vadd.xlane.f32.xlu1 %v2247_v41  ;;  %v7454_v35 = vpop.xlane.xlu0 %1561  ;;  %v1707_v41 = vsub.f32 %v8838_v24, %v7056_v53  ;;  %8840 = vst [vmem:[#allocation28_spill] sm:$0xff] %v7474_v19  ;;  %v8841_v53 = vld [vmem:[#allocation61_spill] sm:$0xff]  ;;  %v1617_v51 = vsel %vm1238_vm0, %v7474_v19, -inf  ;;  %v8861_v19 = vld [vmem:[#allocation34_spill] sm:$0xff] }
 0x275   : > { %v7463_v34 = vpop.xlane.xlu1 %1372  ;;  %v1793_v9 = vmul.f32 1.442695, %v1644_v44  ;;  %v1645_v47 = vsub.f32 %v8841_v53, %v7079_v46  ;;  %v8843_v44 = vld [vmem:[#allocation62_spill] sm:$0xff] }
 0x276   : > { %v1919_v37 = vmul.f32 1.442695, %v1707_v41  ;;  %v1646_v46 = vsub.f32 %v8843_v44, %v7093_v10  ;;  %v2061_v10 = vsel %vm1238_vm0, %v7489_v27, 0.0 }
 0x277   : > { %2251 = vadd.xlane.f32.xlu0 %v2250_v26  ;;  %v7485_v26 = vadd.f32 %v6965_v23, %v1103_v42  ;;  %5208 = vpow2.f32 %v1793_v9  ;;  %v1795_v16 = vmul.f32 1.442695, %v1645_v47  ;;  %v8844_v23 = vld [vmem:[#allocation63_spill] sm:$0xff]  ;;  %v8847_v47 = vld [vmem:[#allocation64_spill] sm:$0xff] }
 0x278   : > { %1426 = vmax.xlane.f32.xlu1 %v1425_v21  ;;  %v7476_v0 = vpop.xlane.xlu0 %1375  ;;  %5210 = vpow2.f32 %v1919_v37  ;;  %v1709_v42 = vsub.f32 %v8844_v23, %v7097_v12  ;;  %v7503_v21 = vpop.eup %5202  ;;  %v1797_v53 = vmul.f32 1.442695, %v1646_v46  ;;  %v1710_v12 = vsub.f32 %v8847_v47, %v7112_v3 }
 0x279   : > { %v7480_v55 = vpop.xlane.xlu1 %1564  ;;  %8842 = vst [vmem:[#allocation57_spill] sm:$0xff] %v7485_v26  ;;  %v1620_v31 = vsel %vm1238_vm0, %v7485_v26, -inf  ;;  %5212 = vpow2.f32 %v1921_v22  ;;  %8846 = vst [vmem:[#allocation59_spill] sm:$0xff] %v7503_v21  ;;  %v2064_v22 = vsel %vm1238_vm0, %v7499_v58, 0.0  ;;  %v7511_v23 = vpop.eup %5204  ;;  %v2253_v46 = vsel %vm1238_vm0, %v7503_v21, 0.0  ;;  %v8860_v26 = vld [vmem:[#allocation98_spill] sm:$0xff] }
 0x27a   : > { %8849 = vst [vmem:[#allocation60_spill] sm:$0xff] %v7511_v23 }
 0x27b   : > { %1429 = vmax.xlane.f32.xlu0 %v1428_v18  ;;  %v1923_v18 = vmul.f32 1.442695, %v1709_v42  ;;  %v8851_v42 = vld [vmem:[#allocation66_spill] sm:$0xff] }
 0x27c   : > { %1618 = vmax.xlane.f32.xlu1 %v1617_v51  ;;  %v7493_v24 = vpop.xlane.xlu0 %1567  ;;  %v8848_v51 = vld [vmem:[#allocation65_spill] sm:$0xff] }
 0x27d   : > { %v2009_v41 = vpop.xlane.xlu1 %2008  ;;  %v1647_v44 = vsub.f32 %v8848_v51, %v7114_v30  ;;  %v1648_v30 = vsub.f32 %v8851_v42, %v7128_v6 }
 0x27e   : > { %5214 = vrcp.f32 %v2009_v41  ;;  %v1925_v41 = vmul.f32 1.442695, %v1710_v12 }
 0x27f   : > { %1621 = vmax.xlane.f32.xlu0 %v1620_v31  ;;  %5216 = vpow2.f32 %v1795_v16  ;;  %v7515_v16 = vpop.eup %5206 }
 0x280   : > { %2062 = vadd.xlane.f32.xlu1 %v2061_v10  ;;  %v2012_v9 = vpop.xlane.xlu0 %2011  ;;  %8850 = vst [vmem:[#allocation61_spill] sm:$0xff] %v7515_v16  ;;  %v1799_v10 = vmul.f32 1.442695, %v1647_v44  ;;  %v2067_v6 = vsel %vm1238_vm0, %v7515_v16, 0.0 }
 0x281   : > { %v2201_v37 = vpop.xlane.xlu1 %2200  ;;  %5218 = vrcp.f32 %v2012_v9  ;;  %v8852_v9 = vld [vmem:[#allocation67_spill] sm:$0xff]  ;;  %v7525_v51 = vpop.eup %5208 }
 0x282   : > { %5220 = vrcp.f32 %v2201_v37  ;;  %v1711_v47 = vsub.f32 %v8852_v9, %v7130_v38  ;;  %v2256_v37 = vsel %vm1238_vm0, %v7511_v23, 0.0  ;;  %8853 = vst [vmem:[#allocation62_spill] sm:$0xff] %v7525_v51  ;;  %v7531_v12 = vpop.eup %5210  ;;  %v1801_v38 = vmul.f32 1.442695, %v1648_v30  ;;  %v8859_v30 = vld [vmem:[#allocation70_spill] sm:$0xff] }
 0x283   : > { %2065 = vadd.xlane.f32.xlu0 %v2064_v22  ;;  %5222 = vpow2.f32 %v1797_v53  ;;  %v8854_v53 = vld [vmem:[#allocation68_spill] sm:$0xff]  ;;  %8855 = vst [vmem:[#allocation63_spill] sm:$0xff] %v7531_v12  ;;  %v7535_v44 = vpop.eup %5212  ;;  %v2259_v16 = vsel %vm1238_vm0, %v7531_v12, 0.0  ;;  %v1650_v21 = vsub.f32 %v8859_v30, %v7161_v25 }
 0x284   : > { %2254 = vadd.xlane.f32.xlu1 %v2253_v46  ;;  %v2204_v3 = vpop.xlane.xlu0 %2203  ;;  %v1712_v22 = vsub.f32 %v8854_v53, %v7143_v40  ;;  %8856 = vst [vmem:[#allocation64_spill] sm:$0xff] %v7535_v44  ;;  %v8857_v46 = vld [vmem:[#allocation45_spill] sm:$0xff]  ;;  %v1927_v40 = vmul.f32 1.442695, %v1711_v47  ;;  %v2262_v25 = vsel %vm1238_vm0, %v7535_v44, 0.0 }
 0x285   : > { %5224 = vrcp.f32 %v2204_v3  ;;  %v7519_v31 = vpop.xlane.xlu1 %1378  ;;  %v8858_v3 = vld [vmem:[#allocation69_spill] sm:$0xff] }
 0x286   : > { %5226 = vpow2.f32 %v1923_v18  ;;  %v1649_v42 = vsub.f32 %v8858_v3, %v8857_v46 }
 0x287   : > { %2257 = vadd.xlane.f32.xlu0 %v2256_v37  ;;  %5228 = vpow2.f32 %v1925_v41  ;;  %v2070_v37 = vsel %vm1238_vm0, %v7525_v51, 0.0 }
 0x288   : > { %2068 = vadd.xlane.f32.xlu1 %v2067_v6  ;;  %v7533_v18 = vpop.xlane.xlu0 %1381  ;;  %v5215_v23 = vpop.eup %5214  ;;  %5230 = vpow2.f32 %v1799_v10  ;;  %v1929_v6 = vmul.f32 1.442695, %v1712_v22  ;;  %v1803_v10 = vmul.f32 1.442695, %v1649_v42 }
 0x289   : > { %v7539_v9 = vpop.xlane.xlu1 %1570  ;;  %v7543_v53 = vpop.eup %5216  ;;  %5232 = vpow2.f32 %v1801_v38  ;;  %v2392_v51 = vmul.f32 %v5215_v23, %v8860_v26  ;;  %v1805_v26 = vmul.f32 1.442695, %v1650_v21  ;;  %v8863_v23 = vld [vmem:[#allocation35_spill] sm:$0xff]  ;;  %v8866_v21 = vld [vmem:[#allocation73_spill] sm:$0xff] }
 0x28a   : > { %5234 = vpow2.f32 %v1927_v40  ;;  %v2073_v38 = vsel %vm1238_vm0, %v7543_v53, 0.0 }
 0x28b   : > { %2071 = vadd.xlane.f32.xlu0 %v2070_v37  ;;  %v5219_v41 = vpop.eup %5218  ;;  %v8862_v37 = vld [vmem:[#allocation71_spill] sm:$0xff]  ;;  %5236 = vpow2.f32 %v1929_v6 }
 0x28c   : > { %2260 = vadd.xlane.f32.xlu1 %v2259_v16  ;;  %v7549_v46 = vpop.xlane.xlu0 %1573  ;;  %v5221_v3 = vpop.eup %5220  ;;  %v2394_v58 = vmul.f32 %v5219_v41, %v8861_v19  ;;  %v1713_v12 = vsub.f32 %v8862_v37, %v7165_v15  ;;  %v8864_v41 = vld [vmem:[#allocation13_spill] sm:$0xff]  ;;  %v8865_v37 = vld [vmem:[#allocation72_spill] sm:$0xff] }
 0x28d   : > { %v2015_v47 = vpop.xlane.xlu1 %2014  ;;  %v7553_v22 = vpop.eup %5222  ;;  %v2520_v40 = vmul.f32 %v5221_v3, %v8863_v23  ;;  %v1714_v44 = vsub.f32 %v8865_v37, %v7180_v20  ;;  %v8870_v23 = vld [vmem:[#allocation75_spill] sm:$0xff] }
 0x28e   : > { %v2647_v42 = vpack.c.bf16 %v2394_v58, %v2392_v51  ;;  %5238 = vrcp.f32 %v2015_v47  ;;  %v2076_v58 = vsel %vm1238_vm0, %v7553_v22, 0.0  ;;  %v1931_v51 = vmul.f32 1.442695, %v1713_v12 }
 0x28f   : > { %v5225_v16 = vpop.eup %5224  ;;  %2263 = vadd.xlane.f32.xlu0 %v2262_v25  ;;  %5240 = vpow2.f32 %v1803_v10  ;;  %v1651_v47 = vsub.f32 %v8866_v21, %v7182_v8  ;;  %v1933_v12 = vmul.f32 1.442695, %v1714_v44  ;;  %v8876_v21 = vld [vmem:[#allocation77_spill] sm:$0xff] }
 0x290   : > { %v7561_v30 = vpop.eup %5226  ;;  %2074 = vadd.xlane.f32.xlu1 %v2073_v38  ;;  %v2018_v19 = vpop.xlane.xlu0 %2017  ;;  %v2522_v15 = vmul.f32 %v5225_v16, %v8864_v41  ;;  %4952 = vmatprep.mubr.msk.bf16.mxu0 %vm1238_vm0, %v2647_v42  ;;  %v8869_v16 = vld [vmem:[#allocation74_spill] sm:$0xff] }
 0x291   : > { %v2207_v6 = vpop.xlane.xlu1 %2206  ;;  %5242 = vrcp.f32 %v2018_v19  ;;  %v7572_v38 = vpop.eup %5228  ;;  %v2265_v3 = vsel %vm1238_vm0, %v7561_v30, 0.0  ;;  %v1652_v8 = vsub.f32 %v8869_v16, %v7196_v17  ;;  %v1807_v19 = vmul.f32 1.442695, %v1651_v47 }
 0x292   : > { %v2679_v25 = vpack.c.bf16 %v2522_v15, %v2520_v40  ;;  %8867 = vst [vmem:[#allocation65_spill] sm:$0xff] %v7572_v38  ;;  %5244 = vrcp.f32 %v2207_v6  ;;  %v7576_v20 = vpop.eup %5230  ;;  %v1715_v40 = vsub.f32 %v8870_v23, %v7198_v7  ;;  %v2268_v41 = vsel %vm1238_vm0, %v7572_v38, 0.0  ;;  %v8872_v15 = vld [vmem:[#allocation76_spill] sm:$0xff] }
 0x293   : > { %2077 = vadd.xlane.f32.xlu0 %v2076_v58  ;;  %8868 = vst [vmem:[#allocation66_spill] sm:$0xff] %v7576_v20  ;;  %5246 = vpow2.f32 %v1805_v26  ;;  %v7587_v26 = vpop.eup %5232  ;;  %v1716_v37 = vsub.f32 %v8872_v15, %v7211_v49  ;;  %v2079_v17 = vsel %vm1238_vm0, %v7576_v20, 0.0  ;;  %v1809_v7 = vmul.f32 1.442695, %v1652_v8  ;;  %v8877_v8 = vld [vmem:[#allocation78_spill] sm:$0xff]  ;;  %v8879_v20 = vld [vmem:[#allocation37_spill] sm:$0xff] }
 0x294   : > { %2266 = vadd.xlane.f32.xlu1 %v2265_v3  ;;  %5016 = vmatprep.mubr.msk.bf16.mxu1 %vm1238_vm0, %v2679_v25  ;;  %v2210_v10 = vpop.xlane.xlu0 %2209  ;;  %8871 = vst [vmem:[#allocation67_spill] sm:$0xff] %v7587_v26  ;;  %v7593_v44 = vpop.eup %5234  ;;  %v1935_v49 = vmul.f32 1.442695, %v1715_v40  ;;  %v1654_v15 = vsub.f32 %v8877_v8, %v7229_v4 }
 0x295   : > { %5248 = vrcp.f32 %v2210_v10  ;;  %v7581_v42 = vpop.xlane.xlu1 %1384  ;;  %8873 = vst [vmem:[#allocation68_spill] sm:$0xff] %v7593_v44  ;;  %v7597_v58 = vpop.eup %5236  ;;  %v2082_v10 = vsel %vm1238_vm0, %v7587_v26, 0.0  ;;  %v1937_v23 = vmul.f32 1.442695, %v1716_v37 }
 0x296   : > { %5250 = vpow2.f32 %v1931_v51  ;;  %8874 = vst [vmem:[#allocation45_spill] sm:$0xff] %v7597_v58  ;;  %v8875_v51 = vld [vmem:[#allocation116_spill] sm:$0xff]  ;;  %v2274_v4 = vsel %vm1238_vm0, %v7597_v58, 0.0 }
 0x297   : > { %2269 = vadd.xlane.f32.xlu0 %v2268_v41  ;;  %5252 = vpow2.f32 %v1933_v12  ;;  %v1653_v47 = vsub.f32 %v8876_v21, %v8875_v51  ;;  %v2271_v41 = vsel %vm1238_vm0, %v7593_v44, 0.0  ;;  %v8878_v21 = vld [vmem:[#allocation101_spill] sm:$0xff] }
 0x298   : > { %2080 = vadd.xlane.f32.xlu1 %v2079_v17  ;;  %v7595_v6 = vpop.xlane.xlu0 %1387  ;;  %v5239_v3 = vpop.eup %5238  ;;  %5254 = vpow2.f32 %v1807_v19 }
 0x299   : > { %v7601_v25 = vpop.xlane.xlu1 %1576  ;;  %v7605_v16 = vpop.eup %5240  ;;  %5256 = vpow2.f32 %v1809_v7  ;;  %v1811_v19 = vmul.f32 1.442695, %v1653_v47  ;;  %v2396_v26 = vmul.f32 %v5239_v3, %v8878_v21  ;;  %v1813_v3 = vmul.f32 1.442695, %v1654_v15  ;;  %v8882_v21 = vld [vmem:[#allocation38_spill] sm:$0xff]  ;;  %v8884_v15 = vld [vmem:[#allocation81_spill] sm:$0xff] }
 0x29a   : > { %5258 = vpow2.f32 %v1935_v49  ;;  %v2085_v7 = vsel %vm1238_vm0, %v7605_v16, 0.0  ;;  %v8881_v49 = vld [vmem:[#allocation15_spill] sm:$0xff] }
 0x29b   : > { %2083 = vadd.xlane.f32.xlu0 %v2082_v10  ;;  %v5243_v12 = vpop.eup %5242  ;;  %v8880_v10 = vld [vmem:[#allocation79_spill] sm:$0xff]  ;;  %5260 = vpow2.f32 %v1937_v23 }
 0x29c   : > { %2272 = vadd.xlane.f32.xlu1 %v2271_v41  ;;  %v7611_v17 = vpop.xlane.xlu0 %1579  ;;  %v5245_v51 = vpop.eup %5244  ;;  %v2398_v38 = vmul.f32 %v5243_v12, %v8879_v20  ;;  %v1717_v44 = vsub.f32 %v8880_v10, %v7233_v52  ;;  %v8883_v10 = vld [vmem:[#allocation80_spill] sm:$0xff] }
 0x29d   : > { %v2021_v40 = vpop.xlane.xlu1 %2020  ;;  %v7615_v37 = vpop.eup %5246  ;;  %v2524_v12 = vmul.f32 %v5245_v51, %v8881_v49  ;;  %v1718_v58 = vsub.f32 %v8883_v10, %v7248_v28  ;;  %v8887_v49 = vld [vmem:[#allocation83_spill] sm:$0xff] }
 0x29e   : > { %v2648_v47 = vpack.c.bf16 %v2398_v38, %v2396_v26  ;;  %5262 = vrcp.f32 %v2021_v40  ;;  %v2088_v38 = vsel %vm1238_vm0, %v7615_v37, 0.0  ;;  %v1939_v26 = vmul.f32 1.442695, %v1717_v44 }
 0x29f   : > { %v5249_v41 = vpop.eup %5248  ;;  %2275 = vadd.xlane.f32.xlu0 %v2274_v4  ;;  %5264 = vpow2.f32 %v1811_v19  ;;  %v1655_v40 = vsub.f32 %v8884_v15, %v7250_v39  ;;  %v1941_v44 = vmul.f32 1.442695, %v1718_v58 }
 0x2a0   : > { %v7623_v8 = vpop.eup %5250  ;;  %2086 = vadd.xlane.f32.xlu1 %v2085_v7  ;;  %v2024_v20 = vpop.xlane.xlu0 %2023  ;;  %v2526_v52 = vmul.f32 %v5249_v41, %v8882_v21  ;;  %4953 = vmatmul.mubr.msk.bf16.vlgmr.msra.gmra.mrb[0].mxu0 %vm1238_vm0, %v2648_v47  ;;  %v8886_v41 = vld [vmem:[#allocation82_spill] sm:$0xff] }
 0x2a1   : > { %v2213_v23 = vpop.xlane.xlu1 %2212  ;;  %5266 = vrcp.f32 %v2024_v20  ;;  %v7634_v7 = vpop.eup %5252  ;;  %v2277_v51 = vsel %vm1238_vm0, %v7623_v8, 0.0  ;;  %v1656_v39 = vsub.f32 %v8886_v41, %v7264_v33  ;;  %v1815_v20 = vmul.f32 1.442695, %v1655_v40 }
 0x2a2   : > { %v2680_v4 = vpack.c.bf16 %v2526_v52, %v2524_v12  ;;  %5268 = vrcp.f32 %v2213_v23  ;;  %v7638_v28 = vpop.eup %5254  ;;  %v1719_v12 = vsub.f32 %v8887_v49, %v7266_v43  ;;  %v2280_v21 = vsel %vm1238_vm0, %v7634_v7, 0.0  ;;  %v8889_v52 = vld [vmem:[#allocation84_spill] sm:$0xff] }
 0x2a3   : > { %2089 = vadd.xlane.f32.xlu0 %v2088_v38  ;;  %8885 = vst [vmem:[#allocation69_spill] sm:$0xff] %v7638_v28  ;;  %5270 = vpow2.f32 %v1813_v3  ;;  %v7649_v3 = vpop.eup %5256  ;;  %v1720_v10 = vsub.f32 %v8889_v52, %v7279_v56  ;;  %v2091_v33 = vsel %vm1238_vm0, %v7638_v28, 0.0  ;;  %v1817_v43 = vmul.f32 1.442695, %v1656_v39  ;;  %v8893_v39 = vld [vmem:[#allocation86_spill] sm:$0xff] }
 0x2a4   : > { %2278 = vadd.xlane.f32.xlu1 %v2277_v51  ;;  %5017 = vmatmul.mubr.msk.bf16.vlgmr.msra.gmra.mrb[0].mxu1 %vm1238_vm0, %v2680_v4  ;;  %v2216_v19 = vpop.xlane.xlu0 %2215  ;;  %8888 = vst [vmem:[#allocation70_spill] sm:$0xff] %v7649_v3  ;;  %v7655_v58 = vpop.eup %5258  ;;  %v1943_v56 = vmul.f32 1.442695, %v1719_v12  ;;  %v2094_v51 = vsel %vm1238_vm0, %v7649_v3, 0.0  ;;  %v8895_v3 = vld [vmem:[#allocation40_spill] sm:$0xff] }
 0x2a5   : > { %5272 = vrcp.f32 %v2216_v19  ;;  %v7643_v47 = vpop.xlane.xlu1 %1390  ;;  %8890 = vst [vmem:[#allocation98_spill] sm:$0xff] %v7655_v58  ;;  %v7659_v38 = vpop.eup %5260  ;;  %v1945_v41 = vmul.f32 1.442695, %v1720_v10  ;;  %v2283_v49 = vsel %vm1238_vm0, %v7655_v58, 0.0 }
 0x2a6   : > { %5274 = vpow2.f32 %v1939_v26  ;;  %8891 = vst [vmem:[#allocation34_spill] sm:$0xff] %v7659_v38  ;;  %v8892_v26 = vld [vmem:[#allocation85_spill] sm:$0xff] }
 0x2a7   : > { %2281 = vadd.xlane.f32.xlu0 %v2280_v21  ;;  %5276 = vpow2.f32 %v1941_v44  ;;  %v1657_v15 = vsub.f32 %v8892_v26, %v7283_v62  ;;  %v1658_v21 = vsub.f32 %v8893_v39, %v7297_v61  ;;  %v2286_v61 = vsel %vm1238_vm0, %v7659_v38, 0.0 }
 0x2a8   : > { %2092 = vadd.xlane.f32.xlu1 %v2091_v33  ;;  %v7657_v23 = vpop.xlane.xlu0 %1393  ;;  %v5263_v4 = vpop.eup %5262  ;;  %5278 = vpow2.f32 %v1815_v20  ;;  %v8894_v33 = vld [vmem:[#allocation104_spill] sm:$0xff] }
 0x2a9   : > { %v7663_v40 = vpop.xlane.xlu1 %1582  ;;  %v7667_v19 = vpop.eup %5264  ;;  %5280 = vpow2.f32 %v1817_v43  ;;  %v1819_v20 = vmul.f32 1.442695, %v1657_v15  ;;  %v2400_v26 = vmul.f32 %v5263_v4, %v8894_v33  ;;  %v1821_v4 = vmul.f32 1.442695, %v1658_v21  ;;  %v8898_v33 = vld [vmem:[#allocation41_spill] sm:$0xff] }
 0x2aa   : > { %5282 = vpow2.f32 %v1943_v56  ;;  %v2097_v43 = vsel %vm1238_vm0, %v7667_v19, 0.0  ;;  %v8897_v56 = vld [vmem:[#allocation17_spill] sm:$0xff] }
 0x2ab   : > { %2095 = vadd.xlane.f32.xlu0 %v2094_v51  ;;  %v5267_v44 = vpop.eup %5266  ;;  %v8896_v51 = vld [vmem:[#allocation87_spill] sm:$0xff]  ;;  %5284 = vpow2.f32 %v1945_v41  ;;  %v8900_v21 = vld [vmem:[#allocation89_spill] sm:$0xff] }
 0x2ac   : > { %2284 = vadd.xlane.f32.xlu1 %v2283_v49  ;;  %v7673_v62 = vpop.xlane.xlu0 %1585  ;;  %v5269_v52 = vpop.eup %5268  ;;  %v2402_v28 = vmul.f32 %v5267_v44, %v8895_v3  ;;  %v1721_v58 = vsub.f32 %v8896_v51, %v7301_v14  ;;  %v8899_v51 = vld [vmem:[#allocation88_spill] sm:$0xff] }
 0x2ad   : > { %v2027_v12 = vpop.xlane.xlu1 %2026  ;;  %v7677_v10 = vpop.eup %5270  ;;  %v2528_v44 = vmul.f32 %v5269_v52, %v8897_v56  ;;  %v1722_v38 = vsub.f32 %v8899_v51, %v7316_v54  ;;  %v8904_v56 = vld [vmem:[#allocation91_spill] sm:$0xff] }
 0x2ae   : > { %v2649_v15 = vpack.c.bf16 %v2402_v28, %v2400_v26  ;;  %5286 = vrcp.f32 %v2027_v12  ;;  %v2100_v28 = vsel %vm1238_vm0, %v7677_v10, 0.0  ;;  %v1947_v26 = vmul.f32 1.442695, %v1721_v58 }
 0x2af   : > { %v5273_v49 = vpop.eup %5272  ;;  %2287 = vadd.xlane.f32.xlu0 %v2286_v61  ;;  %5288 = vpow2.f32 %v1819_v20  ;;  %v1659_v12 = vsub.f32 %v8900_v21, %v7318_v2  ;;  %v1949_v58 = vmul.f32 1.442695, %v1722_v38  ;;  %v8910_v21 = vld [vmem:[#allocation92_spill] sm:$0xff] }
 0x2b0   : > { %v7685_v39 = vpop.eup %5274  ;;  %2098 = vadd.xlane.f32.xlu1 %v2097_v43  ;;  %v2030_v3 = vpop.xlane.xlu0 %2029  ;;  %v2530_v14 = vmul.f32 %v5273_v49, %v8898_v33  ;;  %4956 = vmatprep.mubr.msk.bf16.mxu0 %vm1238_vm0, %v2649_v15  ;;  %v8903_v49 = vld [vmem:[#allocation90_spill] sm:$0xff] }
 0x2b1   : > { %v2219_v41 = vpop.xlane.xlu1 %2218  ;;  %5290 = vrcp.f32 %v2030_v3  ;;  %v7696_v43 = vpop.eup %5276  ;;  %v2289_v52 = vsel %vm1238_vm0, %v7685_v39, 0.0  ;;  %v1660_v2 = vsub.f32 %v8903_v49, %v7332_v59  ;;  %v1823_v3 = vmul.f32 1.442695, %v1659_v12 }
 0x2b2   : > { %v2681_v61 = vpack.c.bf16 %v2530_v14, %v2528_v44  ;;  %8901 = vst [vmem:[#allocation71_spill] sm:$0xff] %v7696_v43  ;;  %5292 = vrcp.f32 %v2219_v41  ;;  %v7700_v54 = vpop.eup %5278  ;;  %v1723_v44 = vsub.f32 %v8904_v56, %v7334_v50  ;;  %v2292_v33 = vsel %vm1238_vm0, %v7696_v43, 0.0  ;;  %v8906_v14 = vld [vmem:[#allocation5_spill] sm:$0xff] }
 0x2b3   : > { %2101 = vadd.xlane.f32.xlu0 %v2100_v28  ;;  %8902 = vst [vmem:[#allocation35_spill] sm:$0xff] %v7700_v54  ;;  %5294 = vpow2.f32 %v1821_v4  ;;  %v7711_v4 = vpop.eup %5280  ;;  %v1724_v51 = vsub.f32 %v8906_v14, %v7347_v60  ;;  %v2103_v59 = vsel %vm1238_vm0, %v7700_v54, 0.0  ;;  %v1825_v50 = vmul.f32 1.442695, %v1660_v2  ;;  %v8911_v2 = vld [vmem:[#allocation93_spill] sm:$0xff]  ;;  %v8913_v54 = vld [vmem:[#allocation42_spill] sm:$0xff] }
 0x2b4   : > { %2290 = vadd.xlane.f32.xlu1 %v2289_v52  ;;  %5020 = vmatprep.mubr.msk.bf16.mxu1 %vm1238_vm0, %v2681_v61  ;;  %v2222_v20 = vpop.xlane.xlu0 %2221  ;;  %8905 = vst [vmem:[#allocation13_spill] sm:$0xff] %v7711_v4  ;;  %v7717_v38 = vpop.eup %5282  ;;  %v1951_v60 = vmul.f32 1.442695, %v1723_v44  ;;  %v1662_v14 = vsub.f32 %v8911_v2, %v7365_v63 }
 0x2b5   : > { %5296 = vrcp.f32 %v2222_v20  ;;  %v7705_v15 = vpop.xlane.xlu1 %1396  ;;  %8907 = vst [vmem:[#allocation72_spill] sm:$0xff] %v7717_v38  ;;  %v7721_v28 = vpop.eup %5284  ;;  %v2106_v20 = vsel %vm1238_vm0, %v7711_v4, 0.0  ;;  %v1953_v56 = vmul.f32 1.442695, %v1724_v51 }
 0x2b6   : > { %5298 = vpow2.f32 %v1947_v26  ;;  %8908 = vst [vmem:[#allocation73_spill] sm:$0xff] %v7721_v28  ;;  %v8909_v26 = vld [vmem:[#allocation53_spill] sm:$0xff]  ;;  %v2298_v63 = vsel %vm1238_vm0, %v7721_v28, 0.0 }
 0x2b7   : > { %2293 = vadd.xlane.f32.xlu0 %v2292_v33  ;;  %5300 = vpow2.f32 %v1949_v58  ;;  %v1661_v12 = vsub.f32 %v8910_v21, %v8909_v26  ;;  %v2295_v33 = vsel %vm1238_vm0, %v7717_v38, 0.0  ;;  %v8912_v21 = vld [vmem:[#allocation108_spill] sm:$0xff] }
 0x2b8   : > { %2104 = vadd.xlane.f32.xlu1 %v2103_v59  ;;  %v7719_v41 = vpop.xlane.xlu0 %1399  ;;  %v5287_v52 = vpop.eup %5286  ;;  %5302 = vpow2.f32 %v1823_v3 }
 0x2b9   : > { %v7725_v61 = vpop.xlane.xlu1 %1588  ;;  %v7729_v49 = vpop.eup %5288  ;;  %5304 = vpow2.f32 %v1825_v50  ;;  %v1827_v3 = vmul.f32 1.442695, %v1661_v12  ;;  %v2404_v4 = vmul.f32 %v5287_v52, %v8912_v21  ;;  %v1829_v52 = vmul.f32 1.442695, %v1662_v14  ;;  %v8917_v21 = vld [vmem:[#allocation19_spill] sm:$0xff]  ;;  %v8919_v14 = vld [vmem:[#allocation94_spill] sm:$0xff] }
 0x2ba   : > { %5306 = vpow2.f32 %v1951_v60  ;;  %v2109_v50 = vsel %vm1238_vm0, %v7729_v49, 0.0  ;;  %v8916_v60 = vld [vmem:[#allocation43_spill] sm:$0xff] }
 0x2bb   : > { %2107 = vadd.xlane.f32.xlu0 %v2106_v20  ;;  %v5291_v58 = vpop.eup %5290  ;;  %v8914_v20 = vld [vmem:[#allocation7_spill] sm:$0xff]  ;;  %5308 = vpow2.f32 %v1953_v56 }
 0x2bc   : > { %2296 = vadd.xlane.f32.xlu1 %v2295_v33  ;;  %v7735_v59 = vpop.xlane.xlu0 %1591  ;;  %v5293_v26 = vpop.eup %5292  ;;  %v2406_v43 = vmul.f32 %v5291_v58, %v8913_v54  ;;  %v1725_v38 = vsub.f32 %v8914_v20, %v7369_v11  ;;  %v8918_v20 = vld [vmem:[#allocation6_spill] sm:$0xff] }
 0x2bd   : > { %v2033_v44 = vpop.xlane.xlu1 %2032  ;;  %v7739_v51 = vpop.eup %5294  ;;  %v2532_v58 = vmul.f32 %v5293_v26, %v8916_v60  ;;  %v1726_v28 = vsub.f32 %v8918_v20, %v7384_v32  ;;  %v8923_v60 = vld [vmem:[#allocation9_spill] sm:$0xff]  ;;  %v8926_v20 = vld [vmem:[#allocation8_spill] sm:$0xff] }
 0x2be   : > { %v2650_v12 = vpack.c.bf16 %v2406_v43, %v2404_v4  ;;  %5310 = vrcp.f32 %v2033_v44  ;;  %v2112_v43 = vsel %vm1238_vm0, %v7739_v51, 0.0  ;;  %v1955_v4 = vmul.f32 1.442695, %v1725_v38 }
 0x2bf   : > { %v5297_v33 = vpop.eup %5296  ;;  %2299 = vadd.xlane.f32.xlu0 %v2298_v63  ;;  %5312 = vpow2.f32 %v1827_v3  ;;  %v1663_v44 = vsub.f32 %v8919_v14, %v7386_v13  ;;  %v1957_v38 = vmul.f32 1.442695, %v1726_v28  ;;  %v8929_v14 = vld [vmem:[#allocation129_spill] sm:$0xff] }
 0x2c0   : > { %v7747_v2 = vpop.eup %5298  ;;  %2110 = vadd.xlane.f32.xlu1 %v2109_v50  ;;  %v2036_v54 = vpop.xlane.xlu0 %2035  ;;  %v2534_v11 = vmul.f32 %v5297_v33, %v8917_v21  ;;  %4957 = vmatmul.mubr.msk.bf16.gmra.mrb[4].mxu0 %vm1238_vm0, %v2650_v12  ;;  %v8922_v33 = vld [vmem:[#allocation95_spill] sm:$0xff] }
 0x2c1   : > { %8915 = vst [vmem:[#allocation74_spill] sm:$0xff] %v7747_v2  ;;  %v2225_v56 = vpop.xlane.xlu1 %2224  ;;  %5314 = vrcp.f32 %v2036_v54  ;;  %v7758_v50 = vpop.eup %5300  ;;  %v2301_v26 = vsel %vm1238_vm0, %v7747_v2, 0.0  ;;  %v1664_v13 = vsub.f32 %v8922_v33, %v7400_v57  ;;  %v1831_v54 = vmul.f32 1.442695, %v1663_v44  ;;  %v8930_v44 = vld [vmem:[#allocation30_spill] sm:$0xff] }
 0x2c2   : > { %v2682_v63 = vpack.c.bf16 %v2534_v11, %v2532_v58  ;;  %8920 = vst [vmem:[#allocation75_spill] sm:$0xff] %v7758_v50  ;;  %5316 = vrcp.f32 %v2225_v56  ;;  %v7762_v32 = vpop.eup %5302  ;;  %v1727_v58 = vsub.f32 %v8923_v60, %v7402_v1  ;;  %v2304_v21 = vsel %vm1238_vm0, %v7758_v50, 0.0  ;;  %v8925_v11 = vld [vmem:[#allocation128_spill] sm:$0xff] }
 0x2c3   : > { %2113 = vadd.xlane.f32.xlu0 %v2112_v43  ;;  %8921 = vst [vmem:[#allocation76_spill] sm:$0xff] %v7762_v32  ;;  %5318 = vpow2.f32 %v1829_v52  ;;  %v7773_v52 = vpop.eup %5304  ;;  %v1728_v56 = vsub.f32 %v8926_v20, %v8925_v11  ;;  %v2115_v57 = vsel %vm1238_vm0, %v7762_v32, 0.0  ;;  %v1833_v1 = vmul.f32 1.442695, %v1664_v13  ;;  %v8931_v13 = vld [vmem:[#allocation32_spill] sm:$0xff]  ;;  %v8932_v32 = vld [vmem:[#allocation111_spill] sm:$0xff] }
 0x2c4   : > { %2302 = vadd.xlane.f32.xlu1 %v2301_v26  ;;  %5021 = vmatmul.mubr.msk.bf16.gmra.mrb[4].mxu1 %vm1238_vm0, %v2682_v63  ;;  %v2228_v3 = vpop.xlane.xlu0 %2227  ;;  %8924 = vst [vmem:[#allocation116_spill] sm:$0xff] %v7773_v52  ;;  %v7779_v28 = vpop.eup %5306  ;;  %v1665_v63 = vsub.f32 %v8930_v44, %v8929_v14  ;;  %v1959_v33 = vmul.f32 1.442695, %v1727_v58  ;;  %v2118_v60 = vsel %vm1238_vm0, %v7773_v52, 0.0  ;;  %v8933_v50 = vld [vmem:[#allocation112_spill] sm:$0xff] }
 0x2c5   : > { %5320 = vrcp.f32 %v2228_v3  ;;  %v7767_v12 = vpop.xlane.xlu1 %1402  ;;  %8927 = vst [vmem:[#allocation77_spill] sm:$0xff] %v7779_v28  ;;  %v1961_v11 = vmul.f32 1.442695, %v1728_v56  ;;  %v2307_v20 = vsel %vm1238_vm0, %v7779_v28, 0.0 }
 0x2c6   : > { %5322 = vpow2.f32 %v1955_v4  ;;  %v7783_v4 = vpop.eup %5308 }
 0x2c7   : > { %2305 = vadd.xlane.f32.xlu0 %v2304_v21  ;;  %8928 = vst [vmem:[#allocation78_spill] sm:$0xff] %v7783_v4  ;;  %5324 = vpow2.f32 %v1957_v38 }
 0x2c8   : > { %2116 = vadd.xlane.f32.xlu1 %v2115_v57  ;;  %v7781_v43 = vpop.xlane.xlu0 %1405  ;;  %v5311_v3 = vpop.eup %5310  ;;  %5326 = vpow2.f32 %v1831_v54  ;;  %v1666_v57 = vsub.f32 %v8931_v13, %v7435_v5  ;;  %v1835_v54 = vmul.f32 1.442695, %v1665_v63  ;;  %v2310_v5 = vsel %vm1238_vm0, %v7783_v4, 0.0 }
 0x2c9   : > { %v7787_v26 = vpop.xlane.xlu1 %1594  ;;  %v7791_v21 = vpop.eup %5312  ;;  %5328 = vpow2.f32 %v1833_v1  ;;  %v2408_v52 = vmul.f32 %v5311_v3, %v8932_v32  ;;  %v8935_v3 = vld [vmem:[#allocation21_spill] sm:$0xff] }
 0x2ca   : > { %5330 = vpow2.f32 %v1959_v33  ;;  %v2121_v1 = vsel %vm1238_vm0, %v7791_v21, 0.0  ;;  %v1837_v32 = vmul.f32 1.442695, %v1666_v57  ;;  %v8938_v57 = vld [vmem:[#allocation10_spill] sm:$0xff] }
 0x2cb   : > { %2119 = vadd.xlane.f32.xlu0 %v2118_v60  ;;  %v5315_v38 = vpop.eup %5314  ;;  %v8934_v60 = vld [vmem:[#allocation31_spill] sm:$0xff]  ;;  %5332 = vpow2.f32 %v1961_v11 }
 0x2cc   : > { %2308 = vadd.xlane.f32.xlu1 %v2307_v20  ;;  %v7797_v14 = vpop.xlane.xlu0 %1597  ;;  %v5317_v44 = vpop.eup %5316  ;;  %v2410_v2 = vmul.f32 %v5315_v38, %v8933_v50  ;;  %v1729_v28 = vsub.f32 %v8934_v60, %v7439_v36  ;;  %v8936_v38 = vld [vmem:[#allocation46_spill] sm:$0xff]  ;;  %v8937_v60 = vld [vmem:[#allocation11_spill] sm:$0xff] }
 0x2cd   : > { %v2039_v58 = vpop.xlane.xlu1 %2038  ;;  %v7801_v56 = vpop.eup %5318  ;;  %v2536_v33 = vmul.f32 %v5317_v44, %v8935_v3  ;;  %v1730_v4 = vsub.f32 %v8937_v60, %v7454_v35  ;;  %v8941_v3 = vld [vmem:[#allocation96_spill] sm:$0xff] }
 0x2ce   : > { %v2651_v63 = vpack.c.bf16 %v2410_v2, %v2408_v52  ;;  %5334 = vrcp.f32 %v2039_v58  ;;  %v2124_v2 = vsel %vm1238_vm0, %v7801_v56, 0.0  ;;  %v1963_v52 = vmul.f32 1.442695, %v1729_v28 }
 0x2cf   : > { %v5321_v20 = vpop.eup %5320  ;;  %2311 = vadd.xlane.f32.xlu0 %v2310_v5  ;;  %5336 = vpow2.f32 %v1835_v54  ;;  %v1667_v58 = vsub.f32 %v8938_v57, %v7463_v34  ;;  %v1965_v28 = vmul.f32 1.442695, %v1730_v4 }
 0x2d0   : > { %v7809_v13 = vpop.eup %5322  ;;  %2122 = vadd.xlane.f32.xlu1 %v2121_v1  ;;  %v2042_v50 = vpop.xlane.xlu0 %2041  ;;  %v2538_v36 = vmul.f32 %v5321_v20, %v8936_v38  ;;  %4960 = vmatprep.mubr.msk.bf16.mxu0 %vm1238_vm0, %v2651_v63  ;;  %v8940_v20 = vld [vmem:[#allocation33_spill] sm:$0xff] }
 0x2d1   : > { %v2231_v11 = vpop.xlane.xlu1 %2230  ;;  %5338 = vrcp.f32 %v2042_v50  ;;  %v7820_v1 = vpop.eup %5324  ;;  %v2313_v44 = vsel %vm1238_vm0, %v7809_v13, 0.0  ;;  %v1668_v34 = vsub.f32 %v8940_v20, %v7476_v0  ;;  %v1839_v50 = vmul.f32 1.442695, %v1667_v58 }
 0x2d2   : > { %v2683_v5 = vpack.c.bf16 %v2538_v36, %v2536_v33  ;;  %5340 = vrcp.f32 %v2231_v11  ;;  %v7824_v35 = vpop.eup %5326  ;;  %v1731_v33 = vsub.f32 %v8941_v3, %v7480_v55  ;;  %v2316_v38 = vsel %vm1238_vm0, %v7820_v1, 0.0  ;;  %v8943_v36 = vld [vmem:[#allocation97_spill] sm:$0xff] }
 0x2d3   : > { %2125 = vadd.xlane.f32.xlu0 %v2124_v2  ;;  %8939 = vst [vmem:[#allocation101_spill] sm:$0xff] %v7824_v35  ;;  %5342 = vpow2.f32 %v1837_v32  ;;  %v7835_v32 = vpop.eup %5328  ;;  %v1732_v60 = vsub.f32 %v8943_v36, %v7493_v24  ;;  %v2127_v0 = vsel %vm1238_vm0, %v7824_v35, 0.0  ;;  %v1841_v55 = vmul.f32 1.442695, %v1668_v34  ;;  %v8947_v34 = vld [vmem:[#allocation99_spill] sm:$0xff] }
 0x2d4   : > { %2314 = vadd.xlane.f32.xlu1 %v2313_v44  ;;  %5024 = vmatprep.mubr.msk.bf16.mxu1 %vm1238_vm0, %v2683_v5  ;;  %v2234_v54 = vpop.xlane.xlu0 %2233  ;;  %8942 = vst [vmem:[#allocation37_spill] sm:$0xff] %v7835_v32  ;;  %v7841_v4 = vpop.eup %5330  ;;  %v1967_v24 = vmul.f32 1.442695, %v1731_v33  ;;  %v2130_v44 = vsel %vm1238_vm0, %v7835_v32, 0.0  ;;  %v8949_v32 = vld [vmem:[#allocation48_spill] sm:$0xff] }
 0x2d5   : > { %5344 = vrcp.f32 %v2234_v54  ;;  %v7829_v63 = vpop.xlane.xlu1 %1408  ;;  %8944 = vst [vmem:[#allocation79_spill] sm:$0xff] %v7841_v4  ;;  %v7845_v2 = vpop.eup %5332  ;;  %v1969_v20 = vmul.f32 1.442695, %v1732_v60  ;;  %v2319_v3 = vsel %vm1238_vm0, %v7841_v4, 0.0 }
 0x2d6   : > { %5346 = vpow2.f32 %v1963_v52  ;;  %8945 = vst [vmem:[#allocation15_spill] sm:$0xff] %v7845_v2  ;;  %v8946_v52 = vld [vmem:[#allocation12_spill] sm:$0xff] }
 0x2d7   : > { %2317 = vadd.xlane.f32.xlu0 %v2316_v38  ;;  %5348 = vpow2.f32 %v1965_v28  ;;  %v1669_v57 = vsub.f32 %v8946_v52, %v7519_v31  ;;  %v1670_v38 = vsub.f32 %v8947_v34, %v7533_v18  ;;  %v2322_v18 = vsel %vm1238_vm0, %v7845_v2, 0.0 }
 0x2d8   : > { %2128 = vadd.xlane.f32.xlu1 %v2127_v0  ;;  %v7843_v11 = vpop.xlane.xlu0 %1411  ;;  %v5335_v5 = vpop.eup %5334  ;;  %5350 = vpow2.f32 %v1839_v50  ;;  %v8948_v0 = vld [vmem:[#allocation115_spill] sm:$0xff] }
 0x2d9   : > { %v7849_v58 = vpop.xlane.xlu1 %1600  ;;  %v7853_v54 = vpop.eup %5336  ;;  %5352 = vpow2.f32 %v1841_v55  ;;  %v1843_v50 = vmul.f32 1.442695, %v1669_v57  ;;  %v2412_v52 = vmul.f32 %v5335_v5, %v8948_v0  ;;  %v1845_v5 = vmul.f32 1.442695, %v1670_v38  ;;  %v8952_v0 = vld [vmem:[#allocation49_spill] sm:$0xff]  ;;  %v8954_v38 = vld [vmem:[#allocation14_spill] sm:$0xff] }
 0x2da   : > { %5354 = vpow2.f32 %v1967_v24  ;;  %v2133_v55 = vsel %vm1238_vm0, %v7853_v54, 0.0  ;;  %v8951_v24 = vld [vmem:[#allocation23_spill] sm:$0xff] }
 0x2db   : > { %2131 = vadd.xlane.f32.xlu0 %v2130_v44  ;;  %v5339_v28 = vpop.eup %5338  ;;  %v8950_v44 = vld [vmem:[#allocation100_spill] sm:$0xff]  ;;  %5356 = vpow2.f32 %v1969_v20 }
 0x2dc   : > { %2320 = vadd.xlane.f32.xlu1 %v2319_v3  ;;  %v7859_v31 = vpop.xlane.xlu0 %1603  ;;  %v5341_v36 = vpop.eup %5340  ;;  %v2414_v35 = vmul.f32 %v5339_v28, %v8949_v32  ;;  %v1733_v4 = vsub.f32 %v8950_v44, %v7539_v9  ;;  %v8953_v44 = vld [vmem:[#allocation36_spill] sm:$0xff] }
 0x2dd   : > { %v2045_v33 = vpop.xlane.xlu1 %2044  ;;  %v7863_v60 = vpop.eup %5342  ;;  %v2540_v28 = vmul.f32 %v5341_v36, %v8951_v24  ;;  %v1734_v2 = vsub.f32 %v8953_v44, %v7549_v46  ;;  %v8957_v24 = vld [vmem:[#allocation103_spill] sm:$0xff] }
 0x2de   : > { %v2652_v57 = vpack.c.bf16 %v2414_v35, %v2412_v52  ;;  %5358 = vrcp.f32 %v2045_v33  ;;  %v2136_v35 = vsel %vm1238_vm0, %v7863_v60, 0.0  ;;  %v1971_v52 = vmul.f32 1.442695, %v1733_v4 }
 0x2df   : > { %v5345_v3 = vpop.eup %5344  ;;  %2323 = vadd.xlane.f32.xlu0 %v2322_v18  ;;  %5360 = vpow2.f32 %v1843_v50  ;;  %v1671_v33 = vsub.f32 %v8954_v38, %v7581_v42  ;;  %v1973_v4 = vmul.f32 1.442695, %v1734_v2 }
 0x2e0   : > { %v7871_v34 = vpop.eup %5346  ;;  %2134 = vadd.xlane.f32.xlu1 %v2133_v55  ;;  %v2048_v32 = vpop.xlane.xlu0 %2047  ;;  %v2542_v9 = vmul.f32 %v5345_v3, %v8952_v0  ;;  %4961 = vmatmul.mubr.msk.bf16.gmra.mrb[8].mxu0 %vm1238_vm0, %v2652_v57  ;;  %v8956_v3 = vld [vmem:[#allocation102_spill] sm:$0xff] }
 0x2e1   : > { %v2237_v20 = vpop.xlane.xlu1 %2236  ;;  %5362 = vrcp.f32 %v2048_v32  ;;  %v7882_v55 = vpop.eup %5348  ;;  %v2325_v36 = vsel %vm1238_vm0, %v7871_v34, 0.0  ;;  %v1672_v42 = vsub.f32 %v8956_v3, %v7595_v6  ;;  %v1847_v32 = vmul.f32 1.442695, %v1671_v33 }
 0x2e2   : > { %v2684_v18 = vpack.c.bf16 %v2542_v9, %v2540_v28  ;;  %5364 = vrcp.f32 %v2237_v20  ;;  %v7886_v46 = vpop.eup %5350  ;;  %v1735_v28 = vsub.f32 %v8957_v24, %v7601_v25  ;;  %v2328_v0 = vsel %vm1238_vm0, %v7882_v55, 0.0  ;;  %v8959_v9 = vld [vmem:[#allocation39_spill] sm:$0xff] }
 0x2e3   : > { %2137 = vadd.xlane.f32.xlu0 %v2136_v35  ;;  %8955 = vst [vmem:[#allocation38_spill] sm:$0xff] %v7886_v46  ;;  %5366 = vpow2.f32 %v1845_v5  ;;  %v7897_v5 = vpop.eup %5352  ;;  %v1736_v44 = vsub.f32 %v8959_v9, %v7611_v17  ;;  %v2139_v6 = vsel %vm1238_vm0, %v7886_v46, 0.0  ;;  %v1849_v25 = vmul.f32 1.442695, %v1672_v42  ;;  %v8963_v42 = vld [vmem:[#allocation105_spill] sm:$0xff] }
 0x2e4   : > { %2326 = vadd.xlane.f32.xlu1 %v2325_v36  ;;  %5025 = vmatmul.mubr.msk.bf16.gmra.mrb[8].mxu1 %vm1238_vm0, %v2684_v18  ;;  %v2240_v50 = vpop.xlane.xlu0 %2239  ;;  %8958 = vst [vmem:[#allocation80_spill] sm:$0xff] %v7897_v5  ;;  %v7903_v2 = vpop.eup %5354  ;;  %v1975_v17 = vmul.f32 1.442695, %v1735_v28  ;;  %v2142_v36 = vsel %vm1238_vm0, %v7897_v5, 0.0  ;;  %v8965_v5 = vld [vmem:[#allocation50_spill] sm:$0xff] }
 0x2e5   : > { %5368 = vrcp.f32 %v2240_v50  ;;  %v7891_v57 = vpop.xlane.xlu1 %1414  ;;  %8960 = vst [vmem:[#allocation81_spill] sm:$0xff] %v7903_v2  ;;  %v7907_v35 = vpop.eup %5356  ;;  %v1977_v3 = vmul.f32 1.442695, %v1736_v44  ;;  %v2331_v24 = vsel %vm1238_vm0, %v7903_v2, 0.0 }
 0x2e6   : > { %5370 = vpow2.f32 %v1971_v52  ;;  %8961 = vst [vmem:[#allocation82_spill] sm:$0xff] %v7907_v35  ;;  %v8962_v52 = vld [vmem:[#allocation16_spill] sm:$0xff] }
 0x2e7   : > { %2329 = vadd.xlane.f32.xlu0 %v2328_v0  ;;  %5372 = vpow2.f32 %v1973_v4  ;;  %v1673_v38 = vsub.f32 %v8962_v52, %v7643_v47  ;;  %v1674_v0 = vsub.f32 %v8963_v42, %v7657_v23  ;;  %v2334_v23 = vsel %vm1238_vm0, %v7907_v35, 0.0 }
 0x2e8   : > { %2140 = vadd.xlane.f32.xlu1 %v2139_v6  ;;  %v7905_v20 = vpop.xlane.xlu0 %1417  ;;  %v5359_v18 = vpop.eup %5358  ;;  %5374 = vpow2.f32 %v1847_v32  ;;  %v8964_v6 = vld [vmem:[#allocation120_spill] sm:$0xff] }
 0x2e9   : > { %v7911_v33 = vpop.xlane.xlu1 %1606  ;;  %v7915_v50 = vpop.eup %5360  ;;  %5376 = vpow2.f32 %v1849_v25  ;;  %v1851_v32 = vmul.f32 1.442695, %v1673_v38  ;;  %v2416_v52 = vmul.f32 %v5359_v18, %v8964_v6  ;;  %v1853_v18 = vmul.f32 1.442695, %v1674_v0  ;;  %v8968_v6 = vld [vmem:[#allocation25_spill] sm:$0xff]  ;;  %v8970_v0 = vld [vmem:[#allocation18_spill] sm:$0xff] }
 0x2ea   : > { %5378 = vpow2.f32 %v1975_v17  ;;  %v2145_v25 = vsel %vm1238_vm0, %v7915_v50, 0.0  ;;  %v8967_v17 = vld [vmem:[#allocation51_spill] sm:$0xff] }
 0x2eb   : > { %2143 = vadd.xlane.f32.xlu0 %v2142_v36  ;;  %v5363_v4 = vpop.eup %5362  ;;  %v8966_v36 = vld [vmem:[#allocation106_spill] sm:$0xff]  ;;  %5380 = vpow2.f32 %v1977_v3 }
 0x2ec   : > { %2332 = vadd.xlane.f32.xlu1 %v2331_v24  ;;  %v7921_v47 = vpop.xlane.xlu0 %1609  ;;  %v5365_v9 = vpop.eup %5364  ;;  %v2418_v46 = vmul.f32 %v5363_v4, %v8965_v5  ;;  %v1737_v2 = vsub.f32 %v8966_v36, %v7663_v40  ;;  %v8969_v36 = vld [vmem:[#allocation107_spill] sm:$0xff] }
 0x2ed   : > { %v2051_v28 = vpop.xlane.xlu1 %2050  ;;  %v7925_v44 = vpop.eup %5366  ;;  %v2544_v4 = vmul.f32 %v5365_v9, %v8967_v17  ;;  %v1738_v35 = vsub.f32 %v8969_v36, %v7673_v62  ;;  %v8973_v17 = vld [vmem:[#allocation110_spill] sm:$0xff] }
 0x2ee   : > { %v2653_v38 = vpack.c.bf16 %v2418_v46, %v2416_v52  ;;  %5382 = vrcp.f32 %v2051_v28  ;;  %v2148_v46 = vsel %vm1238_vm0, %v7925_v44, 0.0  ;;  %v1979_v52 = vmul.f32 1.442695, %v1737_v2 }
 0x2ef   : > { %v5369_v24 = vpop.eup %5368  ;;  %2335 = vadd.xlane.f32.xlu0 %v2334_v23  ;;  %5384 = vpow2.f32 %v1851_v32  ;;  %v1675_v28 = vsub.f32 %v8970_v0, %v7705_v15  ;;  %v1981_v2 = vmul.f32 1.442695, %v1738_v35 }
 0x2f0   : > { %v7933_v42 = vpop.eup %5370  ;;  %2146 = vadd.xlane.f32.xlu1 %v2145_v25  ;;  %v2054_v5 = vpop.xlane.xlu0 %2053  ;;  %v2546_v40 = vmul.f32 %v5369_v24, %v8968_v6  ;;  %4964 = vmatprep.mubr.msk.bf16.mxu0 %vm1238_vm0, %v2653_v38  ;;  %v8972_v24 = vld [vmem:[#allocation109_spill] sm:$0xff] }
 0x2f1   : > { %v2243_v3 = vpop.xlane.xlu1 %2242  ;;  %5386 = vrcp.f32 %v2054_v5  ;;  %v7944_v25 = vpop.eup %5372  ;;  %v2337_v9 = vsel %vm1238_vm0, %v7933_v42, 0.0  ;;  %v1676_v15 = vsub.f32 %v8972_v24, %v7719_v41  ;;  %v1855_v5 = vmul.f32 1.442695, %v1675_v28 }
 0x2f2   : > { %v2685_v23 = vpack.c.bf16 %v2546_v40, %v2544_v4  ;;  %5388 = vrcp.f32 %v2243_v3  ;;  %v7948_v62 = vpop.eup %5374  ;;  %v1739_v4 = vsub.f32 %v8973_v17, %v7725_v61  ;;  %v2340_v6 = vsel %vm1238_vm0, %v7944_v25, 0.0  ;;  %v8975_v40 = vld [vmem:[#allocation44_spill] sm:$0xff] }
 0x2f3   : > { %2149 = vadd.xlane.f32.xlu0 %v2148_v46  ;;  %8971 = vst [vmem:[#allocation83_spill] sm:$0xff] %v7948_v62  ;;  %5390 = vpow2.f32 %v1853_v18  ;;  %v7959_v18 = vpop.eup %5376  ;;  %v1740_v36 = vsub.f32 %v8975_v40, %v7735_v59  ;;  %v2151_v41 = vsel %vm1238_vm0, %v7948_v62, 0.0  ;;  %v1857_v61 = vmul.f32 1.442695, %v1676_v15  ;;  %v8979_v15 = vld [vmem:[#allocation113_spill] sm:$0xff] }
 0x2f4   : > { %2338 = vadd.xlane.f32.xlu1 %v2337_v9  ;;  %5028 = vmatprep.mubr.msk.bf16.mxu1 %vm1238_vm0, %v2685_v23  ;;  %v2246_v32 = vpop.xlane.xlu0 %2245  ;;  %8974 = vst [vmem:[#allocation84_spill] sm:$0xff] %v7959_v18  ;;  %v7965_v35 = vpop.eup %5378  ;;  %v1983_v59 = vmul.f32 1.442695, %v1739_v4  ;;  %v2154_v9 = vsel %vm1238_vm0, %v7959_v18, 0.0  ;;  %v8981_v18 = vld [vmem:[#allocation124_spill] sm:$0xff] }
 0x2f5   : > { %5392 = vrcp.f32 %v2246_v32  ;;  %v7953_v38 = vpop.xlane.xlu1 %1420  ;;  %8976 = vst [vmem:[#allocation85_spill] sm:$0xff] %v7965_v35  ;;  %v7969_v46 = vpop.eup %5380  ;;  %v1985_v24 = vmul.f32 1.442695, %v1740_v36  ;;  %v2343_v17 = vsel %vm1238_vm0, %v7965_v35, 0.0 }
 0x2f6   : > { %5394 = vpow2.f32 %v1979_v52  ;;  %8977 = vst [vmem:[#allocation86_spill] sm:$0xff] %v7969_v46  ;;  %v8978_v52 = vld [vmem:[#allocation20_spill] sm:$0xff] }
 0x2f7   : > { %2341 = vadd.xlane.f32.xlu0 %v2340_v6  ;;  %5396 = vpow2.f32 %v1981_v2  ;;  %v1677_v0 = vsub.f32 %v8978_v52, %v7767_v12  ;;  %v1678_v6 = vsub.f32 %v8979_v15, %v7781_v43  ;;  %v2346_v43 = vsel %vm1238_vm0, %v7969_v46, 0.0 }
 0x2f8   : > { %2152 = vadd.xlane.f32.xlu1 %v2151_v41  ;;  %v7967_v3 = vpop.xlane.xlu0 %1423  ;;  %v5383_v23 = vpop.eup %5382  ;;  %5398 = vpow2.f32 %v1855_v5  ;;  %v8980_v41 = vld [vmem:[#allocation123_spill] sm:$0xff] }
 0x2f9   : > { %v7973_v28 = vpop.xlane.xlu1 %1612  ;;  %v7977_v32 = vpop.eup %5384  ;;  %5400 = vpow2.f32 %v1857_v61  ;;  %v1859_v5 = vmul.f32 1.442695, %v1677_v0  ;;  %v2420_v52 = vmul.f32 %v5383_v23, %v8980_v41  ;;  %v1861_v23 = vmul.f32 1.442695, %v1678_v6  ;;  %v8984_v41 = vld [vmem:[#allocation54_spill] sm:$0xff] }
 0x2fa   : > { %5402 = vpow2.f32 %v1983_v59  ;;  %v2157_v61 = vsel %vm1238_vm0, %v7977_v32, 0.0  ;;  %v8983_v59 = vld [vmem:[#allocation27_spill] sm:$0xff]  ;;  %v8986_v6 = vld [vmem:[#allocation22_spill] sm:$0xff] }
 0x2fb   : > { %2155 = vadd.xlane.f32.xlu0 %v2154_v9  ;;  %v5387_v2 = vpop.eup %5386  ;;  %v8982_v9 = vld [vmem:[#allocation114_spill] sm:$0xff]  ;;  %5404 = vpow2.f32 %v1985_v24 }
 0x2fc   : > { %2344 = vadd.xlane.f32.xlu1 %v2343_v17  ;;  %v7983_v12 = vpop.xlane.xlu0 %1615  ;;  %v5389_v40 = vpop.eup %5388  ;;  %v2422_v62 = vmul.f32 %v5387_v2, %v8981_v18  ;;  %v1741_v35 = vsub.f32 %v8982_v9, %v7787_v26  ;;  %v8985_v9 = vld [vmem:[#allocation47_spill] sm:$0xff] }
 0x2fd   : > { %v2057_v4 = vpop.xlane.xlu1 %2056  ;;  %v7987_v36 = vpop.eup %5390  ;;  %v2548_v2 = vmul.f32 %v5389_v40, %v8983_v59  ;;  %v1742_v46 = vsub.f32 %v8985_v9, %v7797_v14  ;;  %v8992_v9 = vld [vmem:[#allocation24_spill] sm:$0xff] }
 0x2fe   : > { %v2654_v0 = vpack.c.bf16 %v2422_v62, %v2420_v52  ;;  %5406 = vrcp.f32 %v2057_v4  ;;  %v2160_v62 = vsel %vm1238_vm0, %v7987_v36, 0.0  ;;  %v1987_v52 = vmul.f32 1.442695, %v1741_v35 }
 0x2ff   : > { %v5393_v17 = vpop.eup %5392  ;;  %2347 = vadd.xlane.f32.xlu0 %v2346_v43  ;;  %5408 = vpow2.f32 %v1859_v5  ;;  %v1679_v4 = vsub.f32 %v8986_v6, %v7829_v63  ;;  %v8988_v5 = vld [vmem:[#allocation117_spill] sm:$0xff]  ;;  %v1989_v63 = vmul.f32 1.442695, %v1742_v46 }
 0x300   : > { %v7995_v15 = vpop.eup %5394  ;;  %2158 = vadd.xlane.f32.xlu1 %v2157_v61  ;;  %v2060_v18 = vpop.xlane.xlu0 %2059  ;;  %v2550_v26 = vmul.f32 %v5393_v17, %v8984_v41  ;;  %4965 = vmatmul.mubr.msk.bf16.gmra.mrb[12].mxu0 %vm1238_vm0, %v2654_v0  ;;  %v1680_v17 = vsub.f32 %v8988_v5, %v7843_v11  ;;  %v8989_v0 = vld [vmem:[#allocation118_spill] sm:$0xff]  ;;  %v8990_v41 = vld [vmem:[#allocation119_spill] sm:$0xff] }
 0x301   : > { %v2249_v24 = vpop.xlane.xlu1 %2248  ;;  %5410 = vrcp.f32 %v2060_v18  ;;  %v8006_v61 = vpop.eup %5396  ;;  %v2349_v40 = vsel %vm1238_vm0, %v7995_v15, 0.0  ;;  %v1743_v18 = vsub.f32 %v8989_v0, %v7849_v58 }
 0x302   : > { %v2686_v43 = vpack.c.bf16 %v2550_v26, %v2548_v2  ;;  %5412 = vrcp.f32 %v2249_v24  ;;  %v8010_v14 = vpop.eup %5398  ;;  %v1863_v2 = vmul.f32 1.442695, %v1679_v4  ;;  %v1744_v26 = vsub.f32 %v8990_v41, %v7859_v31  ;;  %v8993_v4 = vld [vmem:[#allocation121_spill] sm:$0xff]  ;;  %v8994_v41 = vld [vmem:[#allocation122_spill] sm:$0xff] }
 0x303   : > { %2161 = vadd.xlane.f32.xlu0 %v2160_v62  ;;  %8987 = vst [vmem:[#allocation104_spill] sm:$0xff] %v8010_v14  ;;  %5414 = vpow2.f32 %v1861_v23  ;;  %v2352_v23 = vsel %vm1238_vm0, %v8006_v61, 0.0  ;;  %v8023_v11 = vpop.eup %5400  ;;  %v1681_v24 = vsub.f32 %v8992_v9, %v7891_v57  ;;  %v2163_v58 = vsel %vm1238_vm0, %v8010_v14, 0.0 }
 0x304   : > { %2350 = vadd.xlane.f32.xlu1 %v2349_v40  ;;  %5029 = vmatmul.mubr.msk.bf16.gmra.mrb[12].mxu1 %vm1238_vm0, %v2686_v43  ;;  %v2252_v35 = vpop.xlane.xlu0 %2251  ;;  %8991 = vst [vmem:[#allocation40_spill] sm:$0xff] %v8023_v11  ;;  %v8029_v46 = vpop.eup %5402  ;;  %v1865_v62 = vmul.f32 1.442695, %v1680_v17  ;;  %v1991_v31 = vmul.f32 1.442695, %v1743_v18  ;;  %v1682_v43 = vsub.f32 %v8993_v4, %v7905_v20 }
 0x305   : > { %5416 = vrcp.f32 %v2252_v35  ;;  %v8017_v59 = vpop.xlane.xlu1 %1426  ;;  %v8033_v6 = vpop.eup %5404  ;;  %v1993_v5 = vmul.f32 1.442695, %v1744_v26  ;;  %v2166_v35 = vsel %vm1238_vm0, %v8023_v11, 0.0  ;;  %v1867_v17 = vmul.f32 1.442695, %v1681_v24  ;;  %v8996_v11 = vld [vmem:[#allocation56_spill] sm:$0xff] }
 0x306   : > { %5418 = vpow2.f32 %v1987_v52  ;;  %v1869_v26 = vmul.f32 1.442695, %v1682_v43 }
 0x307   : > { %2353 = vadd.xlane.f32.xlu0 %v2352_v23  ;;  %5420 = vpow2.f32 %v1989_v63  ;;  %v1745_v23 = vsub.f32 %v8994_v41, %v7911_v33  ;;  %v2355_v63 = vsel %vm1238_vm0, %v8029_v46, 0.0  ;;  %v8997_v33 = vld [vmem:[#allocation52_spill] sm:$0xff] }
 0x308   : > { %2164 = vadd.xlane.f32.xlu1 %v2163_v58  ;;  %v8031_v52 = vpop.xlane.xlu0 %1429  ;;  %v5407_v57 = vpop.eup %5406  ;;  %5422 = vpow2.f32 %v1863_v2  ;;  %v8995_v58 = vld [vmem:[#allocation127_spill] sm:$0xff] }
 0x309   : > { %v8037_v40 = vpop.xlane.xlu1 %1618  ;;  %v8041_v0 = vpop.eup %5408  ;;  %5424 = vpow2.f32 %v1865_v62  ;;  %v2424_v4 = vmul.f32 %v5407_v57, %v8995_v58  ;;  %v2358_v62 = vsel %vm1238_vm0, %v8033_v6, 0.0 }
 0x30a   : > { %5426 = vpow2.f32 %v1991_v31  ;;  %v2169_v31 = vsel %vm1238_vm0, %v8041_v0, 0.0 }
 0x30b   : > { %2167 = vadd.xlane.f32.xlu0 %v2166_v35  ;;  %v5411_v18 = vpop.eup %5410  ;;  %5428 = vpow2.f32 %v1993_v5  ;;  %v1746_v35 = vsub.f32 %v8997_v33, %v7921_v47  ;;  %v8999_v47 = vld [vmem:[#allocation29_spill] sm:$0xff] }
 0x30c   : > { %2356 = vadd.xlane.f32.xlu1 %v2355_v63  ;;  %v8047_v20 = vpop.xlane.xlu0 %1621  ;;  %v5413_v2 = vpop.eup %5412  ;;  %v2426_v24 = vmul.f32 %v5411_v18, %v8996_v11  ;;  %5430 = vpow2.f32 %v1867_v17  ;;  %v1995_v63 = vmul.f32 1.442695, %v1745_v23  ;;  %v8998_v11 = vld [vmem:[#allocation26_spill] sm:$0xff] }
 0x30d   : > { %v2063_v9 = vpop.xlane.xlu1 %2062  ;;  %v8051_v14 = vpop.eup %5414  ;;  %v1683_v18 = vsub.f32 %v8998_v11, %v7953_v38  ;;  %v2552_v58 = vmul.f32 %v5413_v2, %v8999_v47 }
 0x30e   : > { %v2655_v43 = vpack.c.bf16 %v2426_v24, %v2424_v4  ;;  %5432 = vrcp.f32 %v2063_v9  ;;  %v2172_v23 = vsel %vm1238_vm0, %v8051_v14, 0.0  ;;  %v1997_v4 = vmul.f32 1.442695, %v1746_v35  ;;  %v9000_v24 = vld [vmem:[#allocation125_spill] sm:$0xff] }
 0x30f   : > { %v5417_v41 = vpop.eup %5416  ;;  %2359 = vadd.xlane.f32.xlu0 %v2358_v62  ;;  %5434 = vpow2.f32 %v1869_v26  ;;  %v1684_v62 = vsub.f32 %v9000_v24, %v7967_v3  ;;  %v1871_v26 = vmul.f32 1.442695, %v1683_v18 }
 0x310   : > { %v8059_v57 = vpop.eup %5418  ;;  %2170 = vadd.xlane.f32.xlu1 %v2169_v31  ;;  %v2066_v5 = vpop.xlane.xlu0 %2065  ;;  %v2554_v33 = vmul.f32 %v5417_v41, %v7445_v29  ;;  %4968 = vmatprep.mubr.msk.bf16.mxu0 %vm1238_vm0, %v2655_v43  ;;  %v9001_v41 = vld [vmem:[#allocation126_spill] sm:$0xff] }
 0x311   : > { %v2255_v17 = vpop.xlane.xlu1 %2254  ;;  %5436 = vrcp.f32 %v2066_v5  ;;  %v8070_v9 = vpop.eup %5420  ;;  %v2361_v29 = vsel %vm1238_vm0, %v8059_v57, 0.0  ;;  %v1747_v31 = vsub.f32 %v9001_v41, %v7973_v28  ;;  %v1873_v11 = vmul.f32 1.442695, %v1684_v62  ;;  %v9002_v5 = vld [vmem:[#allocation55_spill] sm:$0xff] }
 0x312   : > { %v2687_v38 = vpack.c.bf16 %v2554_v33, %v2552_v58  ;;  %5438 = vrcp.f32 %v2255_v17  ;;  %v8074_v2 = vpop.eup %5422  ;;  %v1748_v47 = vsub.f32 %v9002_v5, %v7983_v12  ;;  %v1685_v62 = vsub.f32 %v7452_v48, %v8017_v59 }
 0x313   : > { %2173 = vadd.xlane.f32.xlu0 %v2172_v23  ;;  %5440 = vpow2.f32 %v1995_v63  ;;  %v8079_v43 = vpop.eup %5424  ;;  %v2364_v63 = vsel %vm1238_vm0, %v8070_v9, 0.0  ;;  %v2175_v28 = vsel %vm1238_vm0, %v8074_v2, 0.0  ;;  %v1999_v33 = vmul.f32 1.442695, %v1747_v31 }
 0x314   : > { %2362 = vadd.xlane.f32.xlu1 %v2361_v29  ;;  %5032 = vmatprep.mubr.msk.bf16.mxu1 %vm1238_vm0, %v2687_v38  ;;  %v2258_v3 = vpop.xlane.xlu0 %2257  ;;  %v8085_v18 = vpop.eup %5426  ;;  %v2001_v24 = vmul.f32 1.442695, %v1748_v47  ;;  %v2178_v38 = vsel %vm1238_vm0, %v8079_v43, 0.0  ;;  %v1686_v31 = vsub.f32 %v7457_v45, %v8031_v52 }
 0x315   : > { %5442 = vrcp.f32 %v2258_v3  ;;  %v2069_v35 = vpop.xlane.xlu1 %2068  ;;  %v8089_v58 = vpop.eup %5428 }
 0x316   : > { %5444 = vpow2.f32 %v1997_v4  ;;  %v8091_v23 = vpop.eup %5430 }
 0x317   : > { %5446 = vrcp.f32 %v2069_v35  ;;  %2365 = vadd.xlane.f32.xlu0 %v2364_v63  ;;  %v1875_v63 = vmul.f32 1.442695, %v1685_v62  ;;  %v2181_v52 = vsel %vm1238_vm0, %v8091_v23, 0.0 }
 0x318   : > { %5448 = vpow2.f32 %v1871_v26  ;;  %2176 = vadd.xlane.f32.xlu1 %v2175_v28  ;;  %v2072_v17 = vpop.xlane.xlu0 %2071  ;;  %v5433_v4 = vpop.eup %5432  ;;  %v2367_v26 = vsel %vm1238_vm0, %v8085_v18, 0.0  ;;  %v9004_v28 = vld [vmem:[#allocation28_spill] sm:$0xff] }
 0x319   : > { %5450 = vrcp.f32 %v2072_v17  ;;  %v2261_v12 = vpop.xlane.xlu1 %2260  ;;  %v8097_v29 = vpop.eup %5434  ;;  %v2428_v59 = vmul.f32 %v5433_v4, %v7489_v27  ;;  %v1749_v17 = vsub.f32 %v9004_v28, %v8037_v40  ;;  %v1877_v4 = vmul.f32 1.442695, %v1686_v31 }
 0x31a   : > { %5452 = vpow2.f32 %v1873_v11  ;;  %v9003_v11 = vld [vmem:[#allocation58_spill] sm:$0xff]  ;;  %v2184_v31 = vsel %vm1238_vm0, %v8097_v29, 0.0 }
 0x31b   : > { %5454 = vrcp.f32 %v2261_v12  ;;  %2179 = vadd.xlane.f32.xlu0 %v2178_v38  ;;  %v5437_v41 = vpop.eup %5436  ;;  %v9005_v38 = vld [vmem:[#allocation57_spill] sm:$0xff] }
 0x31c   : > { %5456 = vpow2.f32 %v1999_v33  ;;  %2368 = vadd.xlane.f32.xlu1 %v2367_v26  ;;  %v2264_v3 = vpop.xlane.xlu0 %2263  ;;  %v5439_v35 = vpop.eup %5438  ;;  %v2430_v5 = vmul.f32 %v5437_v41, %v9003_v11  ;;  %v2370_v33 = vsel %vm1238_vm0, %v8089_v58, 0.0  ;;  %v9006_v26 = vld [vmem:[#allocation59_spill] sm:$0xff]  ;;  %v9007_v41 = vld [vmem:[#allocation60_spill] sm:$0xff] }
 0x31d   : > { %5458 = vrcp.f32 %v2264_v3  ;;  %v2075_v48 = vpop.xlane.xlu1 %2074  ;;  %v8105_v47 = vpop.eup %5440  ;;  %v2556_v40 = vmul.f32 %v5439_v35, %v9006_v26 }
 0x31e   : > { %5460 = vpow2.f32 %v2001_v24  ;;  %v2656_v12 = vpack.c.bf16 %v2430_v5, %v2428_v59  ;;  %v1750_v24 = vsub.f32 %v9005_v38, %v8047_v20  ;;  %v2003_v59 = vmul.f32 1.442695, %v1749_v17 }
 0x31f   : > { %v5443_v45 = vpop.eup %5442  ;;  %5462 = vrcp.f32 %v2075_v48  ;;  %2371 = vadd.xlane.f32.xlu0 %v2370_v33  ;;  %v2373_v35 = vsel %vm1238_vm0, %v8105_v47, 0.0 }
 0x320   : > { %v8113_v27 = vpop.eup %5444  ;;  %2182 = vadd.xlane.f32.xlu1 %v2181_v52  ;;  %v2078_v62 = vpop.xlane.xlu0 %2077  ;;  %v2558_v3 = vmul.f32 %v5443_v45, %v9007_v41  ;;  %4969 = vmatmul.mubr.msk.bf16.gmra.mrb[16].mxu0 %vm1238_vm0, %v2656_v12  ;;  %v2005_v45 = vmul.f32 1.442695, %v1750_v24  ;;  %v9009_v12 = vld [vmem:[#allocation62_spill] sm:$0xff] }
 0x321   : > { %v5447_v11 = vpop.eup %5446  ;;  %5464 = vrcp.f32 %v2078_v62  ;;  %v2267_v48 = vpop.xlane.xlu1 %2266  ;;  %v2376_v41 = vsel %vm1238_vm0, %v8113_v27, 0.0 }
 0x322   : > { %v8120_v28 = vpop.eup %5448  ;;  %5466 = vpow2.f32 %v1875_v63  ;;  %v2688_v5 = vpack.c.bf16 %v2558_v3, %v2556_v40  ;;  %v9008_v63 = vld [vmem:[#allocation61_spill] sm:$0xff] }
 0x323   : > { %v5451_v20 = vpop.eup %5450  ;;  %5468 = vrcp.f32 %v2267_v48  ;;  %2185 = vadd.xlane.f32.xlu0 %v2184_v31  ;;  %v2432_v17 = vmul.f32 %v5447_v11, %v9008_v63  ;;  %v2187_v24 = vsel %vm1238_vm0, %v8120_v28, 0.0  ;;  %v9010_v31 = vld [vmem:[#allocation63_spill] sm:$0xff] }
 0x324   : > { %v8126_v33 = vpop.eup %5452  ;;  %5470 = vpow2.f32 %v1877_v4  ;;  %2374 = vadd.xlane.f32.xlu1 %v2373_v35  ;;  %5033 = vmatmul.mubr.msk.bf16.gmra.mrb[16].mxu1 %vm1238_vm0, %v2688_v5  ;;  %v2270_v52 = vpop.xlane.xlu0 %2269  ;;  %v2434_v38 = vmul.f32 %v5451_v20, %v9009_v12 }
 0x325   : > { %v5455_v62 = vpop.eup %5454  ;;  %5472 = vrcp.f32 %v2270_v52  ;;  %v2081_v26 = vpop.xlane.xlu1 %2080  ;;  %v2190_v63 = vsel %vm1238_vm0, %v8126_v33, 0.0 }
 0x326   : > { %v8131_v40 = vpop.eup %5456  ;;  %5474 = vpow2.f32 %v2003_v59  ;;  %v2657_v3 = vpack.c.bf16 %v2434_v38, %v2432_v17  ;;  %v2560_v5 = vmul.f32 %v5455_v62, %v9010_v31  ;;  %v9011_v59 = vld [vmem:[#allocation64_spill] sm:$0xff] }
 0x327   : > { %v5459_v4 = vpop.eup %5458  ;;  %5476 = vrcp.f32 %v2081_v26  ;;  %2377 = vadd.xlane.f32.xlu0 %v2376_v41 }
 0x328   : > { %v8137_v48 = vpop.eup %5460  ;;  %5478 = vpow2.f32 %v2005_v45  ;;  %2188 = vadd.xlane.f32.xlu1 %v2187_v24  ;;  %4972 = vmatprep.mubr.msk.bf16.mxu0 %vm1238_vm0, %v2657_v3  ;;  %v2084_v11 = vpop.xlane.xlu0 %2083  ;;  %v2562_v20 = vmul.f32 %v5459_v4, %v9011_v59  ;;  %v2379_v45 = vsel %vm1238_vm0, %v8131_v40, 0.0 }
 0x329   : > { %v5463_v35 = vpop.eup %5462  ;;  %5480 = vrcp.f32 %v2084_v11  ;;  %v2273_v52 = vpop.xlane.xlu1 %2272  ;;  %v2382_v11 = vsel %vm1238_vm0, %v8137_v48, 0.0 }
 0x32a   : > { %v2689_v17 = vpack.c.bf16 %v2562_v20, %v2560_v5  ;;  %5482 = vrcp.f32 %v2273_v52  ;;  %v2436_v26 = vmul.f32 %v5463_v35, %v7543_v53  ;;  %v9012_v35 = vld [vmem:[#allocation65_spill] sm:$0xff] }
 0x32b   : > { %v5465_v12 = vpop.eup %5464  ;;  %2191 = vadd.xlane.f32.xlu0 %v2190_v63 }
 0x32c   : > { %v8146_v38 = vpop.eup %5466  ;;  %2380 = vadd.xlane.f32.xlu1 %v2379_v45  ;;  %5036 = vmatprep.mubr.msk.bf16.mxu1 %vm1238_vm0, %v2689_v17  ;;  %v2276_v62 = vpop.xlane.xlu0 %2275  ;;  %v2438_v41 = vmul.f32 %v5465_v12, %v7553_v22 }
 0x32d   : > { %v5469_v3 = vpop.eup %5468  ;;  %5484 = vrcp.f32 %v2276_v62  ;;  %v2087_v4 = vpop.xlane.xlu1 %2086  ;;  %v2193_v59 = vsel %vm1238_vm0, %v8146_v38, 0.0 }
 0x32e   : > { %v8151_v24 = vpop.eup %5470  ;;  %v2658_v31 = vpack.c.bf16 %v2438_v41, %v2436_v26  ;;  %5486 = vrcp.f32 %v2087_v4  ;;  %v2564_v22 = vmul.f32 %v5469_v3, %v7561_v30  ;;  %v9013_v3 = vld [vmem:[#allocation66_spill] sm:$0xff] }
 0x32f   : > { %v5473_v5 = vpop.eup %5472  ;;  %2383 = vadd.xlane.f32.xlu0 %v2382_v11  ;;  %v2196_v45 = vsel %vm1238_vm0, %v8151_v24, 0.0  ;;  %v9014_v11 = vld [vmem:[#allocation67_spill] sm:$0xff] }
 0x330   : > { %v8157_v20 = vpop.eup %5474  ;;  %2194 = vadd.xlane.f32.xlu1 %v2193_v59  ;;  %4973 = vmatmul.mubr.msk.bf16.gmra.mrb[20].mxu0 %vm1238_vm0, %v2658_v31  ;;  %v2090_v53 = vpop.xlane.xlu0 %2089  ;;  %v2566_v52 = vmul.f32 %v5473_v5, %v9012_v35 }
 0x331   : > { %v5477_v63 = vpop.eup %5476  ;;  %5488 = vrcp.f32 %v2090_v53  ;;  %v2279_v17 = vpop.xlane.xlu1 %2278  ;;  %v2385_v41 = vsel %vm1238_vm0, %v8157_v20, 0.0 }
 0x332   : > { %v8162_v12 = vpop.eup %5478  ;;  %v2690_v62 = vpack.c.bf16 %v2566_v52, %v2564_v22  ;;  %5490 = vrcp.f32 %v2279_v17  ;;  %v2440_v4 = vmul.f32 %v5477_v63, %v9013_v3  ;;  %v9015_v17 = vld [vmem:[#allocation68_spill] sm:$0xff] }
 0x333   : > { %v5481_v26 = vpop.eup %5480  ;;  %2197 = vadd.xlane.f32.xlu0 %v2196_v45  ;;  %v2388_v53 = vsel %vm1238_vm0, %v8162_v12, 0.0 }
 0x334   : > { %2386 = vadd.xlane.f32.xlu1 %v2385_v41  ;;  %5037 = vmatmul.mubr.msk.bf16.gmra.mrb[20].mxu1 %vm1238_vm0, %v2690_v62  ;;  %v2282_v30 = vpop.xlane.xlu0 %2281  ;;  %v2442_v31 = vmul.f32 %v5481_v26, %v9014_v11  ;;  %v5483_v5 = vpop.eup %5482  ;;  %v9016_v62 = vld [vmem:[#allocation45_spill] sm:$0xff] }
 0x335   : > { %5492 = vrcp.f32 %v2282_v30  ;;  %v2093_v59 = vpop.xlane.xlu1 %2092  ;;  %v2568_v45 = vmul.f32 %v5483_v5, %v9015_v17 }
 0x336   : > { %v2659_v22 = vpack.c.bf16 %v2442_v31, %v2440_v4  ;;  %5494 = vrcp.f32 %v2093_v59 }
 0x337   : > { %v5485_v35 = vpop.eup %5484  ;;  %2389 = vadd.xlane.f32.xlu0 %v2388_v53 }
 0x338   : > { %4976 = vmatprep.mubr.msk.bf16.mxu0 %vm1238_vm0, %v2659_v22  ;;  %v2096_v52 = vpop.xlane.xlu0 %2095  ;;  %v2570_v41 = vmul.f32 %v5485_v35, %v9016_v62  ;;  %v5487_v63 = vpop.eup %5486 }
 0x339   : > { %5496 = vrcp.f32 %v2096_v52  ;;  %v2285_v26 = vpop.xlane.xlu1 %2284  ;;  %v2444_v4 = vmul.f32 %v5487_v63, %v7605_v16  ;;  %v9017_v63 = vld [vmem:[#allocation69_spill] sm:$0xff] }
 0x33a   : > { %v2691_v3 = vpack.c.bf16 %v2570_v41, %v2568_v45  ;;  %5498 = vrcp.f32 %v2285_v26 }
 0x33b   : > { %v5489_v30 = vpop.eup %5488 }
 0x33c   : > { %5040 = vmatprep.mubr.msk.bf16.mxu1 %vm1238_vm0, %v2691_v3  ;;  %v2288_v11 = vpop.xlane.xlu0 %2287  ;;  %v2446_v31 = vmul.f32 %v5489_v30, %v7615_v37  ;;  %v5491_v59 = vpop.eup %5490  ;;  %v9018_v3 = vld [vmem:[#allocation70_spill] sm:$0xff] }
 0x33d   : > { %5500 = vrcp.f32 %v2288_v11  ;;  %v2099_v53 = vpop.xlane.xlu1 %2098  ;;  %v2572_v52 = vmul.f32 %v5491_v59, %v7623_v8  ;;  %v9019_v59 = vld [vmem:[#allocation98_spill] sm:$0xff] }
 0x33e   : > { %v2660_v22 = vpack.c.bf16 %v2446_v31, %v2444_v4  ;;  %5502 = vrcp.f32 %v2099_v53 }
 0x33f   : > { %v5493_v5 = vpop.eup %5492 }
 0x340   : > { %4977 = vmatmul.mubr.msk.bf16.gmra.mrb[24].mxu0 %vm1238_vm0, %v2660_v22  ;;  %v2102_v35 = vpop.xlane.xlu0 %2101  ;;  %v2574_v17 = vmul.f32 %v5493_v5, %v7634_v7  ;;  %v5495_v45 = vpop.eup %5494  ;;  %v9020_v22 = vld [vmem:[#allocation34_spill] sm:$0xff] }
 0x341   : > { %5504 = vrcp.f32 %v2102_v35  ;;  %v2291_v62 = vpop.xlane.xlu1 %2290  ;;  %v2448_v26 = vmul.f32 %v5495_v45, %v9017_v63 }
 0x342   : > { %v2692_v41 = vpack.c.bf16 %v2574_v17, %v2572_v52  ;;  %5506 = vrcp.f32 %v2291_v62 }
 0x343   : > { %v5497_v16 = vpop.eup %5496 }
 0x344   : > { %5041 = vmatmul.mubr.msk.bf16.gmra.mrb[24].mxu1 %vm1238_vm0, %v2692_v41  ;;  %v2294_v37 = vpop.xlane.xlu0 %2293  ;;  %v2450_v30 = vmul.f32 %v5497_v16, %v9018_v3  ;;  %v5499_v11 = vpop.eup %5498 }
 0x345   : > { %5508 = vrcp.f32 %v2294_v37  ;;  %v2105_v4 = vpop.xlane.xlu1 %2104  ;;  %v2576_v53 = vmul.f32 %v5499_v11, %v9019_v59 }
 0x346   : > { %v2661_v31 = vpack.c.bf16 %v2450_v30, %v2448_v26  ;;  %5510 = vrcp.f32 %v2105_v4  ;;  %v9021_v4 = vld [vmem:[#allocation71_spill] sm:$0xff] }
 0x347   : > { %v5501_v8 = vpop.eup %5500 }
 0x348   : > { %4980 = vmatprep.mubr.msk.bf16.mxu0 %vm1238_vm0, %v2661_v31  ;;  %v2108_v7 = vpop.xlane.xlu0 %2107  ;;  %v2578_v5 = vmul.f32 %v5501_v8, %v9020_v22  ;;  %v5503_v35 = vpop.eup %5502 }
 0x349   : > { %5512 = vrcp.f32 %v2108_v7  ;;  %v2297_v52 = vpop.xlane.xlu1 %2296  ;;  %v2452_v41 = vmul.f32 %v5503_v35, %v7667_v19 }
 0x34a   : > { %v2693_v17 = vpack.c.bf16 %v2578_v5, %v2576_v53  ;;  %5514 = vrcp.f32 %v2297_v52  ;;  %v9022_v53 = vld [vmem:[#allocation35_spill] sm:$0xff]  ;;  %v9023_v5 = vld [vmem:[#allocation13_spill] sm:$0xff] }
 0x34b   : > { %v5505_v45 = vpop.eup %5504 }
 0x34c   : > { %5044 = vmatprep.mubr.msk.bf16.mxu1 %vm1238_vm0, %v2693_v17  ;;  %v2300_v62 = vpop.xlane.xlu0 %2299  ;;  %v2454_v16 = vmul.f32 %v5505_v45, %v7677_v10  ;;  %v5507_v37 = vpop.eup %5506 }
 0x34d   : > { %5516 = vrcp.f32 %v2300_v62  ;;  %v2111_v63 = vpop.xlane.xlu1 %2110  ;;  %v2580_v11 = vmul.f32 %v5507_v37, %v7685_v39  ;;  %v9025_v37 = vld [vmem:[#allocation73_spill] sm:$0xff] }
 0x34e   : > { %v2662_v26 = vpack.c.bf16 %v2454_v16, %v2452_v41  ;;  %5518 = vrcp.f32 %v2111_v63  ;;  %v9024_v41 = vld [vmem:[#allocation72_spill] sm:$0xff] }
 0x34f   : > { %v5509_v3 = vpop.eup %5508 }
 0x350   : > { %4981 = vmatmul.mubr.msk.bf16.gmra.mrb[28].mxu0 %vm1238_vm0, %v2662_v26  ;;  %v2114_v30 = vpop.xlane.xlu0 %2113  ;;  %v2582_v31 = vmul.f32 %v5509_v3, %v9021_v4  ;;  %v5511_v8 = vpop.eup %5510 }
 0x351   : > { %5520 = vrcp.f32 %v2114_v30  ;;  %v2303_v7 = vpop.xlane.xlu1 %2302  ;;  %v2456_v22 = vmul.f32 %v5511_v8, %v9022_v53 }
 0x352   : > { %v2694_v59 = vpack.c.bf16 %v2582_v31, %v2580_v11  ;;  %5522 = vrcp.f32 %v2303_v7 }
 0x353   : > { %v5513_v19 = vpop.eup %5512 }
 0x354   : > { %5045 = vmatmul.mubr.msk.bf16.gmra.mrb[28].mxu1 %vm1238_vm0, %v2694_v59  ;;  %v2306_v10 = vpop.xlane.xlu0 %2305  ;;  %v2458_v35 = vmul.f32 %v5513_v19, %v9023_v5  ;;  %v5515_v52 = vpop.eup %5514 }
 0x355   : > { %5524 = vrcp.f32 %v2306_v10  ;;  %v2117_v17 = vpop.xlane.xlu1 %2116  ;;  %v2584_v16 = vmul.f32 %v5515_v52, %v9024_v41 }
 0x356   : > { %v2663_v45 = vpack.c.bf16 %v2458_v35, %v2456_v22  ;;  %5526 = vrcp.f32 %v2117_v17  ;;  %v9026_v22 = vld [vmem:[#allocation74_spill] sm:$0xff]  ;;  %v9027_v35 = vld [vmem:[#allocation75_spill] sm:$0xff] }
 0x357   : > { %v5517_v39 = vpop.eup %5516 }
 0x358   : > { %4984 = vmatprep.mubr.msk.bf16.mxu0 %vm1238_vm0, %v2663_v45  ;;  %v2120_v62 = vpop.xlane.xlu0 %2119  ;;  %v2586_v63 = vmul.f32 %v5517_v39, %v9025_v37  ;;  %v5519_v26 = vpop.eup %5518 }
 0x359   : > { %5528 = vrcp.f32 %v2120_v62  ;;  %v2309_v3 = vpop.xlane.xlu1 %2308  ;;  %v2460_v31 = vmul.f32 %v5519_v26, %v7729_v49  ;;  %v9028_v62 = vld [vmem:[#allocation76_spill] sm:$0xff] }
 0x35a   : > { %v2695_v30 = vpack.c.bf16 %v2586_v63, %v2584_v16  ;;  %5530 = vrcp.f32 %v2309_v3  ;;  %v9029_v16 = vld [vmem:[#allocation116_spill] sm:$0xff] }
 0x35b   : > { %v5521_v11 = vpop.eup %5520 }
 0x35c   : > { %5048 = vmatprep.mubr.msk.bf16.mxu1 %vm1238_vm0, %v2695_v30  ;;  %v2312_v4 = vpop.xlane.xlu0 %2311  ;;  %v2462_v8 = vmul.f32 %v5521_v11, %v7739_v51  ;;  %v5523_v7 = vpop.eup %5522 }
 0x35d   : > { %5532 = vrcp.f32 %v2312_v4  ;;  %v2123_v59 = vpop.xlane.xlu1 %2122  ;;  %v2588_v5 = vmul.f32 %v5523_v7, %v9026_v22  ;;  %v9030_v4 = vld [vmem:[#allocation77_spill] sm:$0xff] }
 0x35e   : > { %v2664_v19 = vpack.c.bf16 %v2462_v8, %v2460_v31  ;;  %5534 = vrcp.f32 %v2123_v59  ;;  %v9031_v8 = vld [vmem:[#allocation78_spill] sm:$0xff] }
 0x35f   : > { %v5525_v10 = vpop.eup %5524 }
 0x360   : > { %4985 = vmatmul.mubr.msk.bf16.gmra.mrb[32].mxu0 %vm1238_vm0, %v2664_v19  ;;  %v2126_v53 = vpop.xlane.xlu0 %2125  ;;  %v2590_v52 = vmul.f32 %v5525_v10, %v9027_v35  ;;  %v5527_v17 = vpop.eup %5526 }
 0x361   : > { %5536 = vrcp.f32 %v2126_v53  ;;  %v2315_v45 = vpop.xlane.xlu1 %2314  ;;  %v2464_v41 = vmul.f32 %v5527_v17, %v9028_v62 }
 0x362   : > { %v2696_v39 = vpack.c.bf16 %v2590_v52, %v2588_v5  ;;  %5538 = vrcp.f32 %v2315_v45 }
 0x363   : > { %v5529_v49 = vpop.eup %5528 }
 0x364   : > { %5049 = vmatmul.mubr.msk.bf16.gmra.mrb[32].mxu1 %vm1238_vm0, %v2696_v39  ;;  %v2318_v51 = vpop.xlane.xlu0 %2317  ;;  %v2466_v37 = vmul.f32 %v5529_v49, %v9029_v16  ;;  %v5531_v63 = vpop.eup %5530 }
 0x365   : > { %5540 = vrcp.f32 %v2318_v51  ;;  %v2129_v26 = vpop.xlane.xlu1 %2128  ;;  %v2592_v31 = vmul.f32 %v5531_v63, %v9030_v4 }
 0x366   : > { %v2665_v3 = vpack.c.bf16 %v2466_v37, %v2464_v41  ;;  %5542 = vrcp.f32 %v2129_v26  ;;  %v9032_v26 = vld [vmem:[#allocation101_spill] sm:$0xff] }
 0x367   : > { %v5533_v30 = vpop.eup %5532 }
 0x368   : > { %4988 = vmatprep.mubr.msk.bf16.mxu0 %vm1238_vm0, %v2665_v3  ;;  %v2132_v11 = vpop.xlane.xlu0 %2131  ;;  %v2594_v7 = vmul.f32 %v5533_v30, %v9031_v8  ;;  %v5535_v59 = vpop.eup %5534  ;;  %v9033_v30 = vld [vmem:[#allocation37_spill] sm:$0xff] }
 0x369   : > { %5544 = vrcp.f32 %v2132_v11  ;;  %v2321_v19 = vpop.xlane.xlu1 %2320  ;;  %v2468_v5 = vmul.f32 %v5535_v59, %v7791_v21 }
 0x36a   : > { %v2697_v10 = vpack.c.bf16 %v2594_v7, %v2592_v31  ;;  %5546 = vrcp.f32 %v2321_v19 }
 0x36b   : > { %v5537_v53 = vpop.eup %5536 }
 0x36c   : > { %5052 = vmatprep.mubr.msk.bf16.mxu1 %vm1238_vm0, %v2697_v10  ;;  %v2324_v22 = vpop.xlane.xlu0 %2323  ;;  %v2470_v35 = vmul.f32 %v5537_v53, %v7801_v56  ;;  %v5539_v52 = vpop.eup %5538 }
 0x36d   : > { %5548 = vrcp.f32 %v2324_v22  ;;  %v2135_v17 = vpop.xlane.xlu1 %2134  ;;  %v2596_v51 = vmul.f32 %v5539_v52, %v7809_v13 }
 0x36e   : > { %v2666_v45 = vpack.c.bf16 %v2470_v35, %v2468_v5  ;;  %5550 = vrcp.f32 %v2135_v17  ;;  %v9034_v35 = vld [vmem:[#allocation79_spill] sm:$0xff] }
 0x36f   : > { %v5541_v39 = vpop.eup %5540  ;;  %v9035_v17 = vld [vmem:[#allocation15_spill] sm:$0xff] }
 0x370   : > { %4989 = vmatmul.mubr.msk.bf16.gmra.mrb[36].mxu0 %vm1238_vm0, %v2666_v45  ;;  %v2138_v49 = vpop.xlane.xlu0 %2137  ;;  %v2598_v62 = vmul.f32 %v5541_v39, %v7820_v1  ;;  %v5543_v41 = vpop.eup %5542 }
 0x371   : > { %5552 = vrcp.f32 %v2138_v49  ;;  %v2327_v21 = vpop.xlane.xlu1 %2326  ;;  %v2472_v3 = vmul.f32 %v5543_v41, %v9032_v26 }
 0x372   : > { %v2698_v16 = vpack.c.bf16 %v2598_v62, %v2596_v51  ;;  %5554 = vrcp.f32 %v2327_v21 }
 0x373   : > { %v5545_v56 = vpop.eup %5544  ;;  %v4954_v37 = vpop.f32.mrb[0].mxu0 }
 0x374   : > { %5053 = vmatmul.mubr.msk.bf16.gmra.mrb[36].mxu1 %vm1238_vm0, %v2698_v16  ;;  %v2330_v63 = vpop.xlane.xlu0 %2329  ;;  %v2474_v11 = vmul.f32 %v5545_v56, %v9033_v30  ;;  %v5547_v13 = vpop.eup %5546 }
 0x375   : > { %v2940_v4 = vpop.f32.mrb[1].mxu0  ;;  %5556 = vrcp.f32 %v2330_v63  ;;  %v2141_v1 = vpop.xlane.xlu1 %2140  ;;  %v2600_v52 = vmul.f32 %v5547_v13, %v9034_v35 }
 0x376   : > { %v4955_v31 = vpop.f32.mrb[2].mxu0  ;;  %v2667_v8 = vpack.c.bf16 %v2474_v11, %v2472_v3  ;;  %5558 = vrcp.f32 %v2141_v1 }
 0x377   : > { %v5549_v7 = vpop.eup %5548  ;;  %v4510_v59 = vpack.c.bf16 %v4955_v31, %v4954_v37  ;;  %v2943_v19 = vpop.f32.mrb[3].mxu0 }
 0x378   : > { %v5018_v10 = vpop.f32.mrb[0].mxu1  ;;  %v4505_v53 = vpack.c.bf16 %v2943_v19, %v2940_v4  ;;  %4992 = vmatprep.mubr.msk.bf16.mxu0 %vm1238_vm0, %v2667_v8  ;;  %v2144_v5 = vpop.xlane.xlu0 %2143  ;;  %v2602_v45 = vmul.f32 %v5549_v7, %v9035_v17  ;;  %v9036_v19 = vld [vmem:[#allocation38_spill] sm:$0xff]  ;;  %v9038_v17 = vld [vmem:[#allocation81_spill] sm:$0xff] }
 0x379   : > { %v3196_v22 = vpop.f32.mrb[1].mxu1  ;;  %v5551_v39 = vpop.eup %5550  ;;  %4822 = vst [vmem:[%s8227_s29 + $0x8] sm:$0xff] %v4510_v59   ;;  %5560 = vrcp.f32 %v2144_v5 }
 0x37a   : > { %v2333_v49 = vpop.xlane.xlu1 %2332  ;;  %v5019_v51 = vpop.f32.mrb[2].mxu1  ;;  %4506 = vst [vmem:[%s8227_s29] sm:$0xff] %v4505_v53   ;;  %v2699_v21 = vpack.c.bf16 %v2602_v45, %v2600_v52  ;;  %v2476_v63 = vmul.f32 %v5551_v39, %v7853_v54  ;;  %v9037_v53 = vld [vmem:[#allocation80_spill] sm:$0xff]  ;;  %v9039_v39 = vld [vmem:[#allocation82_spill] sm:$0xff] }
 0x37b   : > { %v4670_v62 = vpack.c.bf16 %v5019_v51, %v5018_v10  ;;  %v3199_v41 = vpop.f32.mrb[3].mxu1  ;;  %v5553_v16 = vpop.eup %5552  ;;  %5562 = vrcp.f32 %v2333_v49 }
 0x37c   : > { %v4665_v56 = vpack.c.bf16 %v3199_v41, %v3196_v22  ;;  %5056 = vmatprep.mubr.msk.bf16.mxu1 %vm1238_vm0, %v2699_v21  ;;  %v2336_v37 = vpop.xlane.xlu0 %2335  ;;  %v2478_v26 = vmul.f32 %v5553_v16, %v7863_v60  ;;  %v5555_v3 = vpop.eup %5554 }
 0x37d   : > { %4854 = vst [vmem:[%s8227_s29 + $0x108] sm:$0xff] %v4670_v62   ;;  %5564 = vrcp.f32 %v2336_v37  ;;  %v2604_v1 = vmul.f32 %v5555_v3, %v7871_v34 }
 0x37e   : > { %4853 = vst [vmem:[%s8227_s29 + $0x100] sm:$0xff] %v4665_v56   ;;  %v2147_v30 = vpop.xlane.xlu1 %2146  ;;  %v2668_v11 = vpack.c.bf16 %v2478_v26, %v2476_v63 }
 0x37f   : > { %v5557_v13 = vpop.eup %5556  ;;  %5566 = vrcp.f32 %v2147_v30 }
 0x380   : > { %4993 = vmatmul.mubr.msk.bf16.gmra.mrb[40].mxu0 %vm1238_vm0, %v2668_v11  ;;  %v2150_v4 = vpop.xlane.xlu0 %2149  ;;  %v2606_v31 = vmul.f32 %v5557_v13, %v7882_v55  ;;  %v5559_v8 = vpop.eup %5558 }
 0x381   : > { %5568 = vrcp.f32 %v2150_v4  ;;  %v2480_v10 = vmul.f32 %v5559_v8, %v9036_v19 }
 0x382   : > { %v2339_v7 = vpop.xlane.xlu1 %2338  ;;  %v2700_v54 = vpack.c.bf16 %v2606_v31, %v2604_v1 }
 0x383   : > { %v5561_v59 = vpop.eup %5560  ;;  %5570 = vrcp.f32 %v2339_v7 }
 0x384   : > { %5057 = vmatmul.mubr.msk.bf16.gmra.mrb[40].mxu1 %vm1238_vm0, %v2700_v54  ;;  %v2342_v60 = vpop.xlane.xlu0 %2341  ;;  %v2482_v22 = vmul.f32 %v5561_v59, %v9037_v53  ;;  %v9040_v54 = vld [vmem:[#allocation83_spill] sm:$0xff] }
 0x385   : > { %v5563_v5 = vpop.eup %5562  ;;  %5572 = vrcp.f32 %v2342_v60  ;;  %v9041_v60 = vld [vmem:[#allocation84_spill] sm:$0xff] }
 0x386   : > { %v2153_v35 = vpop.xlane.xlu1 %2152  ;;  %v2669_v52 = vpack.c.bf16 %v2482_v22, %v2480_v10  ;;  %v2608_v45 = vmul.f32 %v5563_v5, %v9038_v17 }
 0x387   : > { %v5565_v34 = vpop.eup %5564  ;;  %5574 = vrcp.f32 %v2153_v35 }
 0x388   : > { %4996 = vmatprep.mubr.msk.bf16.mxu0 %vm1238_vm0, %v2669_v52  ;;  %v2156_v55 = vpop.xlane.xlu0 %2155  ;;  %v2610_v49 = vmul.f32 %v5565_v34, %v9039_v39  ;;  %v9042_v39 = vld [vmem:[#allocation85_spill] sm:$0xff] }
 0x389   : > { %v5567_v51 = vpop.eup %5566  ;;  %5576 = vrcp.f32 %v2156_v55 }
 0x38a   : > { %v2345_v62 = vpop.xlane.xlu1 %2344  ;;  %v2701_v41 = vpack.c.bf16 %v2610_v49, %v2608_v45  ;;  %v2484_v56 = vmul.f32 %v5567_v51, %v7915_v50  ;;  %v9043_v51 = vld [vmem:[#allocation86_spill] sm:$0xff] }
 0x38b   : > { %v5569_v21 = vpop.eup %5568  ;;  %5578 = vrcp.f32 %v2345_v62 }
 0x38c   : > { %5060 = vmatprep.mubr.msk.bf16.mxu1 %vm1238_vm0, %v2701_v41  ;;  %v2348_v16 = vpop.xlane.xlu0 %2347  ;;  %v2486_v37 = vmul.f32 %v5569_v21, %v7925_v44 }
 0x38d   : > { %v5571_v63 = vpop.eup %5570  ;;  %5580 = vrcp.f32 %v2348_v16 }
 0x38e   : > { %v2159_v26 = vpop.xlane.xlu1 %2158  ;;  %v2670_v3 = vpack.c.bf16 %v2486_v37, %v2484_v56  ;;  %v2612_v13 = vmul.f32 %v5571_v63, %v7933_v42 }
 0x38f   : > { %v5573_v30 = vpop.eup %5572  ;;  %5582 = vrcp.f32 %v2159_v26 }
 0x390   : > { %4997 = vmatmul.mubr.msk.bf16.gmra.mrb[44].mxu0 %vm1238_vm0, %v2670_v3  ;;  %v2162_v11 = vpop.xlane.xlu0 %2161  ;;  %v2614_v4 = vmul.f32 %v5573_v30, %v7944_v25 }
 0x391   : > { %v5575_v1 = vpop.eup %5574  ;;  %5584 = vrcp.f32 %v2162_v11 }
 0x392   : > { %v2351_v31 = vpop.xlane.xlu1 %2350  ;;  %v2702_v8 = vpack.c.bf16 %v2614_v4, %v2612_v13  ;;  %v2488_v59 = vmul.f32 %v5575_v1, %v9040_v54 }
 0x393   : > { %v5577_v50 = vpop.eup %5576  ;;  %5586 = vrcp.f32 %v2351_v31  ;;  %v4958_v44 = vpop.f32.mrb[4].mxu0 }
 0x394   : > { %5061 = vmatmul.mubr.msk.bf16.gmra.mrb[44].mxu1 %vm1238_vm0, %v2702_v8  ;;  %v2354_v7 = vpop.xlane.xlu0 %2353  ;;  %v2490_v19 = vmul.f32 %v5577_v50, %v9041_v60  ;;  %v2956_v53 = vpop.f32.mrb[5].mxu0 }
 0x395   : > { %v5579_v10 = vpop.eup %5578  ;;  %5588 = vrcp.f32 %v2354_v7  ;;  %v4959_v25 = vpop.f32.mrb[6].mxu0 }
 0x396   : > { %v2165_v42 = vpop.xlane.xlu1 %2164  ;;  %v2671_v22 = vpack.c.bf16 %v2490_v19, %v2488_v59  ;;  %v4520_v35 = vpack.c.bf16 %v4959_v25, %v4958_v44  ;;  %v2959_v52 = vpop.f32.mrb[7].mxu0  ;;  %v2616_v49 = vmul.f32 %v5579_v10, %v9042_v39  ;;  %v9044_v19 = vld [vmem:[#allocation104_spill] sm:$0xff] }
 0x397   : > { %v5581_v5 = vpop.eup %5580  ;;  %5590 = vrcp.f32 %v2165_v42  ;;  %v5022_v34 = vpop.f32.mrb[4].mxu1  ;;  %v4515_v55 = vpack.c.bf16 %v2959_v52, %v2956_v53  ;;  %v9045_v53 = vld [vmem:[#allocation40_spill] sm:$0xff] }
 0x398   : > { %5000 = vmatprep.mubr.msk.bf16.mxu0 %vm1238_vm0, %v2671_v22  ;;  %v3212_v17 = vpop.f32.mrb[5].mxu1  ;;  %v2168_v45 = vpop.xlane.xlu0 %2167  ;;  %v2618_v62 = vmul.f32 %v5581_v5, %v9043_v51  ;;  %4824 = vst [vmem:[%s8227_s29 + $0x18] sm:$0xff] %v4520_v35  }
 0x399   : > { %v5583_v41 = vpop.eup %5582  ;;  %5592 = vrcp.f32 %v2168_v45  ;;  %v5023_v16 = vpop.f32.mrb[6].mxu1  ;;  %4823 = vst [vmem:[%s8227_s29 + $0x10] sm:$0xff] %v4515_v55  }
 0x39a   : > { %v2357_v21 = vpop.xlane.xlu1 %2356  ;;  %v4680_v56 = vpack.c.bf16 %v5023_v16, %v5022_v34  ;;  %v3215_v37 = vpop.f32.mrb[7].mxu1  ;;  %v2703_v63 = vpack.c.bf16 %v2618_v62, %v2616_v49  ;;  %v2492_v11 = vmul.f32 %v5583_v41, %v7977_v32 }
 0x39b   : > { %v5585_v26 = vpop.eup %5584  ;;  %5594 = vrcp.f32 %v2357_v21  ;;  %v4675_v3 = vpack.c.bf16 %v3215_v37, %v3212_v17 }
 0x39c   : > { %4856 = vst [vmem:[%s8227_s29 + $0x118] sm:$0xff] %v4680_v56   ;;  %5064 = vmatprep.mubr.msk.bf16.mxu1 %vm1238_vm0, %v2703_v63  ;;  %v2360_v30 = vpop.xlane.xlu0 %2359  ;;  %v2494_v13 = vmul.f32 %v5585_v26, %v7987_v36 }
 0x39d   : > { %v5587_v4 = vpop.eup %5586  ;;  %4855 = vst [vmem:[%s8227_s29 + $0x110] sm:$0xff] %v4675_v3   ;;  %5596 = vrcp.f32 %v2360_v30 }
 0x39e   : > { %v2171_v1 = vpop.xlane.xlu1 %2170  ;;  %v2672_v31 = vpack.c.bf16 %v2494_v13, %v2492_v11  ;;  %v2620_v44 = vmul.f32 %v5587_v4, %v7995_v15 }
 0x39f   : > { %v5589_v8 = vpop.eup %5588  ;;  %5598 = vrcp.f32 %v2171_v1 }
 0x3a0   : > { %5001 = vmatmul.mubr.msk.bf16.gmra.mrb[48].mxu0 %vm1238_vm0, %v2672_v31  ;;  %v2174_v50 = vpop.xlane.xlu0 %2173  ;;  %v2622_v7 = vmul.f32 %v5589_v8, %v8006_v61 }
 0x3a1   : > { %v5591_v54 = vpop.eup %5590  ;;  %5600 = vrcp.f32 %v2174_v50 }
 0x3a2   : > { %v2363_v59 = vpop.xlane.xlu1 %2362  ;;  %v2704_v32 = vpack.c.bf16 %v2622_v7, %v2620_v44  ;;  %v2496_v10 = vmul.f32 %v5591_v54, %v9044_v19 }
 0x3a3   : > { %v5593_v60 = vpop.eup %5592  ;;  %5602 = vrcp.f32 %v2363_v59 }
 0x3a4   : > { %5065 = vmatmul.mubr.msk.bf16.gmra.mrb[48].mxu1 %vm1238_vm0, %v2704_v32  ;;  %v2366_v36 = vpop.xlane.xlu0 %2365  ;;  %v2498_v42 = vmul.f32 %v5593_v60, %v9045_v53 }
 0x3a5   : > { %v5595_v25 = vpop.eup %5594  ;;  %5604 = vrcp.f32 %v2366_v36 }
 0x3a6   : > { %v2177_v22 = vpop.xlane.xlu1 %2176  ;;  %v2673_v5 = vpack.c.bf16 %v2498_v42, %v2496_v10  ;;  %v2624_v35 = vmul.f32 %v5595_v25, %v8029_v46 }
 0x3a7   : > { %v5597_v15 = vpop.eup %5596  ;;  %5606 = vrcp.f32 %v2177_v22 }
 0x3a8   : > { %5004 = vmatprep.mubr.msk.bf16.mxu0 %vm1238_vm0, %v2673_v5  ;;  %v2180_v61 = vpop.xlane.xlu0 %2179  ;;  %v2626_v52 = vmul.f32 %v5597_v15, %v8033_v6 }
 0x3a9   : > { %v5599_v34 = vpop.eup %5598  ;;  %5608 = vrcp.f32 %v2180_v61 }
 0x3aa   : > { %v2369_v55 = vpop.xlane.xlu1 %2368  ;;  %v2705_v17 = vpack.c.bf16 %v2626_v52, %v2624_v35  ;;  %v2500_v49 = vmul.f32 %v5599_v34, %v8041_v0 }
 0x3ab   : > { %v5601_v45 = vpop.eup %5600  ;;  %5610 = vrcp.f32 %v2369_v55 }
 0x3ac   : > { %5068 = vmatprep.mubr.msk.bf16.mxu1 %vm1238_vm0, %v2705_v17  ;;  %v2372_v39 = vpop.xlane.xlu0 %2371  ;;  %v2502_v51 = vmul.f32 %v5601_v45, %v8051_v14 }
 0x3ad   : > { %v5603_v62 = vpop.eup %5602  ;;  %5612 = vrcp.f32 %v2372_v39 }
 0x3ae   : > { %v2183_v41 = vpop.xlane.xlu1 %2182  ;;  %v2674_v21 = vpack.c.bf16 %v2502_v51, %v2500_v49  ;;  %v2628_v16 = vmul.f32 %v5603_v62, %v8059_v57 }
 0x3af   : > { %v5605_v46 = vpop.eup %5604  ;;  %5614 = vrcp.f32 %v2183_v41 }
 0x3b0   : > { %5005 = vmatmul.mubr.msk.bf16.gmra.mrb[52].mxu0 %vm1238_vm0, %v2674_v21  ;;  %v2186_v6 = vpop.xlane.xlu0 %2185  ;;  %v2630_v56 = vmul.f32 %v5605_v46, %v8070_v9 }
 0x3b1   : > { %v5607_v37 = vpop.eup %5606  ;;  %5616 = vrcp.f32 %v2186_v6 }
 0x3b2   : > { %v2375_v63 = vpop.xlane.xlu1 %2374  ;;  %v2706_v26 = vpack.c.bf16 %v2630_v56, %v2628_v16  ;;  %v2504_v30 = vmul.f32 %v5607_v37, %v8074_v2 }
 0x3b3   : > { %v5609_v0 = vpop.eup %5608  ;;  %5618 = vrcp.f32 %v2375_v63  ;;  %v4962_v14 = vpop.f32.mrb[8].mxu0 }
 0x3b4   : > { %5069 = vmatmul.mubr.msk.bf16.gmra.mrb[52].mxu1 %vm1238_vm0, %v2706_v26  ;;  %v2378_v3 = vpop.xlane.xlu0 %2377  ;;  %v2506_v11 = vmul.f32 %v5609_v0, %v8079_v43  ;;  %v2972_v4 = vpop.f32.mrb[9].mxu0 }
 0x3b5   : > { %v5611_v13 = vpop.eup %5610  ;;  %5620 = vrcp.f32 %v2378_v3  ;;  %v4963_v9 = vpop.f32.mrb[10].mxu0 }
 0x3b6   : > { %v2189_v57 = vpop.xlane.xlu1 %2188  ;;  %v2675_v1 = vpack.c.bf16 %v2506_v11, %v2504_v30  ;;  %v4530_v8 = vpack.c.bf16 %v4963_v9, %v4962_v14  ;;  %v2975_v50 = vpop.f32.mrb[11].mxu0  ;;  %v2632_v43 = vmul.f32 %v5611_v13, %v8085_v18 }
 0x3b7   : > { %v5613_v31 = vpop.eup %5612  ;;  %5622 = vrcp.f32 %v2189_v57  ;;  %v5026_v44 = vpop.f32.mrb[8].mxu1  ;;  %v4525_v7 = vpack.c.bf16 %v2975_v50, %v2972_v4 }
 0x3b8   : > { %5008 = vmatprep.mubr.msk.bf16.mxu0 %vm1238_vm0, %v2675_v1  ;;  %v3228_v54 = vpop.f32.mrb[9].mxu1  ;;  %v2192_v2 = vpop.xlane.xlu0 %2191  ;;  %v2634_v59 = vmul.f32 %v5613_v31, %v8089_v58  ;;  %4826 = vst [vmem:[%s8227_s29 + $0x28] sm:$0xff] %v4530_v8  }
 0x3b9   : > { %v5615_v32 = vpop.eup %5614  ;;  %5624 = vrcp.f32 %v2192_v2  ;;  %v5027_v36 = vpop.f32.mrb[10].mxu1  ;;  %4825 = vst [vmem:[%s8227_s29 + $0x20] sm:$0xff] %v4525_v7  }
 0x3ba   : > { %v2381_v60 = vpop.xlane.xlu1 %2380  ;;  %v4690_v19 = vpack.c.bf16 %v5027_v36, %v5026_v44  ;;  %v3231_v10 = vpop.f32.mrb[11].mxu1  ;;  %v2707_v53 = vpack.c.bf16 %v2634_v59, %v2632_v43  ;;  %v2508_v18 = vmul.f32 %v5615_v32, %v8091_v23 }
 0x3bb   : > { %v5617_v42 = vpop.eup %5616  ;;  %5626 = vrcp.f32 %v2381_v60  ;;  %v4685_v25 = vpack.c.bf16 %v3231_v10, %v3228_v54 }
 0x3bc   : > { %4858 = vst [vmem:[%s8227_s29 + $0x128] sm:$0xff] %v4690_v19   ;;  %5072 = vmatprep.mubr.msk.bf16.mxu1 %vm1238_vm0, %v2707_v53  ;;  %v2384_v22 = vpop.xlane.xlu0 %2383  ;;  %v2510_v58 = vmul.f32 %v5617_v42, %v8097_v29 }
 0x3bd   : > { %v5619_v5 = vpop.eup %5618  ;;  %4857 = vst [vmem:[%s8227_s29 + $0x120] sm:$0xff] %v4685_v25   ;;  %5628 = vrcp.f32 %v2384_v22 }
 0x3be   : > { %v2195_v15 = vpop.xlane.xlu1 %2194  ;;  %v2676_v61 = vpack.c.bf16 %v2510_v58, %v2508_v18  ;;  %v2636_v34 = vmul.f32 %v5619_v5, %v8105_v47 }
 0x3bf   : > { %v5621_v35 = vpop.eup %5620  ;;  %5630 = vrcp.f32 %v2195_v15 }
 0x3c0   : > { %5009 = vmatmul.mubr.msk.bf16.gmra.mrb[56].mxu0 %vm1238_vm0, %v2676_v61  ;;  %v2198_v52 = vpop.xlane.xlu0 %2197  ;;  %v2638_v55 = vmul.f32 %v5621_v35, %v8113_v27 }
 0x3c1   : > { %v5623_v17 = vpop.eup %5622  ;;  %5632 = vrcp.f32 %v2198_v52 }
 0x3c2   : > { %v2387_v45 = vpop.xlane.xlu1 %2386  ;;  %v2708_v23 = vpack.c.bf16 %v2638_v55, %v2636_v34  ;;  %v2512_v49 = vmul.f32 %v5623_v17, %v8120_v28 }
 0x3c3   : > { %v5625_v39 = vpop.eup %5624  ;;  %5634 = vrcp.f32 %v2387_v45 }
 0x3c4   : > { %5073 = vmatmul.mubr.msk.bf16.gmra.mrb[56].mxu1 %vm1238_vm0, %v2708_v23  ;;  %v2390_v29 = vpop.xlane.xlu0 %2389  ;;  %v2514_v51 = vmul.f32 %v5625_v39, %v8126_v33 }
 0x3c5   : > { %v5627_v62 = vpop.eup %5626  ;;  %5636 = vrcp.f32 %v2390_v29 }
 0x3c6   : > { %v2677_v41 = vpack.c.bf16 %v2514_v51, %v2512_v49  ;;  %v2640_v47 = vmul.f32 %v5627_v62, %v8131_v40 }
 0x3c7   : > { %v5629_v21 = vpop.eup %5628 }
 0x3c8   : > { %5012 = vmatprep.mubr.msk.bf16.mxu0 %vm1238_vm0, %v2677_v41  ;;  %v2642_v27 = vmul.f32 %v5629_v21, %v8137_v48 }
 0x3c9   : > { %v5631_v46 = vpop.eup %5630 }
 0x3ca   : > { %v2709_v6 = vpack.c.bf16 %v2642_v27, %v2640_v47  ;;  %v2516_v56 = vmul.f32 %v5631_v46, %v8146_v38 }
 0x3cb   : > { %v5633_v16 = vpop.eup %5632 }
 0x3cc   : > { %5076 = vmatprep.mubr.msk.bf16.mxu1 %vm1238_vm0, %v2709_v6  ;;  %v2518_v28 = vmul.f32 %v5633_v16, %v8151_v24 }
 0x3cd   : > { %v5635_v33 = vpop.eup %5634 }
 0x3ce   : > { %v2678_v37 = vpack.c.bf16 %v2518_v28, %v2516_v56  ;;  %v2644_v40 = vmul.f32 %v5635_v33, %v8157_v20 }
 0x3cf   : > { %v5637_v63 = vpop.eup %5636 }
 0x3d0   : > { %5013 = vmatmul.mubr.msk.bf16.gmra.mrb[60].mxu0 %vm1238_vm0, %v2678_v37  ;;  %v2646_v48 = vmul.f32 %v5637_v63, %v8162_v12 }
 0x3d2   : > { %v2710_v26 = vpack.c.bf16 %v2646_v48, %v2644_v40 }
 0x3d3   : > { %v4966_v0 = vpop.f32.mrb[12].mxu0 }
 0x3d4   : > { %5077 = vmatmul.mubr.msk.bf16.gmra.mrb[60].mxu1 %vm1238_vm0, %v2710_v26  ;;  %v2988_v38 = vpop.f32.mrb[13].mxu0 }
 0x3d5   : > { %v4967_v14 = vpop.f32.mrb[14].mxu0 }
 0x3d6   : > { %v4540_v24 = vpack.c.bf16 %v4967_v14, %v4966_v0  ;;  %v2991_v3 = vpop.f32.mrb[15].mxu0 }
 0x3d7   : > { %v5030_v30 = vpop.f32.mrb[12].mxu1  ;;  %v4535_v11 = vpack.c.bf16 %v2991_v3, %v2988_v38 }
 0x3d8   : > { %v3244_v13 = vpop.f32.mrb[13].mxu1  ;;  %4828 = vst [vmem:[%s8227_s29 + $0x38] sm:$0xff] %v4540_v24  }
 0x3d9   : > { %v5031_v4 = vpop.f32.mrb[14].mxu1  ;;  %4827 = vst [vmem:[%s8227_s29 + $0x30] sm:$0xff] %v4535_v11  }
 0x3da   : > { %v4700_v20 = vpack.c.bf16 %v5031_v4, %v5030_v30  ;;  %v3247_v12 = vpop.f32.mrb[15].mxu1 }
 0x3db   : > { %v4695_v57 = vpack.c.bf16 %v3247_v12, %v3244_v13 }
 0x3dc   : > { %4860 = vst [vmem:[%s8227_s29 + $0x138] sm:$0xff] %v4700_v20  }
 0x3dd   : > { %4859 = vst [vmem:[%s8227_s29 + $0x130] sm:$0xff] %v4695_v57  }
 0x3f3   : > { %v4970_v9 = vpop.f32.mrb[16].mxu0 }
 0x3f4   : > { %v3004_v1 = vpop.f32.mrb[17].mxu0 }
 0x3f5   : > { %v4971_v31 = vpop.f32.mrb[18].mxu0 }
 0x3f6   : > { %v4550_v8 = vpack.c.bf16 %v4971_v31, %v4970_v9  ;;  %v3007_v50 = vpop.f32.mrb[19].mxu0 }
 0x3f7   : > { %v5034_v44 = vpop.f32.mrb[16].mxu1  ;;  %v4545_v7 = vpack.c.bf16 %v3007_v50, %v3004_v1 }
 0x3f8   : > { %v3260_v54 = vpop.f32.mrb[17].mxu1  ;;  %4830 = vst [vmem:[%s8227_s29 + $0x48] sm:$0xff] %v4550_v8  }
 0x3f9   : > { %v5035_v2 = vpop.f32.mrb[18].mxu1  ;;  %4829 = vst [vmem:[%s8227_s29 + $0x40] sm:$0xff] %v4545_v7  }
 0x3fa   : > { %v4710_v43 = vpack.c.bf16 %v5035_v2, %v5034_v44  ;;  %v3263_v59 = vpop.f32.mrb[19].mxu1 }
 0x3fb   : > { %v4705_v32 = vpack.c.bf16 %v3263_v59, %v3260_v54 }
 0x3fc   : > { %4862 = vst [vmem:[%s8227_s29 + $0x148] sm:$0xff] %v4710_v43  }
 0x3fd   : > { %4861 = vst [vmem:[%s8227_s29 + $0x140] sm:$0xff] %v4705_v32  }
 0x403   : > { %v4974_v60 = vpop.f32.mrb[20].mxu0 }
 0x404   : > { %v3020_v36 = vpop.f32.mrb[21].mxu0 }
 0x405   : > { %v4975_v19 = vpop.f32.mrb[22].mxu0 }
 0x406   : > { %v4560_v10 = vpack.c.bf16 %v4975_v19, %v4974_v60  ;;  %v3023_v53 = vpop.f32.mrb[23].mxu0 }
 0x407   : > { %v4555_v42 = vpack.c.bf16 %v3023_v53, %v3020_v36  ;;  %v5038_v25 = vpop.f32.mrb[20].mxu1 }
 0x408   : > { %4832 = vst [vmem:[%s8227_s29 + $0x58] sm:$0xff] %v4560_v10   ;;  %v3276_v22 = vpop.f32.mrb[21].mxu1 }
 0x409   : > { %4831 = vst [vmem:[%s8227_s29 + $0x50] sm:$0xff] %v4555_v42   ;;  %v5039_v18 = vpop.f32.mrb[22].mxu1 }
 0x40a   : > { %v4720_v58 = vpack.c.bf16 %v5039_v18, %v5038_v25  ;;  %v3279_v5 = vpop.f32.mrb[23].mxu1 }
 0x40b   : > { %v4715_v15 = vpack.c.bf16 %v3279_v5, %v3276_v22 }
 0x40c   : > { %4864 = vst [vmem:[%s8227_s29 + $0x158] sm:$0xff] %v4720_v58  }
 0x40d   : > { %4863 = vst [vmem:[%s8227_s29 + $0x150] sm:$0xff] %v4715_v15  }
 0x413   : > { %v4978_v61 = vpop.f32.mrb[24].mxu0 }
 0x414   : > { %v3036_v35 = vpop.f32.mrb[25].mxu0 }
 0x415   : > { %v4979_v52 = vpop.f32.mrb[26].mxu0 }
 0x416   : > { %v4570_v34 = vpack.c.bf16 %v4979_v52, %v4978_v61  ;;  %v3039_v55 = vpop.f32.mrb[27].mxu0 }
 0x417   : > { %v4565_v17 = vpack.c.bf16 %v3039_v55, %v3036_v35  ;;  %v5042_v45 = vpop.f32.mrb[24].mxu1 }
 0x418   : > { %4834 = vst [vmem:[%s8227_s29 + $0x68] sm:$0xff] %v4570_v34   ;;  %v3292_v23 = vpop.f32.mrb[25].mxu1 }
 0x419   : > { %4833 = vst [vmem:[%s8227_s29 + $0x60] sm:$0xff] %v4565_v17   ;;  %v5043_v39 = vpop.f32.mrb[26].mxu1 }
 0x41a   : > { %v4730_v29 = vpack.c.bf16 %v5043_v39, %v5042_v45  ;;  %v3295_v49 = vpop.f32.mrb[27].mxu1 }
 0x41b   : > { %v4725_v51 = vpack.c.bf16 %v3295_v49, %v3292_v23 }
 0x41c   : > { %4866 = vst [vmem:[%s8227_s29 + $0x168] sm:$0xff] %v4730_v29  }
 0x41d   : > { %4865 = vst [vmem:[%s8227_s29 + $0x160] sm:$0xff] %v4725_v51  }
 0x423   : > { %v4982_v62 = vpop.f32.mrb[28].mxu0 }
 0x424   : > { %v3052_v41 = vpop.f32.mrb[29].mxu0 }
 0x425   : > { %v4983_v21 = vpop.f32.mrb[30].mxu0 }
 0x426   : > { %v4580_v47 = vpack.c.bf16 %v4983_v21, %v4982_v62  ;;  %v3055_v27 = vpop.f32.mrb[31].mxu0 }
 0x427   : > { %v4575_v46 = vpack.c.bf16 %v3055_v27, %v3052_v41  ;;  %v5046_v6 = vpop.f32.mrb[28].mxu1 }
 0x428   : > { %4836 = vst [vmem:[%s8227_s29 + $0x78] sm:$0xff] %v4580_v47   ;;  %v3308_v16 = vpop.f32.mrb[29].mxu1 }
 0x429   : > { %4835 = vst [vmem:[%s8227_s29 + $0x70] sm:$0xff] %v4575_v46   ;;  %v5047_v56 = vpop.f32.mrb[30].mxu1 }
 0x42a   : > { %v4740_v28 = vpack.c.bf16 %v5047_v56, %v5046_v6  ;;  %v3311_v33 = vpop.f32.mrb[31].mxu1 }
 0x42b   : > { %v4735_v37 = vpack.c.bf16 %v3311_v33, %v3308_v16 }
 0x42c   : > { %4868 = vst [vmem:[%s8227_s29 + $0x178] sm:$0xff] %v4740_v28  }
 0x42d   : > { %4867 = vst [vmem:[%s8227_s29 + $0x170] sm:$0xff] %v4735_v37  }
 0x433   : > { %v4986_v63 = vpop.f32.mrb[32].mxu0 }
 0x434   : > { %v3068_v40 = vpop.f32.mrb[33].mxu0 }
 0x435   : > { %v4987_v48 = vpop.f32.mrb[34].mxu0 }
 0x436   : > { %v4590_v26 = vpack.c.bf16 %v4987_v48, %v4986_v63  ;;  %v3071_v0 = vpop.f32.mrb[35].mxu0 }
 0x437   : > { %v4585_v38 = vpack.c.bf16 %v3071_v0, %v3068_v40  ;;  %v5050_v14 = vpop.f32.mrb[32].mxu1 }
 0x438   : > { %4838 = vst [vmem:[%s8227_s29 + $0x88] sm:$0xff] %v4590_v26   ;;  %v3324_v24 = vpop.f32.mrb[33].mxu1 }
 0x439   : > { %4837 = vst [vmem:[%s8227_s29 + $0x80] sm:$0xff] %v4585_v38   ;;  %v5051_v3 = vpop.f32.mrb[34].mxu1 }
 0x43a   : > { %v4750_v30 = vpack.c.bf16 %v5051_v3, %v5050_v14  ;;  %v3327_v11 = vpop.f32.mrb[35].mxu1 }
 0x43b   : > { %v4745_v13 = vpack.c.bf16 %v3327_v11, %v3324_v24 }
 0x43c   : > { %4870 = vst [vmem:[%s8227_s29 + $0x188] sm:$0xff] %v4750_v30  }
 0x43d   : > { %4869 = vst [vmem:[%s8227_s29 + $0x180] sm:$0xff] %v4745_v13  }
 0x443   : > { %v4990_v4 = vpop.f32.mrb[36].mxu0 }
 0x444   : > { %v3084_v20 = vpop.f32.mrb[37].mxu0 }
 0x445   : > { %v4991_v12 = vpop.f32.mrb[38].mxu0 }
 0x446   : > { %v4600_v57 = vpack.c.bf16 %v4991_v12, %v4990_v4  ;;  %v3087_v9 = vpop.f32.mrb[39].mxu0 }
 0x447   : > { %v4595_v1 = vpack.c.bf16 %v3087_v9, %v3084_v20  ;;  %v5054_v31 = vpop.f32.mrb[36].mxu1 }
 0x448   : > { %4840 = vst [vmem:[%s8227_s29 + $0x98] sm:$0xff] %v4600_v57   ;;  %v3340_v8 = vpop.f32.mrb[37].mxu1 }
 0x449   : > { %4839 = vst [vmem:[%s8227_s29 + $0x90] sm:$0xff] %v4595_v1   ;;  %v5055_v50 = vpop.f32.mrb[38].mxu1 }
 0x44a   : > { %v4760_v44 = vpack.c.bf16 %v5055_v50, %v5054_v31  ;;  %v3343_v7 = vpop.f32.mrb[39].mxu1 }
 0x44b   : > { %v4755_v54 = vpack.c.bf16 %v3343_v7, %v3340_v8 }
 0x44c   : > { %4872 = vst [vmem:[%s8227_s29 + $0x198] sm:$0xff] %v4760_v44  }
 0x44d   : > { %4871 = vst [vmem:[%s8227_s29 + $0x190] sm:$0xff] %v4755_v54  }
 0x453   : > { %v4994_v2 = vpop.f32.mrb[40].mxu0 }
 0x454   : > { %v3100_v43 = vpop.f32.mrb[41].mxu0 }
 0x455   : > { %v4995_v59 = vpop.f32.mrb[42].mxu0 }
 0x456   : > { %v4610_v32 = vpack.c.bf16 %v4995_v59, %v4994_v2  ;;  %v3103_v60 = vpop.f32.mrb[43].mxu0 }
 0x457   : > { %v4605_v36 = vpack.c.bf16 %v3103_v60, %v3100_v43  ;;  %v5058_v19 = vpop.f32.mrb[40].mxu1 }
 0x458   : > { %4842 = vst [vmem:[%s8227_s29 + $0xa8] sm:$0xff] %v4610_v32   ;;  %v3356_v10 = vpop.f32.mrb[41].mxu1 }
 0x459   : > { %4841 = vst [vmem:[%s8227_s29 + $0xa0] sm:$0xff] %v4605_v36   ;;  %v5059_v53 = vpop.f32.mrb[42].mxu1 }
 0x45a   : > { %v4770_v42 = vpack.c.bf16 %v5059_v53, %v5058_v19  ;;  %v3359_v25 = vpop.f32.mrb[43].mxu1 }
 0x45b   : > { %v4765_v22 = vpack.c.bf16 %v3359_v25, %v3356_v10 }
 0x45c   : > { %4874 = vst [vmem:[%s8227_s29 + $0x1a8] sm:$0xff] %v4770_v42  }
 0x45d   : > { %4873 = vst [vmem:[%s8227_s29 + $0x1a0] sm:$0xff] %v4765_v22  }
 0x463   : > { %v4998_v18 = vpop.f32.mrb[44].mxu0 }
 0x464   : > { %v3116_v58 = vpop.f32.mrb[45].mxu0 }
 0x465   : > { %v4999_v5 = vpop.f32.mrb[46].mxu0 }
 0x466   : > { %v4620_v15 = vpack.c.bf16 %v4999_v5, %v4998_v18  ;;  %v3119_v61 = vpop.f32.mrb[47].mxu0 }
 0x467   : > { %v4615_v35 = vpack.c.bf16 %v3119_v61, %v3116_v58  ;;  %v5062_v52 = vpop.f32.mrb[44].mxu1 }
 0x468   : > { %4844 = vst [vmem:[%s8227_s29 + $0xb8] sm:$0xff] %v4620_v15   ;;  %v3372_v34 = vpop.f32.mrb[45].mxu1 }
 0x469   : > { %4843 = vst [vmem:[%s8227_s29 + $0xb0] sm:$0xff] %v4615_v35   ;;  %v5063_v55 = vpop.f32.mrb[46].mxu1 }
 0x46a   : > { %v4780_v17 = vpack.c.bf16 %v5063_v55, %v5062_v52  ;;  %v3375_v45 = vpop.f32.mrb[47].mxu1 }
 0x46b   : > { %v4775_v23 = vpack.c.bf16 %v3375_v45, %v3372_v34 }
 0x46c   : > { %4876 = vst [vmem:[%s8227_s29 + $0x1b8] sm:$0xff] %v4780_v17  }
 0x46d   : > { %4875 = vst [vmem:[%s8227_s29 + $0x1b0] sm:$0xff] %v4775_v23  }
 0x473   : > { %v5002_v39 = vpop.f32.mrb[48].mxu0 }
 0x474   : > { %v3132_v29 = vpop.f32.mrb[49].mxu0 }
 0x475   : > { %v5003_v49 = vpop.f32.mrb[50].mxu0 }
 0x476   : > { %v4630_v51 = vpack.c.bf16 %v5003_v49, %v5002_v39  ;;  %v3135_v62 = vpop.f32.mrb[51].mxu0 }
 0x477   : > { %v4625_v41 = vpack.c.bf16 %v3135_v62, %v3132_v29  ;;  %v5066_v21 = vpop.f32.mrb[48].mxu1 }
 0x478   : > { %4846 = vst [vmem:[%s8227_s29 + $0xc8] sm:$0xff] %v4630_v51   ;;  %v3388_v47 = vpop.f32.mrb[49].mxu1 }
 0x479   : > { %4845 = vst [vmem:[%s8227_s29 + $0xc0] sm:$0xff] %v4625_v41   ;;  %v5067_v27 = vpop.f32.mrb[50].mxu1 }
 0x47a   : > { %v4790_v46 = vpack.c.bf16 %v5067_v27, %v5066_v21  ;;  %v3391_v6 = vpop.f32.mrb[51].mxu1 }
 0x47b   : > { %v4785_v16 = vpack.c.bf16 %v3391_v6, %v3388_v47 }
 0x47c   : > { %4878 = vst [vmem:[%s8227_s29 + $0x1c8] sm:$0xff] %v4790_v46  }
 0x47d   : > { %4877 = vst [vmem:[%s8227_s29 + $0x1c0] sm:$0xff] %v4785_v16  }
 0x483   : > { %v5006_v56 = vpop.f32.mrb[52].mxu0 }
 0x484   : > { %v3148_v28 = vpop.f32.mrb[53].mxu0 }
 0x485   : > { %v5007_v33 = vpop.f32.mrb[54].mxu0 }
 0x486   : > { %v4640_v37 = vpack.c.bf16 %v5007_v33, %v5006_v56  ;;  %v3151_v63 = vpop.f32.mrb[55].mxu0 }
 0x487   : > { %v4635_v40 = vpack.c.bf16 %v3151_v63, %v3148_v28  ;;  %v5070_v48 = vpop.f32.mrb[52].mxu1 }
 0x488   : > { %4848 = vst [vmem:[%s8227_s29 + $0xd8] sm:$0xff] %v4640_v37   ;;  %v3404_v26 = vpop.f32.mrb[53].mxu1 }
 0x489   : > { %4847 = vst [vmem:[%s8227_s29 + $0xd0] sm:$0xff] %v4635_v40   ;;  %v5071_v0 = vpop.f32.mrb[54].mxu1 }
 0x48a   : > { %v4800_v38 = vpack.c.bf16 %v5071_v0, %v5070_v48  ;;  %v3407_v14 = vpop.f32.mrb[55].mxu1 }
 0x48b   : > { %v4795_v24 = vpack.c.bf16 %v3407_v14, %v3404_v26 }
 0x48c   : > { %4880 = vst [vmem:[%s8227_s29 + $0x1d8] sm:$0xff] %v4800_v38  }
 0x48d   : > { %4879 = vst [vmem:[%s8227_s29 + $0x1d0] sm:$0xff] %v4795_v24  }
 0x493   : > { %v5010_v3 = vpop.f32.mrb[56].mxu0 }
 0x494   : > { %v3164_v30 = vpop.f32.mrb[57].mxu0 }
 0x495   : > { %v5011_v11 = vpop.f32.mrb[58].mxu0 }
 0x496   : > { %v4650_v13 = vpack.c.bf16 %v5011_v11, %v5010_v3  ;;  %v3167_v4 = vpop.f32.mrb[59].mxu0 }
 0x497   : > { %v4645_v20 = vpack.c.bf16 %v3167_v4, %v3164_v30  ;;  %v5074_v12 = vpop.f32.mrb[56].mxu1 }
 0x498   : > { %4850 = vst [vmem:[%s8227_s29 + $0xe8] sm:$0xff] %v4650_v13   ;;  %v3420_v57 = vpop.f32.mrb[57].mxu1 }
 0x499   : > { %4849 = vst [vmem:[%s8227_s29 + $0xe0] sm:$0xff] %v4645_v20   ;;  %v5075_v9 = vpop.f32.mrb[58].mxu1 }
 0x49a   : > { %v4810_v1 = vpack.c.bf16 %v5075_v9, %v5074_v12  ;;  %v3423_v31 = vpop.f32.mrb[59].mxu1 }
 0x49b   : > { %v4805_v8 = vpack.c.bf16 %v3423_v31, %v3420_v57 }
 0x49c   : > { %4882 = vst [vmem:[%s8227_s29 + $0x1e8] sm:$0xff] %v4810_v1  }
 0x49d   : > { %4881 = vst [vmem:[%s8227_s29 + $0x1e0] sm:$0xff] %v4805_v8  }
 0x4a3   : > { %v5014_v50 = vpop.f32.mrb[60].mxu0 }
 0x4a4   : > { %v3180_v44 = vpop.f32.mrb[61].mxu0 }
 0x4a5   : > { %v5015_v7 = vpop.f32.mrb[62].mxu0 }
 0x4a6   : > { %v4660_v54 = vpack.c.bf16 %v5015_v7, %v5014_v50  ;;  %v3183_v2 = vpop.f32.mrb[63].mxu0 }
 0x4a7   : > { %v4655_v43 = vpack.c.bf16 %v3183_v2, %v3180_v44  ;;  %v5078_v59 = vpop.f32.mrb[60].mxu1 }
 0x4a8   : > { %4852 = vst [vmem:[%s8227_s29 + $0xf8] sm:$0xff] %v4660_v54   ;;  %v3436_v32 = vpop.f32.mrb[61].mxu1 }
 0x4a9   : > { %4851 = vst [vmem:[%s8227_s29 + $0xf0] sm:$0xff] %v4655_v43   ;;  %v5079_v60 = vpop.f32.mrb[62].mxu1 }
 0x4aa   : > { %v4820_v36 = vpack.c.bf16 %v5079_v60, %v5078_v59  ;;  %v3439_v19 = vpop.f32.mrb[63].mxu1 }
 0x4ab   : > { %v4815_v10 = vpack.c.bf16 %v3439_v19, %v3436_v32 }
 0x4ac   : > { %4884 = vst [vmem:[%s8227_s29 + $0x1f8] sm:$0xff] %v4820_v36  }
 0x4ad   : > { %4883 = vst [vmem:[%s8227_s29 + $0x1f0] sm:$0xff] %v4815_v10  }
 0x4ae   : > { %5653 = shalt.err (!%p5650_p3)
}
 0x4af   : > { %s5654_s13 = scalar_lea.hbm %s8363_s8, 8192  ;;  %s5658_s22 = scalar_lea.hbm %s8416_s4, 16384 }
 0x4b0   : > { %p5655_p4 = scmp.ne.s32.totalorder %s8363_s8, %s5654_s13  ;;  %p5659_p9 = scmp.lt.u32.totalorder %s8363_s8, %s8416_s4 }
 0x4b1   : > { %p5660_p10 = scmp.lt.u32.totalorder %s5658_s22, %s5654_s13  ;;  %p5662_p12 = scmp.lt.u32.totalorder %s5654_s13, %s8363_s8 }
 0x4b2   : > { %p5656_p7 = pnand %p5655_p4, %p5771_p5 }
 0x4b3   : > { %p5661_p11 = por %p5660_p10, %p5659_p9 }
 0x4b4   : > { %p5657_p8 = pneg %p5656_p7 }
 0x4b5   : > { %p5663_p13 = por %p5662_p12, %p5661_p11 }
 0x4b7   : > { %p5664_p0 = pnand %p5663_p13, %p5657_p8 }
 0x4b9   : > { %5667 = shalt.err (!%p5664_p0)
}
 0x4ba   : > { %s5706_s28 = smov 64   ;;  %s5707_s29 = smov 4  }
 0x4bb   : > { %5082 = dma.vmem_to_hbm [thread:$0]  (%p5771_p5), %s8365_s5, 8192, %s8363_s8, %s8371_s19, %s5706_s28, %s5706_s28, %s5707_s29  }
 0x4bc PF: > { %p5088_p1 = scmp.ge.s32.totalorder %s5702_s18, 2  ;;  %s4120_s30 = sand.u32 1, %s5690_s15  }
 0x4bd   : > { %s4121_s6 = scalar_lea.sflag [#allocation3], %s4120_s30 }
 0x4be   : > { %p5085_p2 = pnand %p5088_p1, %p5775_p6 }
 0x4c0   : > { %5685 = dma.done.wait (!%p5085_p2), %s4121_s6, 8192  }
 0x4c1   : > { %5687 = vsyncadd (!%p5085_p2), %s4121_s6, 4294959104  ;;  %p14_p3 = scmp.ge.s32.totalorder %s5758_s21, 4   ;;  %s9046_s15 = smov %s5694_s16 }
 0x4c2   : > { %s9047_s16 = smov %s5698_s17  ;;  %s9048_s17 = smov %s5769_s24 }
 0x4c3   : > { %s9049_s18 = smov %s5758_s21  ;;  %16 = sbr.rel (!%p14_p3) target bundleno = 3 (0x3), region = 71 }
 0x4ca   :  { %4126 = vsyncpa [#allocation3], 1 }
 0x4cb   :  { %4128 = vsyncpa [#allocation3 + $0x1], 1 }

</bundles_post_ra>
